<compile_context>
chip_gen: v7x
topology: tpu7x:2x2x1
jax: 0.10.0
libtpu: 0.0.40
codegen_flags: <defaults>
</compile_context>

<pallas_src>
import functools

import jax
import jax.numpy as jnp
from jax.experimental import pallas as pl
from jax.experimental.pallas import tpu as pltpu


NUM_HEADS = 4
CLS_HIDDEN = 128      # classifier hidden width (already lane-dense)
CLS_PAD = 128         # classifier logits padded to a full 128-lane store


# ----------------------------------------------------------------------------
# Fused forward kernel (bb batch elements per grid step)
# ----------------------------------------------------------------------------
def _fused_kernel(kp_ref, img_ref,
                  visfold_w_ref, visfold_b_ref,
                  lat_ref,
                  qkv_w_ref, qkv_b_ref,       # (3, D, 3D): perc self 1/2, attention pool
                  q0_w_ref, q0_b_ref,         # perceiver cross-attn Q proj
                  q3_w_ref, q3_b_ref,         # cross-attention Q proj (kp encoder folded in)
                  kv_w_ref, kv_b_ref,         # (2, D, 2D): perc cross / cross-attention K+V
                  out_w_ref, out_b_ref,       # (4, D, D): out proj of modules 0..3
                  mlp_w1_ref, mlp_b1_ref, mlp_w2_ref, mlp_b2_ref,
                  poolcls_w_ref, poolcls_b_ref,   # pool out-proj folded with classifier fc1
                  cls2_w_ref, cls2_b_ref,         # classifier fc2, zero-padded to 128 lanes
                  o_ref, *, num_heads, bb):
    f32, bf16 = jnp.float32, jnp.bfloat16
    T = kp_ref.shape[1]
    N, E = lat_ref.shape
    H = num_heads
    Dh = E // H
    scale = 1.0 / (Dh ** 0.5)

    def dot(x, w):
        # Weights are pre-transposed (in, out) and stored bf16; accumulate in f32.
        return jnp.dot(x.astype(bf16), w, preferred_element_type=f32)

    def split_heads(x_rows, t):
        # (bb*t, E) f32 -> (bb*H, t, Dh) bf16.  Dh stays in the lane dim; only
        # outer / sublane dims are permuted (no full lane<->sublane transpose).
        x4 = x_rows.reshape(bb, t, H, Dh)
        parts = [jnp.transpose(x4[b], (1, 0, 2)) for b in range(bb)]
        return jnp.concatenate(parts, axis=0).astype(bf16)

    def merge_heads(ctx, t):
        # (bb*H, t, Dh) f32 -> (bb*t, E) f32, contiguous head chunks along E.
        parts = [jnp.transpose(ctx[b * H:(b + 1) * H], (1, 0, 2)).reshape(t, E)
                 for b in range(bb)]
        return jnp.concatenate(parts, axis=0)

    def attn_core(q_rows, k_rows, v_rows, tq, tk):
        # nn.MultiheadAttention core: contiguous head chunks, scale 1/sqrt(Dh),
        # max-stabilized softmax (f32), score/context dots batched over bb*H.
        qh = split_heads(q_rows, tq)
        kh = split_heads(k_rows, tk)
        vh = split_heads(v_rows, tk)
        s = jnp.einsum("gqd,gkd->gqk", qh, kh,
                       preferred_element_type=f32) * scale
        s = s - jnp.max(s, axis=-1, keepdims=True)
        p = jnp.exp(s)
        p = p * pl.reciprocal(jnp.sum(p, axis=-1, keepdims=True), approx=True)
        ctx = jnp.einsum("gqk,gkd->gqd", p.astype(bf16), vh,
                         preferred_element_type=f32)
        return merge_heads(ctx, tq)

    def self_attn(x_rows, t, m_qkv, m_out):
        # Fused QKV: one (rows, 3E) dot instead of three (rows, E) dots.
        qkv = dot(x_rows, qkv_w_ref[m_qkv]) + qkv_b_ref[m_qkv]
        ctx = attn_core(qkv[:, :E], qkv[:, E:2 * E], qkv[:, 2 * E:], t, t)
        return dot(ctx, out_w_ref[m_out]) + out_b_ref[m_out]

    # ---- visual path: (stub visual encoder ∘ perceiver input proj), folded ----
    # TODO(synk): F.interpolate(224x224) + frozen pretrained HF ViT + token
    # mean-pool replaced by one deterministic linear on the flattened frame.
    img = img_ref[...].reshape(bb * T, -1)                               # (bb*T, F)
    vis = dot(img, visfold_w_ref[...]) + visfold_b_ref[...]              # (bb*T, E)

    # ---- Perceiver resampler (simplified) --------------------------------------
    # TODO(synk): HF PerceiverModel LayerNorms / exact block structure omitted.
    lat0 = lat_ref[...]                                                  # (N, E)
    lat = lat0 if bb == 1 else jnp.concatenate([lat0] * bb, axis=0)      # (bb*N, E)

    # cross-attention: latents <- visual features (fused K+V projection)
    q = dot(lat, q0_w_ref[...]) + q0_b_ref[...]
    kv = dot(vis, kv_w_ref[0]) + kv_b_ref[0]
    ctx = attn_core(q, kv[:, :E], kv[:, E:], N, T)
    lat = lat + (dot(ctx, out_w_ref[0]) + out_b_ref[0])

    # 2 residual self-attention + MLP blocks
    for i in range(2):
        lat = lat + self_attn(lat, N, i, 1 + i)
        h = dot(lat, mlp_w1_ref[i]) + mlp_b1_ref[i]
        # TODO(synk): tanh-approx GELU (PyTorch nn.GELU default is exact erf).
        h = jax.nn.gelu(h, approximate=True)
        lat = lat + (dot(h, mlp_w2_ref[i]) + mlp_b2_ref[i])

    # ---- cross attention: query = keypoints (encoder folded into Q proj) -------
    kp = kp_ref[...].reshape(bb * T, -1)                                 # (bb*T, K)
    q = dot(kp, q3_w_ref[...]) + q3_b_ref[...]
    kv = dot(lat, kv_w_ref[1]) + kv_b_ref[1]
    ctx = attn_core(q, kv[:, :E], kv[:, E:], T, N)
    fused = dot(ctx, out_w_ref[3]) + out_b_ref[3]                        # (bb*T, E)

    # ---- attention pooling + temporal mean + classifier ------------------------
    # Pool out-proj and classifier fc1 are folded (mean commutes with the linear).
    qkv = dot(fused, qkv_w_ref[2]) + qkv_b_ref[2]
    ctx = attn_core(qkv[:, :E], qkv[:, E:2 * E], qkv[:, 2 * E:], T, T)   # (bb*T, E)
    pooled = jnp.mean(ctx.reshape(bb, T, E), axis=1)                     # (bb, E)

    hidden = jnp.maximum(dot(pooled, poolcls_w_ref[...]) + poolcls_b_ref[...], 0.0)
    logits = dot(hidden, cls2_w_ref[...]) + cls2_b_ref[...]              # (bb, 128)
    o_ref[...] = logits[None].astype(o_ref.dtype)


# ----------------------------------------------------------------------------
# Wrapper
# ----------------------------------------------------------------------------
def deadlift_forward(keypoints, images, params, *, num_classes,
                     num_heads=NUM_HEADS, batch_block=None):
    """keypoints: (B, T, K) f32, images: (B, T, C, H, W) f32 -> (B, num_classes)."""
    B, T, K = keypoints.shape
    _, _, C, H, W = images.shape
    Fd = C * H * W
    img_flat = images.reshape(B, T, Fd)

    if batch_block is None:
        # Keep >=2 grid steps so both v7x TensorCores get work; within a step all
        # `bb` batch elements share every MXU dot (better sublane fill on v5e/v6e).
        # Single-TC chips may pass batch_block=B to collapse to grid=(1,).
        batch_block = max(1, -(-B // 2))
    bb = batch_block
    grid = -(-B // bb)
    b_pad = grid * bb
    if b_pad != B:
        keypoints = jnp.pad(keypoints, ((0, b_pad - B), (0, 0), (0, 0)))
        img_flat = jnp.pad(img_flat, ((0, b_pad - B), (0, 0), (0, 0)))

    weight_args = (
        params["visfold_w"], params["visfold_b"],
        params["latents"],
        params["qkv_w"], params["qkv_b"],
        params["q0_w"], params["q0_b"],
        params["q3_w"], params["q3_b"],
        params["kv_w"], params["kv_b"],
        params["out_w"], params["out_b"],
        params["mlp_w1"], params["mlp_b1"], params["mlp_w2"], params["mlp_b2"],
        params["poolcls_w"], params["poolcls_b"],
        params["cls2_w"], params["cls2_b"],
    )
    nc_pad = params["cls2_b"].shape[-1]

    def _const_spec(a):
        return pl.BlockSpec(a.shape, lambda i, _nd=a.ndim: (0,) * _nd)

    in_specs = [
        pl.BlockSpec((bb, T, K), lambda i: (i, 0, 0)),
        pl.BlockSpec((bb, T, Fd), lambda i: (i, 0, 0)),
    ] + [_const_spec(a) for a in weight_args]

    out = pl.pallas_call(
        functools.partial(_fused_kernel, num_heads=num_heads, bb=bb),
        out_shape=jax.ShapeDtypeStruct((grid, bb, nc_pad), jnp.float32),
        grid=(grid,),
        in_specs=in_specs,
        out_specs=pl.BlockSpec((1, bb, nc_pad), lambda i: (i, 0, 0)),
        compiler_params=pltpu.CompilerParams(
            dimension_semantics=("parallel",)),
    )(keypoints, img_flat, *weight_args)

    return out.reshape(b_pad, nc_pad)[:B, :num_classes]


# ----------------------------------------------------------------------------
# Deterministic parameter init (weights pre-transposed (in, out); folds applied)
# ----------------------------------------------------------------------------
def init_params(key, *, num_keypoints, visual_dim, latent_dim, num_visual_tokens,
                num_classes, image_feat_dim):
    D = latent_dim
    ks = iter(jax.random.split(key, 64))

    def w(shape, scale=0.02):
        return scale * jax.random.normal(next(ks), shape, dtype=jnp.float32)

    def bf(x):
        return x.astype(jnp.bfloat16)

    # TODO(synk): frozen pretrained HF visual encoder -> synthetic linear stub
    # (flattened frame -> visual_dim), folded with the Perceiver input projection
    # (two back-to-back linears with no nonlinearity == one linear).
    vis_w = w((image_feat_dim, visual_dim))
    vis_b = jnp.zeros((visual_dim,), jnp.float32)
    pin_w = w((visual_dim, D))
    pin_b = jnp.zeros((D,), jnp.float32)
    visfold_w = vis_w @ pin_w
    visfold_b = (vis_b @ pin_w + pin_b).reshape(1, D)

    # 5 MHA modules: 0=perceiver cross-attn, 1/2=perceiver self-attn,
    # 3=cross_attention, 4=attention_pool.  Each: [wq, wk, wv, wo], (in, out).
    mha = [[w((D, D)) for _ in range(4)] for _ in range(5)]

    # keypoint encoder folded into module-3 query projection.
    kp_w = w((num_keypoints, D))
    kp_b = w((1, D))
    q3_w = kp_w @ mha[3][0]
    q3_b = kp_b @ mha[3][0]           # MHA in-proj biases are zero-initialised

    # classifier; attention-pool out-proj folded into fc1, fc2 padded to 128 lanes.
    cls_w1 = w((D, CLS_HIDDEN)); cls_b1 = w((1, CLS_HIDDEN))
    cls_w2 = w((CLS_HIDDEN, num_classes)); cls_b2 = w((1, num_classes))
    poolcls_w = mha[4][3] @ cls_w1
    poolcls_b = cls_b1                # pool out-proj bias is zero-initialised
    cls2_w = jnp.zeros((CLS_HIDDEN, CLS_PAD), jnp.float32).at[:, :num_classes].set(cls_w2)
    cls2_b = jnp.zeros((1, CLS_PAD), jnp.float32).at[:, :num_classes].set(cls_b2)

    qkv_w = jnp.stack([jnp.concatenate(mha[m][:3], axis=1) for m in (1, 2, 4)])
    kv_w = jnp.stack([jnp.concatenate(mha[m][1:3], axis=1) for m in (0, 3)])
    out_w = jnp.stack([mha[m][3] for m in (0, 1, 2, 3)])

    mlp_w1 = jnp.stack([w((D, 4 * D)) for _ in range(2)])
    mlp_w2 = jnp.stack([w((4 * D, D)) for _ in range(2)])

    return dict(
        visfold_w=bf(visfold_w), visfold_b=visfold_b,
        latents=w((num_visual_tokens, D), scale=1.0),
        qkv_w=bf(qkv_w), qkv_b=jnp.zeros((3, 1, 3 * D), jnp.float32),
        q0_w=bf(mha[0][0]), q0_b=jnp.zeros((1, D), jnp.float32),
        q3_w=bf(q3_w), q3_b=q3_b,
        kv_w=bf(kv_w), kv_b=jnp.zeros((2, 1, 2 * D), jnp.float32),
        out_w=bf(out_w), out_b=jnp.zeros((4, 1, D), jnp.float32),
        mlp_w1=bf(mlp_w1), mlp_b1=jnp.zeros((2, 1, 4 * D), jnp.float32),
        mlp_w2=bf(mlp_w2), mlp_b2=jnp.zeros((2, 1, D), jnp.float32),
        poolcls_w=bf(poolcls_w), poolcls_b=poolcls_b,
        cls2_w=bf(cls2_w), cls2_b=cls2_b,
    )


# ----------------------------------------------------------------------------
# Main
# ----------------------------------------------------------------------------
if __name__ == "__main__":
    B, T = 2, 8                    # batch, sequence length
    C, H, W = 3, 16, 16            # small frames (NCHW per frame)
    NUM_KEYPOINTS = 34             # e.g. 17 keypoints x (x, y)
    VISUAL_DIM = 64                # stub for visual_encoder.config.hidden_size
    LATENT_DIM = 32
    NUM_VISUAL_TOKENS = 8
    NUM_CLASSES = 3

    root = jax.random.PRNGKey(0)
    k_param, k_kp, k_img = jax.random.split(root, 3)

    params = init_params(
        k_param,
        num_keypoints=NUM_KEYPOINTS, visual_dim=VISUAL_DIM,
        latent_dim=LATENT_DIM, num_visual_tokens=NUM_VISUAL_TOKENS,
        num_classes=NUM_CLASSES, image_feat_dim=C * H * W,
    )

    keypoints = jax.random.normal(k_kp, (B, T, NUM_KEYPOINTS), dtype=jnp.float32)
    images = jax.random.normal(k_img, (B, T, C, H, W), dtype=jnp.float32)

    fwd = jax.jit(functools.partial(deadlift_forward, num_classes=NUM_CLASSES))
    logits = fwd(keypoints, images, params)
    jax.block_until_ready(logits)

    assert logits.shape == (B, NUM_CLASSES), logits.shape
    print("KERNEL_OK")
</pallas_src>

<mosaic_0001>
module attributes {stable_mosaic.version = 11 : i64} {
  func.func @_fused_kernel(%arg0: i32, %arg1: memref<1x8x34xf32, #tpu.memory_space<vmem>>, %arg2: memref<1x8x768xf32, #tpu.memory_space<vmem>>, %arg3: memref<768x32xbf16, #tpu.memory_space<vmem>>, %arg4: memref<1x32xf32, #tpu.memory_space<vmem>>, %arg5: memref<8x32xf32, #tpu.memory_space<vmem>>, %arg6: memref<3x32x96xbf16, #tpu.memory_space<vmem>>, %arg7: memref<3x1x96xf32, #tpu.memory_space<vmem>>, %arg8: memref<32x32xbf16, #tpu.memory_space<vmem>>, %arg9: memref<1x32xf32, #tpu.memory_space<vmem>>, %arg10: memref<34x32xbf16, #tpu.memory_space<vmem>>, %arg11: memref<1x32xf32, #tpu.memory_space<vmem>>, %arg12: memref<2x32x64xbf16, #tpu.memory_space<vmem>>, %arg13: memref<2x1x64xf32, #tpu.memory_space<vmem>>, %arg14: memref<4x32x32xbf16, #tpu.memory_space<vmem>>, %arg15: memref<4x1x32xf32, #tpu.memory_space<vmem>>, %arg16: memref<2x32x128xbf16, #tpu.memory_space<vmem>>, %arg17: memref<2x1x128xf32, #tpu.memory_space<vmem>>, %arg18: memref<2x128x32xbf16, #tpu.memory_space<vmem>>, %arg19: memref<2x1x32xf32, #tpu.memory_space<vmem>>, %arg20: memref<32x128xbf16, #tpu.memory_space<vmem>>, %arg21: memref<1x128xf32, #tpu.memory_space<vmem>>, %arg22: memref<128x128xbf16, #tpu.memory_space<vmem>>, %arg23: memref<1x128xf32, #tpu.memory_space<vmem>>, %arg24: memref<1x1x128xf32, #tpu.memory_space<vmem>>) attributes {dimension_semantics = [#tpu.dimension_semantics<parallel>], iteration_bounds = array<i64: 2>, scalar_prefetch = 0 : i64, scratch_operands = 0 : i64, tpu.core_type = #tpu.core_type<tc>, window_params = [{transform_indices = @transform_0, window_bounds = array<i64: 1, 8, 34>}, {transform_indices = @transform_1, window_bounds = array<i64: 1, 8, 768>}, {pipeline_mode = #tpu.pipeline_mode<synchronous>, transform_indices = @transform_2, window_bounds = array<i64: 768, 32>}, {pipeline_mode = #tpu.pipeline_mode<synchronous>, transform_indices = @transform_3, window_bounds = array<i64: 1, 32>}, {pipeline_mode = #tpu.pipeline_mode<synchronous>, transform_indices = @transform_4, window_bounds = array<i64: 8, 32>}, {pipeline_mode = #tpu.pipeline_mode<synchronous>, transform_indices = @transform_5, window_bounds = array<i64: 3, 32, 96>}, {pipeline_mode = #tpu.pipeline_mode<synchronous>, transform_indices = @transform_6, window_bounds = array<i64: 3, 1, 96>}, {pipeline_mode = #tpu.pipeline_mode<synchronous>, transform_indices = @transform_7, window_bounds = array<i64: 32, 32>}, {pipeline_mode = #tpu.pipeline_mode<synchronous>, transform_indices = @transform_8, window_bounds = array<i64: 1, 32>}, {pipeline_mode = #tpu.pipeline_mode<synchronous>, transform_indices = @transform_9, window_bounds = array<i64: 34, 32>}, {pipeline_mode = #tpu.pipeline_mode<synchronous>, transform_indices = @transform_10, window_bounds = array<i64: 1, 32>}, {pipeline_mode = #tpu.pipeline_mode<synchronous>, transform_indices = @transform_11, window_bounds = array<i64: 2, 32, 64>}, {pipeline_mode = #tpu.pipeline_mode<synchronous>, transform_indices = @transform_12, window_bounds = array<i64: 2, 1, 64>}, {pipeline_mode = #tpu.pipeline_mode<synchronous>, transform_indices = @transform_13, window_bounds = array<i64: 4, 32, 32>}, {pipeline_mode = #tpu.pipeline_mode<synchronous>, transform_indices = @transform_14, window_bounds = array<i64: 4, 1, 32>}, {pipeline_mode = #tpu.pipeline_mode<synchronous>, transform_indices = @transform_15, window_bounds = array<i64: 2, 32, 128>}, {pipeline_mode = #tpu.pipeline_mode<synchronous>, transform_indices = @transform_16, window_bounds = array<i64: 2, 1, 128>}, {pipeline_mode = #tpu.pipeline_mode<synchronous>, transform_indices = @transform_17, window_bounds = array<i64: 2, 128, 32>}, {pipeline_mode = #tpu.pipeline_mode<synchronous>, transform_indices = @transform_18, window_bounds = array<i64: 2, 1, 32>}, {pipeline_mode = #tpu.pipeline_mode<synchronous>, transform_indices = @transform_19, window_bounds = array<i64: 32, 128>}, {pipeline_mode = #tpu.pipeline_mode<synchronous>, transform_indices = @transform_20, window_bounds = array<i64: 1, 128>}, {pipeline_mode = #tpu.pipeline_mode<synchronous>, transform_indices = @transform_21, window_bounds = array<i64: 128, 128>}, {pipeline_mode = #tpu.pipeline_mode<synchronous>, transform_indices = @transform_22, window_bounds = array<i64: 1, 128>}, {transform_indices = @transform_23, window_bounds = array<i64: 1, 1, 128>}]} {
    %c0 = arith.constant 0 : index
    %c0_0 = arith.constant 0 : index
    %c0_1 = arith.constant 0 : index
    %0 = vector.load %arg2[%c0, %c0_0, %c0_1] : memref<1x8x768xf32, #tpu.memory_space<vmem>>, vector<1x8x768xf32>
    %1 = vector.shape_cast %0 : vector<1x8x768xf32> to vector<8x768xf32>
    %c0_2 = arith.constant 0 : index
    %c0_3 = arith.constant 0 : index
    %2 = vector.load %arg3[%c0_2, %c0_3] : memref<768x32xbf16, #tpu.memory_space<vmem>>, vector<768x32xbf16>
    %3 = arith.truncf %1 : vector<8x768xf32> to vector<8x768xbf16>
    %cst = arith.constant dense<0.000000e+00> : vector<8x32xf32>
    %4 = tpu.matmul %3, %2, %cst {dimension_numbers = #tpu.dot_dimension_numbers<[1], [0], [0], [1], [0, 0, 1, 1], [], []>} : vector<8x768xbf16>, vector<768x32xbf16>, vector<8x32xf32> -> vector<8x32xf32>
    %c0_4 = arith.constant 0 : index
    %c0_5 = arith.constant 0 : index
    %5 = vector.load %arg4[%c0_4, %c0_5] : memref<1x32xf32, #tpu.memory_space<vmem>>, vector<1x32xf32>
    %6 = vector.broadcast %5 : vector<1x32xf32> to vector<8x32xf32>
    %7 = arith.addf %4, %6 : vector<8x32xf32>
    %c0_6 = arith.constant 0 : index
    %c0_7 = arith.constant 0 : index
    %8 = vector.load %arg5[%c0_6, %c0_7] : memref<8x32xf32, #tpu.memory_space<vmem>>, vector<8x32xf32>
    %c0_8 = arith.constant 0 : index
    %c0_9 = arith.constant 0 : index
    %9 = vector.load %arg8[%c0_8, %c0_9] : memref<32x32xbf16, #tpu.memory_space<vmem>>, vector<32x32xbf16>
    %10 = arith.truncf %8 : vector<8x32xf32> to vector<8x32xbf16>
    %cst_10 = arith.constant dense<0.000000e+00> : vector<8x32xf32>
    %11 = tpu.matmul %10, %9, %cst_10 {dimension_numbers = #tpu.dot_dimension_numbers<[1], [0], [0], [1], [0, 0, 1, 1], [], []>} : vector<8x32xbf16>, vector<32x32xbf16>, vector<8x32xf32> -> vector<8x32xf32>
    %c0_11 = arith.constant 0 : index
    %c0_12 = arith.constant 0 : index
    %12 = vector.load %arg9[%c0_11, %c0_12] : memref<1x32xf32, #tpu.memory_space<vmem>>, vector<1x32xf32>
    %13 = vector.broadcast %12 : vector<1x32xf32> to vector<8x32xf32>
    %14 = arith.addf %11, %13 : vector<8x32xf32>
    %c0_13 = arith.constant 0 : index
    %c0_14 = arith.constant 0 : index
    %c0_15 = arith.constant 0 : index
    %15 = vector.load %arg12[%c0_13, %c0_14, %c0_15] : memref<2x32x64xbf16, #tpu.memory_space<vmem>>, vector<1x32x64xbf16>
    %16 = vector.shape_cast %15 : vector<1x32x64xbf16> to vector<32x64xbf16>
    %17 = arith.truncf %7 : vector<8x32xf32> to vector<8x32xbf16>
    %cst_16 = arith.constant dense<0.000000e+00> : vector<8x64xf32>
    %18 = tpu.matmul %17, %16, %cst_16 {dimension_numbers = #tpu.dot_dimension_numbers<[1], [0], [0], [1], [0, 0, 1, 1], [], []>} : vector<8x32xbf16>, vector<32x64xbf16>, vector<8x64xf32> -> vector<8x64xf32>
    %c0_17 = arith.constant 0 : index
    %c0_18 = arith.constant 0 : index
    %c0_19 = arith.constant 0 : index
    %19 = vector.load %arg13[%c0_17, %c0_18, %c0_19] : memref<2x1x64xf32, #tpu.memory_space<vmem>>, vector<1x1x64xf32>
    %20 = vector.shape_cast %19 : vector<1x1x64xf32> to vector<1x64xf32>
    %21 = vector.broadcast %20 : vector<1x64xf32> to vector<8x64xf32>
    %22 = arith.addf %18, %21 : vector<8x64xf32>
    %23 = vector.extract_strided_slice %22 {offsets = [0, 0], sizes = [8, 32], strides = [1, 1]} : vector<8x64xf32> to vector<8x32xf32>
    %24 = vector.extract_strided_slice %22 {offsets = [0, 32], sizes = [8, 32], strides = [1, 1]} : vector<8x64xf32> to vector<8x32xf32>
    %25 = vector.shape_cast %14 : vector<8x32xf32> to vector<1x8x4x8xf32>
    %26 = vector.shape_cast %25 : vector<1x8x4x8xf32> to vector<8x4x8xf32>
    %27 = tpu.transpose %26, [1, 0, 2] : vector<8x4x8xf32> -> vector<4x8x8xf32>
    %28 = arith.truncf %27 : vector<4x8x8xf32> to vector<4x8x8xbf16>
    %29 = vector.shape_cast %23 : vector<8x32xf32> to vector<1x8x4x8xf32>
    %30 = vector.shape_cast %29 : vector<1x8x4x8xf32> to vector<8x4x8xf32>
    %31 = tpu.transpose %30, [1, 0, 2] : vector<8x4x8xf32> -> vector<4x8x8xf32>
    %32 = arith.truncf %31 : vector<4x8x8xf32> to vector<4x8x8xbf16>
    %33 = vector.shape_cast %24 : vector<8x32xf32> to vector<1x8x4x8xf32>
    %34 = vector.shape_cast %33 : vector<1x8x4x8xf32> to vector<8x4x8xf32>
    %35 = tpu.transpose %34, [1, 0, 2] : vector<8x4x8xf32> -> vector<4x8x8xf32>
    %36 = arith.truncf %35 : vector<4x8x8xf32> to vector<4x8x8xbf16>
    "tpu.trace_start"() <{level = 10 : i32, message = "gqd,gkd->gqk"}> : () -> ()
    %cst_20 = arith.constant dense<0.000000e+00> : vector<4x8x8xf32>
    %37 = tpu.matmul %28, %32, %cst_20 {dimension_numbers = #tpu.dot_dimension_numbers<[2], [2], [1], [1], [0, 0, 0, 1, 1, 1], [0], [0]>} : vector<4x8x8xbf16>, vector<4x8x8xbf16>, vector<4x8x8xf32> -> vector<4x8x8xf32>
    "tpu.trace_stop"() : () -> ()
    %cst_21 = arith.constant 0.353553385 : f32
    %38 = vector.broadcast %cst_21 : f32 to vector<4x8x8xf32>
    %39 = arith.mulf %37, %38 : vector<4x8x8xf32>
    %cst_22 = arith.constant dense<0xFF800000> : vector<4x8xf32>
    %40 = vector.multi_reduction <maximumf>, %39, %cst_22 [2] : vector<4x8x8xf32> to vector<4x8xf32>
    %41 = vector.shape_cast %40 : vector<4x8xf32> to vector<4x8x1xf32>
    %42 = vector.broadcast %41 : vector<4x8x1xf32> to vector<4x8x8xf32>
    %43 = arith.subf %39, %42 : vector<4x8x8xf32>
    %44 = math.exp %43 : vector<4x8x8xf32>
    %cst_23 = arith.constant dense<0.000000e+00> : vector<4x8xf32>
    %45 = vector.multi_reduction <add>, %44, %cst_23 [2] : vector<4x8x8xf32> to vector<4x8xf32>
    %46 = vector.shape_cast %45 : vector<4x8xf32> to vector<4x8x1xf32>
    %47 = tpu.reciprocal %46 {approx = true} : vector<4x8x1xf32> -> vector<4x8x1xf32>
    %48 = vector.broadcast %47 : vector<4x8x1xf32> to vector<4x8x8xf32>
    %49 = arith.mulf %44, %48 : vector<4x8x8xf32>
    %50 = arith.truncf %49 : vector<4x8x8xf32> to vector<4x8x8xbf16>
    "tpu.trace_start"() <{level = 10 : i32, message = "gqk,gkd->gqd"}> : () -> ()
    %cst_24 = arith.constant dense<0.000000e+00> : vector<4x8x8xf32>
    %51 = tpu.matmul %50, %36, %cst_24 {dimension_numbers = #tpu.dot_dimension_numbers<[2], [1], [1], [2], [0, 0, 0, 1, 1, 2], [0], [0]>} : vector<4x8x8xbf16>, vector<4x8x8xbf16>, vector<4x8x8xf32> -> vector<4x8x8xf32>
    "tpu.trace_stop"() : () -> ()
    %52 = tpu.transpose %51, [1, 0, 2] : vector<4x8x8xf32> -> vector<8x4x8xf32>
    %53 = vector.shape_cast %52 : vector<8x4x8xf32> to vector<8x32xf32>
    %c0_25 = arith.constant 0 : index
    %c0_26 = arith.constant 0 : index
    %c0_27 = arith.constant 0 : index
    %54 = vector.load %arg14[%c0_25, %c0_26, %c0_27] : memref<4x32x32xbf16, #tpu.memory_space<vmem>>, vector<1x32x32xbf16>
    %55 = vector.shape_cast %54 : vector<1x32x32xbf16> to vector<32x32xbf16>
    %56 = arith.truncf %53 : vector<8x32xf32> to vector<8x32xbf16>
    %cst_28 = arith.constant dense<0.000000e+00> : vector<8x32xf32>
    %57 = tpu.matmul %56, %55, %cst_28 {dimension_numbers = #tpu.dot_dimension_numbers<[1], [0], [0], [1], [0, 0, 1, 1], [], []>} : vector<8x32xbf16>, vector<32x32xbf16>, vector<8x32xf32> -> vector<8x32xf32>
    %c0_29 = arith.constant 0 : index
    %c0_30 = arith.constant 0 : index
    %c0_31 = arith.constant 0 : index
    %58 = vector.load %arg15[%c0_29, %c0_30, %c0_31] : memref<4x1x32xf32, #tpu.memory_space<vmem>>, vector<1x1x32xf32>
    %59 = vector.shape_cast %58 : vector<1x1x32xf32> to vector<1x32xf32>
    %60 = vector.broadcast %59 : vector<1x32xf32> to vector<8x32xf32>
    %61 = arith.addf %57, %60 : vector<8x32xf32>
    %62 = arith.addf %8, %61 : vector<8x32xf32>
    %c0_32 = arith.constant 0 : index
    %c0_33 = arith.constant 0 : index
    %c0_34 = arith.constant 0 : index
    %63 = vector.load %arg6[%c0_32, %c0_33, %c0_34] : memref<3x32x96xbf16, #tpu.memory_space<vmem>>, vector<1x32x96xbf16>
    %64 = vector.shape_cast %63 : vector<1x32x96xbf16> to vector<32x96xbf16>
    %65 = arith.truncf %62 : vector<8x32xf32> to vector<8x32xbf16>
    %cst_35 = arith.constant dense<0.000000e+00> : vector<8x96xf32>
    %66 = tpu.matmul %65, %64, %cst_35 {dimension_numbers = #tpu.dot_dimension_numbers<[1], [0], [0], [1], [0, 0, 1, 1], [], []>} : vector<8x32xbf16>, vector<32x96xbf16>, vector<8x96xf32> -> vector<8x96xf32>
    %c0_36 = arith.constant 0 : index
    %c0_37 = arith.constant 0 : index
    %c0_38 = arith.constant 0 : index
    %67 = vector.load %arg7[%c0_36, %c0_37, %c0_38] : memref<3x1x96xf32, #tpu.memory_space<vmem>>, vector<1x1x96xf32>
    %68 = vector.shape_cast %67 : vector<1x1x96xf32> to vector<1x96xf32>
    %69 = vector.broadcast %68 : vector<1x96xf32> to vector<8x96xf32>
    %70 = arith.addf %66, %69 : vector<8x96xf32>
    %71 = vector.extract_strided_slice %70 {offsets = [0, 0], sizes = [8, 32], strides = [1, 1]} : vector<8x96xf32> to vector<8x32xf32>
    %72 = vector.extract_strided_slice %70 {offsets = [0, 32], sizes = [8, 32], strides = [1, 1]} : vector<8x96xf32> to vector<8x32xf32>
    %73 = vector.extract_strided_slice %70 {offsets = [0, 64], sizes = [8, 32], strides = [1, 1]} : vector<8x96xf32> to vector<8x32xf32>
    %74 = vector.shape_cast %71 : vector<8x32xf32> to vector<1x8x4x8xf32>
    %75 = vector.shape_cast %74 : vector<1x8x4x8xf32> to vector<8x4x8xf32>
    %76 = tpu.transpose %75, [1, 0, 2] : vector<8x4x8xf32> -> vector<4x8x8xf32>
    %77 = arith.truncf %76 : vector<4x8x8xf32> to vector<4x8x8xbf16>
    %78 = vector.shape_cast %72 : vector<8x32xf32> to vector<1x8x4x8xf32>
    %79 = vector.shape_cast %78 : vector<1x8x4x8xf32> to vector<8x4x8xf32>
    %80 = tpu.transpose %79, [1, 0, 2] : vector<8x4x8xf32> -> vector<4x8x8xf32>
    %81 = arith.truncf %80 : vector<4x8x8xf32> to vector<4x8x8xbf16>
    %82 = vector.shape_cast %73 : vector<8x32xf32> to vector<1x8x4x8xf32>
    %83 = vector.shape_cast %82 : vector<1x8x4x8xf32> to vector<8x4x8xf32>
    %84 = tpu.transpose %83, [1, 0, 2] : vector<8x4x8xf32> -> vector<4x8x8xf32>
    %85 = arith.truncf %84 : vector<4x8x8xf32> to vector<4x8x8xbf16>
    "tpu.trace_start"() <{level = 10 : i32, message = "gqd,gkd->gqk"}> : () -> ()
    %cst_39 = arith.constant dense<0.000000e+00> : vector<4x8x8xf32>
    %86 = tpu.matmul %77, %81, %cst_39 {dimension_numbers = #tpu.dot_dimension_numbers<[2], [2], [1], [1], [0, 0, 0, 1, 1, 1], [0], [0]>} : vector<4x8x8xbf16>, vector<4x8x8xbf16>, vector<4x8x8xf32> -> vector<4x8x8xf32>
    "tpu.trace_stop"() : () -> ()
    %cst_40 = arith.constant 0.353553385 : f32
    %87 = vector.broadcast %cst_40 : f32 to vector<4x8x8xf32>
    %88 = arith.mulf %86, %87 : vector<4x8x8xf32>
    %cst_41 = arith.constant dense<0xFF800000> : vector<4x8xf32>
    %89 = vector.multi_reduction <maximumf>, %88, %cst_41 [2] : vector<4x8x8xf32> to vector<4x8xf32>
    %90 = vector.shape_cast %89 : vector<4x8xf32> to vector<4x8x1xf32>
    %91 = vector.broadcast %90 : vector<4x8x1xf32> to vector<4x8x8xf32>
    %92 = arith.subf %88, %91 : vector<4x8x8xf32>
    %93 = math.exp %92 : vector<4x8x8xf32>
    %cst_42 = arith.constant dense<0.000000e+00> : vector<4x8xf32>
    %94 = vector.multi_reduction <add>, %93, %cst_42 [2] : vector<4x8x8xf32> to vector<4x8xf32>
    %95 = vector.shape_cast %94 : vector<4x8xf32> to vector<4x8x1xf32>
    %96 = tpu.reciprocal %95 {approx = true} : vector<4x8x1xf32> -> vector<4x8x1xf32>
    %97 = vector.broadcast %96 : vector<4x8x1xf32> to vector<4x8x8xf32>
    %98 = arith.mulf %93, %97 : vector<4x8x8xf32>
    %99 = arith.truncf %98 : vector<4x8x8xf32> to vector<4x8x8xbf16>
    "tpu.trace_start"() <{level = 10 : i32, message = "gqk,gkd->gqd"}> : () -> ()
    %cst_43 = arith.constant dense<0.000000e+00> : vector<4x8x8xf32>
    %100 = tpu.matmul %99, %85, %cst_43 {dimension_numbers = #tpu.dot_dimension_numbers<[2], [1], [1], [2], [0, 0, 0, 1, 1, 2], [0], [0]>} : vector<4x8x8xbf16>, vector<4x8x8xbf16>, vector<4x8x8xf32> -> vector<4x8x8xf32>
    "tpu.trace_stop"() : () -> ()
    %101 = tpu.transpose %100, [1, 0, 2] : vector<4x8x8xf32> -> vector<8x4x8xf32>
    %102 = vector.shape_cast %101 : vector<8x4x8xf32> to vector<8x32xf32>
    %c1 = arith.constant 1 : index
    %c0_44 = arith.constant 0 : index
    %c0_45 = arith.constant 0 : index
    %103 = vector.load %arg14[%c1, %c0_44, %c0_45] : memref<4x32x32xbf16, #tpu.memory_space<vmem>>, vector<1x32x32xbf16>
    %104 = vector.shape_cast %103 : vector<1x32x32xbf16> to vector<32x32xbf16>
    %105 = arith.truncf %102 : vector<8x32xf32> to vector<8x32xbf16>
    %cst_46 = arith.constant dense<0.000000e+00> : vector<8x32xf32>
    %106 = tpu.matmul %105, %104, %cst_46 {dimension_numbers = #tpu.dot_dimension_numbers<[1], [0], [0], [1], [0, 0, 1, 1], [], []>} : vector<8x32xbf16>, vector<32x32xbf16>, vector<8x32xf32> -> vector<8x32xf32>
    %c1_47 = arith.constant 1 : index
    %c0_48 = arith.constant 0 : index
    %c0_49 = arith.constant 0 : index
    %107 = vector.load %arg15[%c1_47, %c0_48, %c0_49] : memref<4x1x32xf32, #tpu.memory_space<vmem>>, vector<1x1x32xf32>
    %108 = vector.shape_cast %107 : vector<1x1x32xf32> to vector<1x32xf32>
    %109 = vector.broadcast %108 : vector<1x32xf32> to vector<8x32xf32>
    %110 = arith.addf %106, %109 : vector<8x32xf32>
    %111 = arith.addf %62, %110 : vector<8x32xf32>
    %c0_50 = arith.constant 0 : index
    %c0_51 = arith.constant 0 : index
    %c0_52 = arith.constant 0 : index
    %112 = vector.load %arg16[%c0_50, %c0_51, %c0_52] : memref<2x32x128xbf16, #tpu.memory_space<vmem>>, vector<1x32x128xbf16>
    %113 = vector.shape_cast %112 : vector<1x32x128xbf16> to vector<32x128xbf16>
    %114 = arith.truncf %111 : vector<8x32xf32> to vector<8x32xbf16>
    %cst_53 = arith.constant dense<0.000000e+00> : vector<8x128xf32>
    %115 = tpu.matmul %114, %113, %cst_53 {dimension_numbers = #tpu.dot_dimension_numbers<[1], [0], [0], [1], [0, 0, 1, 1], [], []>} : vector<8x32xbf16>, vector<32x128xbf16>, vector<8x128xf32> -> vector<8x128xf32>
    %c0_54 = arith.constant 0 : index
    %c0_55 = arith.constant 0 : index
    %c0_56 = arith.constant 0 : index
    %116 = vector.load %arg17[%c0_54, %c0_55, %c0_56] : memref<2x1x128xf32, #tpu.memory_space<vmem>>, vector<1x1x128xf32>
    %117 = vector.shape_cast %116 : vector<1x1x128xf32> to vector<1x128xf32>
    %118 = vector.broadcast %117 : vector<1x128xf32> to vector<8x128xf32>
    %119 = arith.addf %115, %118 : vector<8x128xf32>
    %120 = arith.mulf %119, %119 : vector<8x128xf32>
    %121 = arith.mulf %119, %120 : vector<8x128xf32>
    %cst_57 = arith.constant 4.471500e-02 : f32
    %122 = vector.broadcast %cst_57 : f32 to vector<8x128xf32>
    %123 = arith.mulf %122, %121 : vector<8x128xf32>
    %124 = arith.addf %119, %123 : vector<8x128xf32>
    %cst_58 = arith.constant 0.797884583 : f32
    %125 = vector.broadcast %cst_58 : f32 to vector<8x128xf32>
    %126 = arith.mulf %125, %124 : vector<8x128xf32>
    %127 = math.tanh %126 : vector<8x128xf32>
    %cst_59 = arith.constant 1.000000e+00 : f32
    %128 = vector.broadcast %cst_59 : f32 to vector<8x128xf32>
    %129 = arith.addf %128, %127 : vector<8x128xf32>
    %cst_60 = arith.constant 5.000000e-01 : f32
    %130 = vector.broadcast %cst_60 : f32 to vector<8x128xf32>
    %131 = arith.mulf %130, %129 : vector<8x128xf32>
    %132 = arith.mulf %119, %131 : vector<8x128xf32>
    %c0_61 = arith.constant 0 : index
    %c0_62 = arith.constant 0 : index
    %c0_63 = arith.constant 0 : index
    %133 = vector.load %arg18[%c0_61, %c0_62, %c0_63] : memref<2x128x32xbf16, #tpu.memory_space<vmem>>, vector<1x128x32xbf16>
    %134 = vector.shape_cast %133 : vector<1x128x32xbf16> to vector<128x32xbf16>
    %135 = arith.truncf %132 : vector<8x128xf32> to vector<8x128xbf16>
    %cst_64 = arith.constant dense<0.000000e+00> : vector<8x32xf32>
    %136 = tpu.matmul %135, %134, %cst_64 {dimension_numbers = #tpu.dot_dimension_numbers<[1], [0], [0], [1], [0, 0, 1, 1], [], []>} : vector<8x128xbf16>, vector<128x32xbf16>, vector<8x32xf32> -> vector<8x32xf32>
    %c0_65 = arith.constant 0 : index
    %c0_66 = arith.constant 0 : index
    %c0_67 = arith.constant 0 : index
    %137 = vector.load %arg19[%c0_65, %c0_66, %c0_67] : memref<2x1x32xf32, #tpu.memory_space<vmem>>, vector<1x1x32xf32>
    %138 = vector.shape_cast %137 : vector<1x1x32xf32> to vector<1x32xf32>
    %139 = vector.broadcast %138 : vector<1x32xf32> to vector<8x32xf32>
    %140 = arith.addf %136, %139 : vector<8x32xf32>
    %141 = arith.addf %111, %140 : vector<8x32xf32>
    %c1_68 = arith.constant 1 : index
    %c0_69 = arith.constant 0 : index
    %c0_70 = arith.constant 0 : index
    %142 = vector.load %arg6[%c1_68, %c0_69, %c0_70] : memref<3x32x96xbf16, #tpu.memory_space<vmem>>, vector<1x32x96xbf16>
    %143 = vector.shape_cast %142 : vector<1x32x96xbf16> to vector<32x96xbf16>
    %144 = arith.truncf %141 : vector<8x32xf32> to vector<8x32xbf16>
    %cst_71 = arith.constant dense<0.000000e+00> : vector<8x96xf32>
    %145 = tpu.matmul %144, %143, %cst_71 {dimension_numbers = #tpu.dot_dimension_numbers<[1], [0], [0], [1], [0, 0, 1, 1], [], []>} : vector<8x32xbf16>, vector<32x96xbf16>, vector<8x96xf32> -> vector<8x96xf32>
    %c1_72 = arith.constant 1 : index
    %c0_73 = arith.constant 0 : index
    %c0_74 = arith.constant 0 : index
    %146 = vector.load %arg7[%c1_72, %c0_73, %c0_74] : memref<3x1x96xf32, #tpu.memory_space<vmem>>, vector<1x1x96xf32>
    %147 = vector.shape_cast %146 : vector<1x1x96xf32> to vector<1x96xf32>
    %148 = vector.broadcast %147 : vector<1x96xf32> to vector<8x96xf32>
    %149 = arith.addf %145, %148 : vector<8x96xf32>
    %150 = vector.extract_strided_slice %149 {offsets = [0, 0], sizes = [8, 32], strides = [1, 1]} : vector<8x96xf32> to vector<8x32xf32>
    %151 = vector.extract_strided_slice %149 {offsets = [0, 32], sizes = [8, 32], strides = [1, 1]} : vector<8x96xf32> to vector<8x32xf32>
    %152 = vector.extract_strided_slice %149 {offsets = [0, 64], sizes = [8, 32], strides = [1, 1]} : vector<8x96xf32> to vector<8x32xf32>
    %153 = vector.shape_cast %150 : vector<8x32xf32> to vector<1x8x4x8xf32>
    %154 = vector.shape_cast %153 : vector<1x8x4x8xf32> to vector<8x4x8xf32>
    %155 = tpu.transpose %154, [1, 0, 2] : vector<8x4x8xf32> -> vector<4x8x8xf32>
    %156 = arith.truncf %155 : vector<4x8x8xf32> to vector<4x8x8xbf16>
    %157 = vector.shape_cast %151 : vector<8x32xf32> to vector<1x8x4x8xf32>
    %158 = vector.shape_cast %157 : vector<1x8x4x8xf32> to vector<8x4x8xf32>
    %159 = tpu.transpose %158, [1, 0, 2] : vector<8x4x8xf32> -> vector<4x8x8xf32>
    %160 = arith.truncf %159 : vector<4x8x8xf32> to vector<4x8x8xbf16>
    %161 = vector.shape_cast %152 : vector<8x32xf32> to vector<1x8x4x8xf32>
    %162 = vector.shape_cast %161 : vector<1x8x4x8xf32> to vector<8x4x8xf32>
    %163 = tpu.transpose %162, [1, 0, 2] : vector<8x4x8xf32> -> vector<4x8x8xf32>
    %164 = arith.truncf %163 : vector<4x8x8xf32> to vector<4x8x8xbf16>
    "tpu.trace_start"() <{level = 10 : i32, message = "gqd,gkd->gqk"}> : () -> ()
    %cst_75 = arith.constant dense<0.000000e+00> : vector<4x8x8xf32>
    %165 = tpu.matmul %156, %160, %cst_75 {dimension_numbers = #tpu.dot_dimension_numbers<[2], [2], [1], [1], [0, 0, 0, 1, 1, 1], [0], [0]>} : vector<4x8x8xbf16>, vector<4x8x8xbf16>, vector<4x8x8xf32> -> vector<4x8x8xf32>
    "tpu.trace_stop"() : () -> ()
    %cst_76 = arith.constant 0.353553385 : f32
    %166 = vector.broadcast %cst_76 : f32 to vector<4x8x8xf32>
    %167 = arith.mulf %165, %166 : vector<4x8x8xf32>
    %cst_77 = arith.constant dense<0xFF800000> : vector<4x8xf32>
    %168 = vector.multi_reduction <maximumf>, %167, %cst_77 [2] : vector<4x8x8xf32> to vector<4x8xf32>
    %169 = vector.shape_cast %168 : vector<4x8xf32> to vector<4x8x1xf32>
    %170 = vector.broadcast %169 : vector<4x8x1xf32> to vector<4x8x8xf32>
    %171 = arith.subf %167, %170 : vector<4x8x8xf32>
    %172 = math.exp %171 : vector<4x8x8xf32>
    %cst_78 = arith.constant dense<0.000000e+00> : vector<4x8xf32>
    %173 = vector.multi_reduction <add>, %172, %cst_78 [2] : vector<4x8x8xf32> to vector<4x8xf32>
    %174 = vector.shape_cast %173 : vector<4x8xf32> to vector<4x8x1xf32>
    %175 = tpu.reciprocal %174 {approx = true} : vector<4x8x1xf32> -> vector<4x8x1xf32>
    %176 = vector.broadcast %175 : vector<4x8x1xf32> to vector<4x8x8xf32>
    %177 = arith.mulf %172, %176 : vector<4x8x8xf32>
    %178 = arith.truncf %177 : vector<4x8x8xf32> to vector<4x8x8xbf16>
    "tpu.trace_start"() <{level = 10 : i32, message = "gqk,gkd->gqd"}> : () -> ()
    %cst_79 = arith.constant dense<0.000000e+00> : vector<4x8x8xf32>
    %179 = tpu.matmul %178, %164, %cst_79 {dimension_numbers = #tpu.dot_dimension_numbers<[2], [1], [1], [2], [0, 0, 0, 1, 1, 2], [0], [0]>} : vector<4x8x8xbf16>, vector<4x8x8xbf16>, vector<4x8x8xf32> -> vector<4x8x8xf32>
    "tpu.trace_stop"() : () -> ()
    %180 = tpu.transpose %179, [1, 0, 2] : vector<4x8x8xf32> -> vector<8x4x8xf32>
    %181 = vector.shape_cast %180 : vector<8x4x8xf32> to vector<8x32xf32>
    %c2 = arith.constant 2 : index
    %c0_80 = arith.constant 0 : index
    %c0_81 = arith.constant 0 : index
    %182 = vector.load %arg14[%c2, %c0_80, %c0_81] : memref<4x32x32xbf16, #tpu.memory_space<vmem>>, vector<1x32x32xbf16>
    %183 = vector.shape_cast %182 : vector<1x32x32xbf16> to vector<32x32xbf16>
    %184 = arith.truncf %181 : vector<8x32xf32> to vector<8x32xbf16>
    %cst_82 = arith.constant dense<0.000000e+00> : vector<8x32xf32>
    %185 = tpu.matmul %184, %183, %cst_82 {dimension_numbers = #tpu.dot_dimension_numbers<[1], [0], [0], [1], [0, 0, 1, 1], [], []>} : vector<8x32xbf16>, vector<32x32xbf16>, vector<8x32xf32> -> vector<8x32xf32>
    %c2_83 = arith.constant 2 : index
    %c0_84 = arith.constant 0 : index
    %c0_85 = arith.constant 0 : index
    %186 = vector.load %arg15[%c2_83, %c0_84, %c0_85] : memref<4x1x32xf32, #tpu.memory_space<vmem>>, vector<1x1x32xf32>
    %187 = vector.shape_cast %186 : vector<1x1x32xf32> to vector<1x32xf32>
    %188 = vector.broadcast %187 : vector<1x32xf32> to vector<8x32xf32>
    %189 = arith.addf %185, %188 : vector<8x32xf32>
    %190 = arith.addf %141, %189 : vector<8x32xf32>
    %c1_86 = arith.constant 1 : index
    %c0_87 = arith.constant 0 : index
    %c0_88 = arith.constant 0 : index
    %191 = vector.load %arg16[%c1_86, %c0_87, %c0_88] : memref<2x32x128xbf16, #tpu.memory_space<vmem>>, vector<1x32x128xbf16>
    %192 = vector.shape_cast %191 : vector<1x32x128xbf16> to vector<32x128xbf16>
    %193 = arith.truncf %190 : vector<8x32xf32> to vector<8x32xbf16>
    %cst_89 = arith.constant dense<0.000000e+00> : vector<8x128xf32>
    %194 = tpu.matmul %193, %192, %cst_89 {dimension_numbers = #tpu.dot_dimension_numbers<[1], [0], [0], [1], [0, 0, 1, 1], [], []>} : vector<8x32xbf16>, vector<32x128xbf16>, vector<8x128xf32> -> vector<8x128xf32>
    %c1_90 = arith.constant 1 : index
    %c0_91 = arith.constant 0 : index
    %c0_92 = arith.constant 0 : index
    %195 = vector.load %arg17[%c1_90, %c0_91, %c0_92] : memref<2x1x128xf32, #tpu.memory_space<vmem>>, vector<1x1x128xf32>
    %196 = vector.shape_cast %195 : vector<1x1x128xf32> to vector<1x128xf32>
    %197 = vector.broadcast %196 : vector<1x128xf32> to vector<8x128xf32>
    %198 = arith.addf %194, %197 : vector<8x128xf32>
    %199 = arith.mulf %198, %198 : vector<8x128xf32>
    %200 = arith.mulf %198, %199 : vector<8x128xf32>
    %cst_93 = arith.constant 4.471500e-02 : f32
    %201 = vector.broadcast %cst_93 : f32 to vector<8x128xf32>
    %202 = arith.mulf %201, %200 : vector<8x128xf32>
    %203 = arith.addf %198, %202 : vector<8x128xf32>
    %cst_94 = arith.constant 0.797884583 : f32
    %204 = vector.broadcast %cst_94 : f32 to vector<8x128xf32>
    %205 = arith.mulf %204, %203 : vector<8x128xf32>
    %206 = math.tanh %205 : vector<8x128xf32>
    %cst_95 = arith.constant 1.000000e+00 : f32
    %207 = vector.broadcast %cst_95 : f32 to vector<8x128xf32>
    %208 = arith.addf %207, %206 : vector<8x128xf32>
    %cst_96 = arith.constant 5.000000e-01 : f32
    %209 = vector.broadcast %cst_96 : f32 to vector<8x128xf32>
    %210 = arith.mulf %209, %208 : vector<8x128xf32>
    %211 = arith.mulf %198, %210 : vector<8x128xf32>
    %c1_97 = arith.constant 1 : index
    %c0_98 = arith.constant 0 : index
    %c0_99 = arith.constant 0 : index
    %212 = vector.load %arg18[%c1_97, %c0_98, %c0_99] : memref<2x128x32xbf16, #tpu.memory_space<vmem>>, vector<1x128x32xbf16>
    %213 = vector.shape_cast %212 : vector<1x128x32xbf16> to vector<128x32xbf16>
    %214 = arith.truncf %211 : vector<8x128xf32> to vector<8x128xbf16>
    %cst_100 = arith.constant dense<0.000000e+00> : vector<8x32xf32>
    %215 = tpu.matmul %214, %213, %cst_100 {dimension_numbers = #tpu.dot_dimension_numbers<[1], [0], [0], [1], [0, 0, 1, 1], [], []>} : vector<8x128xbf16>, vector<128x32xbf16>, vector<8x32xf32> -> vector<8x32xf32>
    %c1_101 = arith.constant 1 : index
    %c0_102 = arith.constant 0 : index
    %c0_103 = arith.constant 0 : index
    %216 = vector.load %arg19[%c1_101, %c0_102, %c0_103] : memref<2x1x32xf32, #tpu.memory_space<vmem>>, vector<1x1x32xf32>
    %217 = vector.shape_cast %216 : vector<1x1x32xf32> to vector<1x32xf32>
    %218 = vector.broadcast %217 : vector<1x32xf32> to vector<8x32xf32>
    %219 = arith.addf %215, %218 : vector<8x32xf32>
    %220 = arith.addf %190, %219 : vector<8x32xf32>
    %c0_104 = arith.constant 0 : index
    %c0_105 = arith.constant 0 : index
    %c0_106 = arith.constant 0 : index
    %221 = vector.load %arg1[%c0_104, %c0_105, %c0_106] : memref<1x8x34xf32, #tpu.memory_space<vmem>>, vector<1x8x34xf32>
    %222 = vector.shape_cast %221 : vector<1x8x34xf32> to vector<8x34xf32>
    %c0_107 = arith.constant 0 : index
    %c0_108 = arith.constant 0 : index
    %223 = vector.load %arg10[%c0_107, %c0_108] : memref<34x32xbf16, #tpu.memory_space<vmem>>, vector<34x32xbf16>
    %224 = arith.truncf %222 : vector<8x34xf32> to vector<8x34xbf16>
    %cst_109 = arith.constant dense<0.000000e+00> : vector<8x32xf32>
    %225 = tpu.matmul %224, %223, %cst_109 {dimension_numbers = #tpu.dot_dimension_numbers<[1], [0], [0], [1], [0, 0, 1, 1], [], []>} : vector<8x34xbf16>, vector<34x32xbf16>, vector<8x32xf32> -> vector<8x32xf32>
    %c0_110 = arith.constant 0 : index
    %c0_111 = arith.constant 0 : index
    %226 = vector.load %arg11[%c0_110, %c0_111] : memref<1x32xf32, #tpu.memory_space<vmem>>, vector<1x32xf32>
    %227 = vector.broadcast %226 : vector<1x32xf32> to vector<8x32xf32>
    %228 = arith.addf %225, %227 : vector<8x32xf32>
    %c1_112 = arith.constant 1 : index
    %c0_113 = arith.constant 0 : index
    %c0_114 = arith.constant 0 : index
    %229 = vector.load %arg12[%c1_112, %c0_113, %c0_114] : memref<2x32x64xbf16, #tpu.memory_space<vmem>>, vector<1x32x64xbf16>
    %230 = vector.shape_cast %229 : vector<1x32x64xbf16> to vector<32x64xbf16>
    %231 = arith.truncf %220 : vector<8x32xf32> to vector<8x32xbf16>
    %cst_115 = arith.constant dense<0.000000e+00> : vector<8x64xf32>
    %232 = tpu.matmul %231, %230, %cst_115 {dimension_numbers = #tpu.dot_dimension_numbers<[1], [0], [0], [1], [0, 0, 1, 1], [], []>} : vector<8x32xbf16>, vector<32x64xbf16>, vector<8x64xf32> -> vector<8x64xf32>
    %c1_116 = arith.constant 1 : index
    %c0_117 = arith.constant 0 : index
    %c0_118 = arith.constant 0 : index
    %233 = vector.load %arg13[%c1_116, %c0_117, %c0_118] : memref<2x1x64xf32, #tpu.memory_space<vmem>>, vector<1x1x64xf32>
    %234 = vector.shape_cast %233 : vector<1x1x64xf32> to vector<1x64xf32>
    %235 = vector.broadcast %234 : vector<1x64xf32> to vector<8x64xf32>
    %236 = arith.addf %232, %235 : vector<8x64xf32>
    %237 = vector.extract_strided_slice %236 {offsets = [0, 0], sizes = [8, 32], strides = [1, 1]} : vector<8x64xf32> to vector<8x32xf32>
    %238 = vector.extract_strided_slice %236 {offsets = [0, 32], sizes = [8, 32], strides = [1, 1]} : vector<8x64xf32> to vector<8x32xf32>
    %239 = vector.shape_cast %228 : vector<8x32xf32> to vector<1x8x4x8xf32>
    %240 = vector.shape_cast %239 : vector<1x8x4x8xf32> to vector<8x4x8xf32>
    %241 = tpu.transpose %240, [1, 0, 2] : vector<8x4x8xf32> -> vector<4x8x8xf32>
    %242 = arith.truncf %241 : vector<4x8x8xf32> to vector<4x8x8xbf16>
    %243 = vector.shape_cast %237 : vector<8x32xf32> to vector<1x8x4x8xf32>
    %244 = vector.shape_cast %243 : vector<1x8x4x8xf32> to vector<8x4x8xf32>
    %245 = tpu.transpose %244, [1, 0, 2] : vector<8x4x8xf32> -> vector<4x8x8xf32>
    %246 = arith.truncf %245 : vector<4x8x8xf32> to vector<4x8x8xbf16>
    %247 = vector.shape_cast %238 : vector<8x32xf32> to vector<1x8x4x8xf32>
    %248 = vector.shape_cast %247 : vector<1x8x4x8xf32> to vector<8x4x8xf32>
    %249 = tpu.transpose %248, [1, 0, 2] : vector<8x4x8xf32> -> vector<4x8x8xf32>
    %250 = arith.truncf %249 : vector<4x8x8xf32> to vector<4x8x8xbf16>
    "tpu.trace_start"() <{level = 10 : i32, message = "gqd,gkd->gqk"}> : () -> ()
    %cst_119 = arith.constant dense<0.000000e+00> : vector<4x8x8xf32>
    %251 = tpu.matmul %242, %246, %cst_119 {dimension_numbers = #tpu.dot_dimension_numbers<[2], [2], [1], [1], [0, 0, 0, 1, 1, 1], [0], [0]>} : vector<4x8x8xbf16>, vector<4x8x8xbf16>, vector<4x8x8xf32> -> vector<4x8x8xf32>
    "tpu.trace_stop"() : () -> ()
    %cst_120 = arith.constant 0.353553385 : f32
    %252 = vector.broadcast %cst_120 : f32 to vector<4x8x8xf32>
    %253 = arith.mulf %251, %252 : vector<4x8x8xf32>
    %cst_121 = arith.constant dense<0xFF800000> : vector<4x8xf32>
    %254 = vector.multi_reduction <maximumf>, %253, %cst_121 [2] : vector<4x8x8xf32> to vector<4x8xf32>
    %255 = vector.shape_cast %254 : vector<4x8xf32> to vector<4x8x1xf32>
    %256 = vector.broadcast %255 : vector<4x8x1xf32> to vector<4x8x8xf32>
    %257 = arith.subf %253, %256 : vector<4x8x8xf32>
    %258 = math.exp %257 : vector<4x8x8xf32>
    %cst_122 = arith.constant dense<0.000000e+00> : vector<4x8xf32>
    %259 = vector.multi_reduction <add>, %258, %cst_122 [2] : vector<4x8x8xf32> to vector<4x8xf32>
    %260 = vector.shape_cast %259 : vector<4x8xf32> to vector<4x8x1xf32>
    %261 = tpu.reciprocal %260 {approx = true} : vector<4x8x1xf32> -> vector<4x8x1xf32>
    %262 = vector.broadcast %261 : vector<4x8x1xf32> to vector<4x8x8xf32>
    %263 = arith.mulf %258, %262 : vector<4x8x8xf32>
    %264 = arith.truncf %263 : vector<4x8x8xf32> to vector<4x8x8xbf16>
    "tpu.trace_start"() <{level = 10 : i32, message = "gqk,gkd->gqd"}> : () -> ()
    %cst_123 = arith.constant dense<0.000000e+00> : vector<4x8x8xf32>
    %265 = tpu.matmul %264, %250, %cst_123 {dimension_numbers = #tpu.dot_dimension_numbers<[2], [1], [1], [2], [0, 0, 0, 1, 1, 2], [0], [0]>} : vector<4x8x8xbf16>, vector<4x8x8xbf16>, vector<4x8x8xf32> -> vector<4x8x8xf32>
    "tpu.trace_stop"() : () -> ()
    %266 = tpu.transpose %265, [1, 0, 2] : vector<4x8x8xf32> -> vector<8x4x8xf32>
    %267 = vector.shape_cast %266 : vector<8x4x8xf32> to vector<8x32xf32>
    %c3 = arith.constant 3 : index
    %c0_124 = arith.constant 0 : index
    %c0_125 = arith.constant 0 : index
    %268 = vector.load %arg14[%c3, %c0_124, %c0_125] : memref<4x32x32xbf16, #tpu.memory_space<vmem>>, vector<1x32x32xbf16>
    %269 = vector.shape_cast %268 : vector<1x32x32xbf16> to vector<32x32xbf16>
    %270 = arith.truncf %267 : vector<8x32xf32> to vector<8x32xbf16>
    %cst_126 = arith.constant dense<0.000000e+00> : vector<8x32xf32>
    %271 = tpu.matmul %270, %269, %cst_126 {dimension_numbers = #tpu.dot_dimension_numbers<[1], [0], [0], [1], [0, 0, 1, 1], [], []>} : vector<8x32xbf16>, vector<32x32xbf16>, vector<8x32xf32> -> vector<8x32xf32>
    %c3_127 = arith.constant 3 : index
    %c0_128 = arith.constant 0 : index
    %c0_129 = arith.constant 0 : index
    %272 = vector.load %arg15[%c3_127, %c0_128, %c0_129] : memref<4x1x32xf32, #tpu.memory_space<vmem>>, vector<1x1x32xf32>
    %273 = vector.shape_cast %272 : vector<1x1x32xf32> to vector<1x32xf32>
    %274 = vector.broadcast %273 : vector<1x32xf32> to vector<8x32xf32>
    %275 = arith.addf %271, %274 : vector<8x32xf32>
    %c2_130 = arith.constant 2 : index
    %c0_131 = arith.constant 0 : index
    %c0_132 = arith.constant 0 : index
    %276 = vector.load %arg6[%c2_130, %c0_131, %c0_132] : memref<3x32x96xbf16, #tpu.memory_space<vmem>>, vector<1x32x96xbf16>
    %277 = vector.shape_cast %276 : vector<1x32x96xbf16> to vector<32x96xbf16>
    %278 = arith.truncf %275 : vector<8x32xf32> to vector<8x32xbf16>
    %cst_133 = arith.constant dense<0.000000e+00> : vector<8x96xf32>
    %279 = tpu.matmul %278, %277, %cst_133 {dimension_numbers = #tpu.dot_dimension_numbers<[1], [0], [0], [1], [0, 0, 1, 1], [], []>} : vector<8x32xbf16>, vector<32x96xbf16>, vector<8x96xf32> -> vector<8x96xf32>
    %c2_134 = arith.constant 2 : index
    %c0_135 = arith.constant 0 : index
    %c0_136 = arith.constant 0 : index
    %280 = vector.load %arg7[%c2_134, %c0_135, %c0_136] : memref<3x1x96xf32, #tpu.memory_space<vmem>>, vector<1x1x96xf32>
    %281 = vector.shape_cast %280 : vector<1x1x96xf32> to vector<1x96xf32>
    %282 = vector.broadcast %281 : vector<1x96xf32> to vector<8x96xf32>
    %283 = arith.addf %279, %282 : vector<8x96xf32>
    %284 = vector.extract_strided_slice %283 {offsets = [0, 0], sizes = [8, 32], strides = [1, 1]} : vector<8x96xf32> to vector<8x32xf32>
    %285 = vector.extract_strided_slice %283 {offsets = [0, 32], sizes = [8, 32], strides = [1, 1]} : vector<8x96xf32> to vector<8x32xf32>
    %286 = vector.extract_strided_slice %283 {offsets = [0, 64], sizes = [8, 32], strides = [1, 1]} : vector<8x96xf32> to vector<8x32xf32>
    %287 = vector.shape_cast %284 : vector<8x32xf32> to vector<1x8x4x8xf32>
    %288 = vector.shape_cast %287 : vector<1x8x4x8xf32> to vector<8x4x8xf32>
    %289 = tpu.transpose %288, [1, 0, 2] : vector<8x4x8xf32> -> vector<4x8x8xf32>
    %290 = arith.truncf %289 : vector<4x8x8xf32> to vector<4x8x8xbf16>
    %291 = vector.shape_cast %285 : vector<8x32xf32> to vector<1x8x4x8xf32>
    %292 = vector.shape_cast %291 : vector<1x8x4x8xf32> to vector<8x4x8xf32>
    %293 = tpu.transpose %292, [1, 0, 2] : vector<8x4x8xf32> -> vector<4x8x8xf32>
    %294 = arith.truncf %293 : vector<4x8x8xf32> to vector<4x8x8xbf16>
    %295 = vector.shape_cast %286 : vector<8x32xf32> to vector<1x8x4x8xf32>
    %296 = vector.shape_cast %295 : vector<1x8x4x8xf32> to vector<8x4x8xf32>
    %297 = tpu.transpose %296, [1, 0, 2] : vector<8x4x8xf32> -> vector<4x8x8xf32>
    %298 = arith.truncf %297 : vector<4x8x8xf32> to vector<4x8x8xbf16>
    "tpu.trace_start"() <{level = 10 : i32, message = "gqd,gkd->gqk"}> : () -> ()
    %cst_137 = arith.constant dense<0.000000e+00> : vector<4x8x8xf32>
    %299 = tpu.matmul %290, %294, %cst_137 {dimension_numbers = #tpu.dot_dimension_numbers<[2], [2], [1], [1], [0, 0, 0, 1, 1, 1], [0], [0]>} : vector<4x8x8xbf16>, vector<4x8x8xbf16>, vector<4x8x8xf32> -> vector<4x8x8xf32>
    "tpu.trace_stop"() : () -> ()
    %cst_138 = arith.constant 0.353553385 : f32
    %300 = vector.broadcast %cst_138 : f32 to vector<4x8x8xf32>
    %301 = arith.mulf %299, %300 : vector<4x8x8xf32>
    %cst_139 = arith.constant dense<0xFF800000> : vector<4x8xf32>
    %302 = vector.multi_reduction <maximumf>, %301, %cst_139 [2] : vector<4x8x8xf32> to vector<4x8xf32>
    %303 = vector.shape_cast %302 : vector<4x8xf32> to vector<4x8x1xf32>
    %304 = vector.broadcast %303 : vector<4x8x1xf32> to vector<4x8x8xf32>
    %305 = arith.subf %301, %304 : vector<4x8x8xf32>
    %306 = math.exp %305 : vector<4x8x8xf32>
    %cst_140 = arith.constant dense<0.000000e+00> : vector<4x8xf32>
    %307 = vector.multi_reduction <add>, %306, %cst_140 [2] : vector<4x8x8xf32> to vector<4x8xf32>
    %308 = vector.shape_cast %307 : vector<4x8xf32> to vector<4x8x1xf32>
    %309 = tpu.reciprocal %308 {approx = true} : vector<4x8x1xf32> -> vector<4x8x1xf32>
    %310 = vector.broadcast %309 : vector<4x8x1xf32> to vector<4x8x8xf32>
    %311 = arith.mulf %306, %310 : vector<4x8x8xf32>
    %312 = arith.truncf %311 : vector<4x8x8xf32> to vector<4x8x8xbf16>
    "tpu.trace_start"() <{level = 10 : i32, message = "gqk,gkd->gqd"}> : () -> ()
    %cst_141 = arith.constant dense<0.000000e+00> : vector<4x8x8xf32>
    %313 = tpu.matmul %312, %298, %cst_141 {dimension_numbers = #tpu.dot_dimension_numbers<[2], [1], [1], [2], [0, 0, 0, 1, 1, 2], [0], [0]>} : vector<4x8x8xbf16>, vector<4x8x8xbf16>, vector<4x8x8xf32> -> vector<4x8x8xf32>
    "tpu.trace_stop"() : () -> ()
    %314 = tpu.transpose %313, [1, 0, 2] : vector<4x8x8xf32> -> vector<8x4x8xf32>
    %315 = vector.shape_cast %314 : vector<8x4x8xf32> to vector<8x32xf32>
    %316 = vector.shape_cast %315 : vector<8x32xf32> to vector<1x8x32xf32>
    %cst_142 = arith.constant dense<0.000000e+00> : vector<1x32xf32>
    %317 = vector.multi_reduction <add>, %316, %cst_142 [1] : vector<1x8x32xf32> to vector<1x32xf32>
    %cst_143 = arith.constant 8.000000e+00 : f32
    %318 = vector.broadcast %cst_143 : f32 to vector<1x32xf32>
    %319 = arith.divf %317, %318 : vector<1x32xf32>
    %c0_144 = arith.constant 0 : index
    %c0_145 = arith.constant 0 : index
    %320 = vector.load %arg20[%c0_144, %c0_145] : memref<32x128xbf16, #tpu.memory_space<vmem>>, vector<32x128xbf16>
    %321 = arith.truncf %319 : vector<1x32xf32> to vector<1x32xbf16>
    %cst_146 = arith.constant dense<0.000000e+00> : vector<1x128xf32>
    %322 = tpu.matmul %321, %320, %cst_146 {dimension_numbers = #tpu.dot_dimension_numbers<[1], [0], [0], [1], [0, 0, 1, 1], [], []>} : vector<1x32xbf16>, vector<32x128xbf16>, vector<1x128xf32> -> vector<1x128xf32>
    %c0_147 = arith.constant 0 : index
    %c0_148 = arith.constant 0 : index
    %323 = vector.load %arg21[%c0_147, %c0_148] : memref<1x128xf32, #tpu.memory_space<vmem>>, vector<1x128xf32>
    %324 = arith.addf %322, %323 : vector<1x128xf32>
    %cst_149 = arith.constant 0.000000e+00 : f32
    %325 = vector.broadcast %cst_149 : f32 to vector<1x128xf32>
    %326 = arith.maximumf %324, %325 : vector<1x128xf32>
    %c0_150 = arith.constant 0 : index
    %c0_151 = arith.constant 0 : index
    %327 = vector.load %arg22[%c0_150, %c0_151] : memref<128x128xbf16, #tpu.memory_space<vmem>>, vector<128x128xbf16>
    %328 = arith.truncf %326 : vector<1x128xf32> to vector<1x128xbf16>
    %cst_152 = arith.constant dense<0.000000e+00> : vector<1x128xf32>
    %329 = tpu.matmul %328, %327, %cst_152 {dimension_numbers = #tpu.dot_dimension_numbers<[1], [0], [0], [1], [0, 0, 1, 1], [], []>} : vector<1x128xbf16>, vector<128x128xbf16>, vector<1x128xf32> -> vector<1x128xf32>
    %c0_153 = arith.constant 0 : index
    %c0_154 = arith.constant 0 : index
    %330 = vector.load %arg23[%c0_153, %c0_154] : memref<1x128xf32, #tpu.memory_space<vmem>>, vector<1x128xf32>
    %331 = arith.addf %329, %330 : vector<1x128xf32>
    %332 = vector.shape_cast %331 : vector<1x128xf32> to vector<1x1x128xf32>
    %c0_155 = arith.constant 0 : index
    %c0_156 = arith.constant 0 : index
    %c0_157 = arith.constant 0 : index
    %333 = vector.load %arg24[%c0_155, %c0_156, %c0_157] : memref<1x1x128xf32, #tpu.memory_space<vmem>>, vector<1x1x128xf32>
    tpu.vector_store %arg24[%c0_155, %c0_156, %c0_157], %332 {strides = array<i32>} : memref<1x1x128xf32, #tpu.memory_space<vmem>>, vector<1x1x128xf32>,
    return
  }
  func.func @transform_0(%arg0: i32) -> (i32, i32, i32) {
    %c0_i32 = arith.constant 0 : i32
    %c0_i32_0 = arith.constant 0 : i32
    %c0_i32_1 = arith.constant 0 : i32
    return %arg0, %c0_i32, %c0_i32_0 : i32, i32, i32
  }
  func.func @transform_1(%arg0: i32) -> (i32, i32, i32) {
    %c0_i32 = arith.constant 0 : i32
    %c0_i32_0 = arith.constant 0 : i32
    %c0_i32_1 = arith.constant 0 : i32
    return %arg0, %c0_i32, %c0_i32_0 : i32, i32, i32
  }
  func.func @transform_2(%arg0: i32) -> (i32, i32) {
    %c0_i32 = arith.constant 0 : i32
    %c0_i32_0 = arith.constant 0 : i32
    %c0_i32_1 = arith.constant 0 : i32
    return %c0_i32, %c0_i32_0 : i32, i32
  }
  func.func @transform_3(%arg0: i32) -> (i32, i32) {
    %c0_i32 = arith.constant 0 : i32
    %c0_i32_0 = arith.constant 0 : i32
    %c0_i32_1 = arith.constant 0 : i32
    return %c0_i32, %c0_i32_0 : i32, i32
  }
  func.func @transform_4(%arg0: i32) -> (i32, i32) {
    %c0_i32 = arith.constant 0 : i32
    %c0_i32_0 = arith.constant 0 : i32
    %c0_i32_1 = arith.constant 0 : i32
    return %c0_i32, %c0_i32_0 : i32, i32
  }
  func.func @transform_5(%arg0: i32) -> (i32, i32, i32) {
    %c0_i32 = arith.constant 0 : i32
    %c0_i32_0 = arith.constant 0 : i32
    %c0_i32_1 = arith.constant 0 : i32
    %c0_i32_2 = arith.constant 0 : i32
    return %c0_i32, %c0_i32_0, %c0_i32_1 : i32, i32, i32
  }
  func.func @transform_6(%arg0: i32) -> (i32, i32, i32) {
    %c0_i32 = arith.constant 0 : i32
    %c0_i32_0 = arith.constant 0 : i32
    %c0_i32_1 = arith.constant 0 : i32
    %c0_i32_2 = arith.constant 0 : i32
    return %c0_i32, %c0_i32_0, %c0_i32_1 : i32, i32, i32
  }
  func.func @transform_7(%arg0: i32) -> (i32, i32) {
    %c0_i32 = arith.constant 0 : i32
    %c0_i32_0 = arith.constant 0 : i32
    %c0_i32_1 = arith.constant 0 : i32
    return %c0_i32, %c0_i32_0 : i32, i32
  }
  func.func @transform_8(%arg0: i32) -> (i32, i32) {
    %c0_i32 = arith.constant 0 : i32
    %c0_i32_0 = arith.constant 0 : i32
    %c0_i32_1 = arith.constant 0 : i32
    return %c0_i32, %c0_i32_0 : i32, i32
  }
  func.func @transform_9(%arg0: i32) -> (i32, i32) {
    %c0_i32 = arith.constant 0 : i32
    %c0_i32_0 = arith.constant 0 : i32
    %c0_i32_1 = arith.constant 0 : i32
    return %c0_i32, %c0_i32_0 : i32, i32
  }
  func.func @transform_10(%arg0: i32) -> (i32, i32) {
    %c0_i32 = arith.constant 0 : i32
    %c0_i32_0 = arith.constant 0 : i32
    %c0_i32_1 = arith.constant 0 : i32
    return %c0_i32, %c0_i32_0 : i32, i32
  }
  func.func @transform_11(%arg0: i32) -> (i32, i32, i32) {
    %c0_i32 = arith.constant 0 : i32
    %c0_i32_0 = arith.constant 0 : i32
    %c0_i32_1 = arith.constant 0 : i32
    %c0_i32_2 = arith.constant 0 : i32
    return %c0_i32, %c0_i32_0, %c0_i32_1 : i32, i32, i32
  }
  func.func @transform_12(%arg0: i32) -> (i32, i32, i32) {
    %c0_i32 = arith.constant 0 : i32
    %c0_i32_0 = arith.constant 0 : i32
    %c0_i32_1 = arith.constant 0 : i32
    %c0_i32_2 = arith.constant 0 : i32
    return %c0_i32, %c0_i32_0, %c0_i32_1 : i32, i32, i32
  }
  func.func @transform_13(%arg0: i32) -> (i32, i32, i32) {
    %c0_i32 = arith.constant 0 : i32
    %c0_i32_0 = arith.constant 0 : i32
    %c0_i32_1 = arith.constant 0 : i32
    %c0_i32_2 = arith.constant 0 : i32
    return %c0_i32, %c0_i32_0, %c0_i32_1 : i32, i32, i32
  }
  func.func @transform_14(%arg0: i32) -> (i32, i32, i32) {
    %c0_i32 = arith.constant 0 : i32
    %c0_i32_0 = arith.constant 0 : i32
    %c0_i32_1 = arith.constant 0 : i32
    %c0_i32_2 = arith.constant 0 : i32
    return %c0_i32, %c0_i32_0, %c0_i32_1 : i32, i32, i32
  }
  func.func @transform_15(%arg0: i32) -> (i32, i32, i32) {
    %c0_i32 = arith.constant 0 : i32
    %c0_i32_0 = arith.constant 0 : i32
    %c0_i32_1 = arith.constant 0 : i32
    %c0_i32_2 = arith.constant 0 : i32
    return %c0_i32, %c0_i32_0, %c0_i32_1 : i32, i32, i32
  }
  func.func @transform_16(%arg0: i32) -> (i32, i32, i32) {
    %c0_i32 = arith.constant 0 : i32
    %c0_i32_0 = arith.constant 0 : i32
    %c0_i32_1 = arith.constant 0 : i32
    %c0_i32_2 = arith.constant 0 : i32
    return %c0_i32, %c0_i32_0, %c0_i32_1 : i32, i32, i32
  }
  func.func @transform_17(%arg0: i32) -> (i32, i32, i32) {
    %c0_i32 = arith.constant 0 : i32
    %c0_i32_0 = arith.constant 0 : i32
    %c0_i32_1 = arith.constant 0 : i32
    %c0_i32_2 = arith.constant 0 : i32
    return %c0_i32, %c0_i32_0, %c0_i32_1 : i32, i32, i32
  }
  func.func @transform_18(%arg0: i32) -> (i32, i32, i32) {
    %c0_i32 = arith.constant 0 : i32
    %c0_i32_0 = arith.constant 0 : i32
    %c0_i32_1 = arith.constant 0 : i32
    %c0_i32_2 = arith.constant 0 : i32
    return %c0_i32, %c0_i32_0, %c0_i32_1 : i32, i32, i32
  }
  func.func @transform_19(%arg0: i32) -> (i32, i32) {
    %c0_i32 = arith.constant 0 : i32
    %c0_i32_0 = arith.constant 0 : i32
    %c0_i32_1 = arith.constant 0 : i32
    return %c0_i32, %c0_i32_0 : i32, i32
  }
  func.func @transform_20(%arg0: i32) -> (i32, i32) {
    %c0_i32 = arith.constant 0 : i32
    %c0_i32_0 = arith.constant 0 : i32
    %c0_i32_1 = arith.constant 0 : i32
    return %c0_i32, %c0_i32_0 : i32, i32
  }
  func.func @transform_21(%arg0: i32) -> (i32, i32) {
    %c0_i32 = arith.constant 0 : i32
    %c0_i32_0 = arith.constant 0 : i32
    %c0_i32_1 = arith.constant 0 : i32
    return %c0_i32, %c0_i32_0 : i32, i32
  }
  func.func @transform_22(%arg0: i32) -> (i32, i32) {
    %c0_i32 = arith.constant 0 : i32
    %c0_i32_0 = arith.constant 0 : i32
    %c0_i32_1 = arith.constant 0 : i32
    return %c0_i32, %c0_i32_0 : i32, i32
  }
  func.func @transform_23(%arg0: i32) -> (i32, i32, i32) {
    %c0_i32 = arith.constant 0 : i32
    %c0_i32_0 = arith.constant 0 : i32
    %c0_i32_1 = arith.constant 0 : i32
    return %arg0, %c0_i32, %c0_i32_0 : i32, i32, i32
  }
}

</mosaic_0001>

<bundles_post_ra>
// kernel: deadlift_forward.1
= control target key start
LH: loop header
LB: loop body
LE: loop exit
PB: predicated region body
PF: predicated region fallthrough
CT: control target
= control target key end

     0   :  { %s10564_s0 = inlined_call_operand.vmem [shape: f32[2,8,34], index: 0, kind: input, shape index: {}]   ;;  %s10565_s1 = inlined_call_operand.vmem [shape: f32[2,8,768], index: 1, kind: input, shape index: {}]   ;;  %s10566_s2 = inlined_call_operand.vmem [shape: bf16[768,32], index: 2, kind: input, shape index: {}]   ;;  %s10567_s3 = inlined_call_operand.vmem [shape: f32[1,32], index: 3, kind: input, shape index: {}]   ;;  %s10568_s4 = inlined_call_operand.vmem [shape: f32[8,32], index: 4, kind: input, shape index: {}]   ;;  %s10569_s5 = inlined_call_operand.vmem [shape: bf16[3,32,96], index: 5, kind: input, shape index: {}]   ;;  %s10570_s6 = inlined_call_operand.vmem [shape: f32[3,1,96], index: 6, kind: input, shape index: {}]   ;;  %s10571_s7 = inlined_call_operand.vmem [shape: bf16[32,32], index: 7, kind: input, shape index: {}]   ;;  %s10572_s8 = inlined_call_operand.vmem [shape: f32[1,32], index: 8, kind: input, shape index: {}]   ;;  %s10573_s9 = inlined_call_operand.vmem [shape: bf16[34,32], index: 9, kind: input, shape index: {}]   ;;  %s10574_s10 = inlined_call_operand.vmem [shape: f32[1,32], index: 10, kind: input, shape index: {}]   ;;  %s10575_s11 = inlined_call_operand.vmem [shape: bf16[2,32,64], index: 11, kind: input, shape index: {}]   ;;  %s10576_s12 = inlined_call_operand.vmem [shape: f32[2,1,64], index: 12, kind: input, shape index: {}]   ;;  %s10577_s13 = inlined_call_operand.vmem [shape: bf16[4,32,32], index: 13, kind: input, shape index: {}]   ;;  %s10578_s14 = inlined_call_operand.vmem [shape: f32[4,1,32], index: 14, kind: input, shape index: {}]   ;;  %s10579_s15 = inlined_call_operand.vmem [shape: bf16[2,32,128], index: 15, kind: input, shape index: {}]   ;;  %s10580_s16 = inlined_call_operand.vmem [shape: f32[2,1,128], index: 16, kind: input, shape index: {}]   ;;  %s10581_s17 = inlined_call_operand.vmem [shape: bf16[2,128,32], index: 17, kind: input, shape index: {}]   ;;  %s10582_s18 = inlined_call_operand.vmem [shape: f32[2,1,32], index: 18, kind: input, shape index: {}]   ;;  %s10583_s19 = inlined_call_operand.vmem [shape: bf16[32,128], index: 19, kind: input, shape index: {}]   ;;  %s10584_s20 = inlined_call_operand.vmem [shape: f32[1,128], index: 20, kind: input, shape index: {}]   ;;  %s10585_s21 = inlined_call_operand.vmem [shape: bf16[128,128], index: 21, kind: input, shape index: {}]   ;;  %s10586_s22 = inlined_call_operand.vmem [shape: f32[1,128], index: 22, kind: input, shape index: {}]   ;;  %s10587_s23 = inlined_call_operand.hbm [shape: f32[2,1,128], index: 23, kind: output, shape index: {}]  }
   0x1   :  { %10622 = sst [smem:[#allocation14_spill]] %s10564_s0 }
   0x2   :  { %10623 = sst [smem:[#allocation15_spill]] %s10565_s1 }
   0x3   :  { %10624 = sst [smem:[#allocation16_spill]] %s10566_s2 }
   0x4   :  { %10625 = sst [smem:[#allocation17_spill]] %s10567_s3 }
   0x5   :  { %10626 = sst [smem:[#allocation18_spill]] %s10568_s4 }
   0x6   :  { %10627 = sst [smem:[#allocation19_spill]] %s10569_s5 }
   0x7   :  { %10628 = sst [smem:[#allocation20_spill]] %s10570_s6 }
   0x8   :  { %10629 = sst [smem:[#allocation21_spill]] %s10571_s7 }
   0x9   :  { %10630 = sst [smem:[#allocation22_spill]] %s10572_s8 }
   0xa   :  { %10631 = sst [smem:[#allocation23_spill]] %s10579_s15 }
   0xb   :  { %10632 = sst [smem:[#allocation24_spill]] %s10581_s17 }
   0xc   :  { %10633 = sst [smem:[#allocation25_spill]] %s10584_s20 }
   0xd   :  { %10634 = sst [smem:[#allocation26_spill]] %s10585_s21 }
   0xe   :  { %10635 = sst [smem:[#allocation27_spill]] %s10586_s22 }
   0xf   :  { %10636 = sst [smem:[#allocation28_spill]] %s10587_s23 }
  0x10   :  { %28 = vsyncpa [#allocation3], 0 }
  0x11   :  { %30 = vsyncpa [#allocation3 + $0x1], 0  ;;  %s9114_s4 = smov 0   ;;  %s9116_s30 = smov 0  }
  0x12   :  { %s9118_s24 = smov 0   ;;  %s9120_s25 = smov 0  }
  0x13 LB: > { %10637 = sst [smem:[#allocation5_spill]] %s8967_s4  ;;  %s9135_s5 = sadd.s32 4294967295, %s8979_s25   ;;  %s8979_s25 = sphi %s9120_s25, %s10678_s25   ;;  %s8975_s24 = sphi %s9118_s24, %s10681_s24   ;;  %s8971_s30 = sphi %s9116_s30, %s10680_s30   ;;  %s8967_s4 = sphi %s9114_s4, %s10679_s4  }
  0x14   : > { %10638 = sst [smem:[#allocation6_spill]] %s8971_s30  ;;  %s7778_s1 = sadd.s32 4294967294, %s8979_s25  }
  0x15   : > { %10639 = sst [smem:[#allocation7_spill]] %s8975_s24  ;;  %s9139_s26 = sadd.s32 1, %s8979_s25  }
  0x16   : > { %10640 = sst [smem:[#allocation8_spill]] %s8979_s25  ;;  %s536_s2 = sadd.s32 1, %s8975_s24 }
  0x17   : > { %10641 = sst [smem:[#allocation9_spill]] %s9135_s5  ;;  %s533_s6 = ssub.s32 %s8979_s25, %s9139_s26 }
  0x18   : > { %10642 = sst [smem:[#allocation10_spill]] %s9139_s26  ;;  %p546_p0 = scmp.ne.s32.totalorder %s8975_s24, %s8971_s30 }
  0x19   : > { %p534_p1 = scmp.eq.s32.totalorder %s533_s6, 0  ;;  %p547_p2 = scmp.eq.s32.totalorder %s9135_s5, 1 }
  0x1a   : > { %p552_p3 = scmp.ne.s32.totalorder %s8971_s30, %s8967_s4  ;;  %p553_p4 = scmp.eq.s32.totalorder %s7778_s1, 1 }
  0x1b   : > { %s9150_s27 = scalar_select %p534_p1, %s8975_s24, %s536_s2  }
  0x1c   : > { %p9152_p5 = por %p547_p2, %p546_p0  ;;  %p9156_p6 = por %p553_p4, %p552_p3 }
  0x1d   : > { %10643 = sst [smem:[#allocation11_spill]] %s9150_s27  ;;  %p7781_p7 = scmp.ge.s32.totalorder %s8979_s25, 1 }
  0x1e   : > { %s10644_s7 = scalar_select %p9152_p5, 1, 0 }
  0x1f   : > { %s10646_s28 = scalar_select %p9156_p6, 1, 0 }
  0x20   : > { %10645 = sst [smem:[#allocation12_spill]] %s10644_s7  ;;  %p649_p8 = scmp.lt.s32.totalorder %s8979_s25, 3 }
  0x21   : > { %10647 = sst [smem:[#allocation13_spill]] %s10646_s28 }
  0x22   : > { %p650_p9 = pnand %p7781_p7, %p649_p8 }
  0x23   : > { %s10648_s0 = sld [smem:[#allocation16_spill]] (!%p650_p9)  ;;  %p716_p10 = scmp.lt.s32.totalorder (!%p650_p9), %s9135_s5, 1  ;;  %v8981_v61 = vmov (!%p650_p9), 0.0   ;;  %vm8982_vm0 = vmmov (!%p650_p9), 0   ;;  %vm1274_vm1 = vcmask (!%p650_p9), 261120   ;;  %vm1837_vm2 = vcmask (!%p650_p9), 64512  }
  0x24   : > { %653 = sbr.rel (%p650_p9) target bundleno = 9426 (0x24d2), region = 112  ;;  %s10649_s7 = sld [smem:[#allocation15_spill]] (!%p650_p9)  ;;  %vm2077_vm3 = vcmask (!%p650_p9), 1043456   ;;  %vm2408_vm4 = vcmask (!%p650_p9), 130048   ;;  %vm2410_vm5 = vcmask (!%p650_p9), 195584   ;;  %vm5221_vm6 = vcmask (!%p650_p9), 1040384  }
  0x25   : > { %s10650_s26 = sld [smem:[#allocation21_spill]] (!%p650_p9)  ;;  %s10651_s1 = sld [smem:[#allocation18_spill]] (!%p650_p9)  ;;  %vm5217_vm7 = vcmask (!%p650_p9), 277504  }
  0x26   : > { %s10652_s4 = sld [smem:[#allocation17_spill]] (!%p650_p9)  ;;  %s10653_s8 = sld [smem:[#allocation22_spill]] (!%p650_p9) }
  0x27   : > { %s10607_s27 = smov (!%p650_p9), 104   ;;  %s10613_s2 = smov (!%p650_p9), 120  }
  0x28   : > { %s10615_s24 = smov (!%p650_p9), 112   ;;  %s10611_s23 = smov (!%p650_p9), 96  }
  0x29   : > { %v8732_v0 = vld [vmem:[%s10648_s0 + $0x40] sm:$0xff] (!%p650_p9)   ;;  %v8736_v4 = vld [vmem:[%s10648_s0 + $0x48] sm:$0xff] (!%p650_p9)   ;;  %v8740_v8 = vld [vmem:[%s10648_s0 + $0x50] sm:$0xff] (!%p650_p9)   ;;  %s10603_s29 = smov (!%p650_p9), 8   ;;  %s10661_s15 = sld [smem:[#allocation23_spill]] (!%p650_p9) }
  0x2a   : > { %v8733_v1 = vld [vmem:[%s10648_s0] sm:$0xff] (!%p650_p9)   ;;  %8050 = vmatprep.subr.bf16.mxu0 (!%p650_p9), %v8732_v0  ;;  %v8737_v5 = vld [vmem:[%s10648_s0 + $0x8] sm:$0xff] (!%p650_p9)   ;;  %v8741_v9 = vld [vmem:[%s10648_s0 + $0x10] sm:$0xff] (!%p650_p9)   ;;  %s10662_s17 = sld [smem:[#allocation24_spill]] (!%p650_p9)  ;;  %s10667_s30 = sld [smem:[#allocation14_spill]] (!%p650_p9) }
  0x2b   : > { %v8734_v2 = vld [vmem:[%s10648_s0 + $0xc0] sm:$0xff]   ;;  %8051 = vmatpush3.bf16.msra.mxu0 %v8733_v1  ;;  %v8738_v6 = vld [vmem:[%s10648_s0 + $0xc8] sm:$0xff]   ;;  %v8742_v10 = vld [vmem:[%s10648_s0 + $0xd0] sm:$0xff]   ;;  %s9227_s6 = scalar_select %p716_p10, %s9135_s5, 1 }
  0x2c   : > { %v8735_v3 = vld [vmem:[%s10648_s0 + $0x80] sm:$0xff]   ;;  %8072 = vmatprep.subr.bf16.mxu1 %v8734_v2  ;;  %8052 = vmatprep.subr.bf16.mxu0 %v8736_v4  ;;  %v8739_v7 = vld [vmem:[%s10648_s0 + $0x88] sm:$0xff]   ;;  %v8743_v11 = vld [vmem:[%s10648_s0 + $0x90] sm:$0xff]  }
  0x2d   : > { %8073 = vmatpush3.bf16.msra.mxu1 %v8735_v3  ;;  %v8744_v12 = vld [vmem:[%s10648_s0 + $0x58] sm:$0xff]   ;;  %v8748_v16 = vld [vmem:[%s10648_s0 + $0x60] sm:$0xff]   ;;  %v8752_v20 = vld [vmem:[%s10648_s0 + $0x68] sm:$0xff]   ;;  %s8680_s3 = smul.u32 48, %s9227_s6  ;;  %s7782_s20 = sshll.u32 %s9227_s6, 3 }
  0x2e   : > { %8074 = vmatprep.subr.bf16.mxu1 %v8738_v6  ;;  %v8745_v13 = vld [vmem:[%s10648_s0 + $0x18] sm:$0xff]   ;;  %v8749_v17 = vld [vmem:[%s10648_s0 + $0x20] sm:$0xff]   ;;  %v8753_v21 = vld [vmem:[%s10648_s0 + $0x28] sm:$0xff]   ;;  %s10671_s6 = sld [smem:[#allocation25_spill]] }
  0x2f   : > { %8053 = vmatpush3.bf16.msra.mxu0 %v8737_v5  ;;  %v8746_v14 = vld [vmem:[%s10648_s0 + $0xd8] sm:$0xff]   ;;  %v8750_v18 = vld [vmem:[%s10648_s0 + $0xe0] sm:$0xff]   ;;  %v8754_v22 = vld [vmem:[%s10648_s0 + $0xe8] sm:$0xff]   ;;  %s9257_s25 = scalar_lea.vmem %s10649_s7, %s8680_s3  ;;  %s10609_s7 = smov 64  }
  0x30   : > { %8054 = vmatprep.subr.bf16.mxu0 %v8740_v8  ;;  %v8747_v15 = vld [vmem:[%s10648_s0 + $0x98] sm:$0xff]   ;;  %v8751_v19 = vld [vmem:[%s10648_s0 + $0xa0] sm:$0xff]   ;;  %v8755_v23 = vld [vmem:[%s10648_s0 + $0xa8] sm:$0xff]   ;;  %s10658_s3 = smov 16   ;;  %s719_s21 = scalar_lea.vmem %s10667_s30, %s7782_s20 }
  0x31   : > { %8075 = vmatpush3.bf16.msra.mxu1 %v8739_v7  ;;  %v8756_v24 = vld [vmem:[%s10648_s0 + $0x70] sm:$0xff]   ;;  %v8760_v28 = vld [vmem:[%s10648_s0 + $0x78] sm:$0xff]   ;;  %v727_v31 = vld [vmem:[%s9257_s25 + $0x8] sm:$0xff] }
  0x32   : > { %8076 = vmatprep.subr.bf16.mxu1 %v8742_v10  ;;  %v8757_v25 = vld [vmem:[%s10648_s0 + $0x30] sm:$0xff]   ;;  %v8761_v29 = vld [vmem:[%s10648_s0 + $0x38] sm:$0xff]   ;;  %v829_v32 = vpack.c.bf16 %v727_v31, %v727_v31  ;;  %v726_v34 = vld [vmem:[%s9257_s25] sm:$0xff] }
  0x33   : > { %8055 = vmatpush3.bf16.msra.mxu0 %v8741_v9  ;;  %v8758_v26 = vld [vmem:[%s10648_s0 + $0xf0] sm:$0xff]   ;;  %v8762_v30 = vld [vmem:[%s10648_s0 + $0xf8] sm:$0xff]   ;;  %v828_v35 = vpack.c.bf16 %v726_v34, %v726_v34  ;;  %v8764_v36 = vld [vmem:[%s10648_s0 + $0x140] sm:$0xff]  }
  0x34   : > { %8056 = vmatprep.subr.bf16.mxu0 %v8744_v12  ;;  %v8759_v27 = vld [vmem:[%s10648_s0 + $0xb0] sm:$0xff]   ;;  %v8763_v33 = vld [vmem:[%s10648_s0 + $0xb8] sm:$0xff]   ;;  %1161 = vmatprep.mubr.bf16.mxu0 %v829_v32  ;;  %v8765_v39 = vld [vmem:[%s10648_s0 + $0x100] sm:$0xff]  }
  0x35   : > { %8077 = vmatpush3.bf16.msra.mxu1 %v8743_v11  ;;  %v729_v37 = vld [vmem:[%s9257_s25 + $0x18] sm:$0xff]  ;;  %v728_v40 = vld [vmem:[%s9257_s25 + $0x10] sm:$0xff]  ;;  %v8766_v42 = vld [vmem:[%s10648_s0 + $0x148] sm:$0xff]  }
  0x36   : > { %8078 = vmatprep.subr.bf16.mxu1 %v8746_v14  ;;  %v831_v38 = vpack.c.bf16 %v729_v37, %v729_v37  ;;  %v830_v41 = vpack.c.bf16 %v728_v40, %v728_v40  ;;  %v8767_v43 = vld [vmem:[%s10648_s0 + $0x108] sm:$0xff]   ;;  %v8768_v44 = vld [vmem:[%s10648_s0 + $0x150] sm:$0xff]   ;;  %v8770_v46 = vld [vmem:[%s10648_s0 + $0x158] sm:$0xff]   ;;  %v1400_v37 = vlaneseq }
  0x37   : > { %8057 = vmatpush3.bf16.msra.mxu0 %v8745_v13  ;;  %v8769_v45 = vld [vmem:[%s10648_s0 + $0x110] sm:$0xff]   ;;  %v8771_v47 = vld [vmem:[%s10648_s0 + $0x118] sm:$0xff]   ;;  %v8772_v48 = vld [vmem:[%s10648_s0 + $0x160] sm:$0xff]  }
  0x38   : > { %8058 = vmatprep.subr.bf16.mxu0 %v8748_v16  ;;  %1201 = vmatprep.mubr.bf16.mxu1 %v831_v38  ;;  %v8773_v49 = vld [vmem:[%s10648_s0 + $0x120] sm:$0xff]   ;;  %v8774_v50 = vld [vmem:[%s10648_s0 + $0x168] sm:$0xff]   ;;  %v8776_v54 = vld [vmem:[%s10648_s0 + $0x170] sm:$0xff]   ;;  %v8987_v38 = vmov 1934713408  }
  0x39   : > { %8079 = vmatpush3.bf16.msra.mxu1 %v8747_v15  ;;  %v731_v51 = vld [vmem:[%s9257_s25 + $0x28] sm:$0xff]  ;;  %v8777_v55 = vld [vmem:[%s10648_s0 + $0x130] sm:$0xff]   ;;  %v8778_v56 = vld [vmem:[%s10648_s0 + $0x178] sm:$0xff]  }
  0x3a   : > { %8080 = vmatprep.subr.bf16.mxu1 %v8750_v18  ;;  %v8775_v52 = vld [vmem:[%s10648_s0 + $0x128] sm:$0xff]   ;;  %v833_v53 = vpack.c.bf16 %v731_v51, %v731_v51  ;;  %v8779_v57 = vld [vmem:[%s10648_s0 + $0x138] sm:$0xff]   ;;  %v730_v58 = vld [vmem:[%s9257_s25 + $0x20] sm:$0xff]  ;;  %s10605_s25 = smov 16   ;;  %s10663_s0 = smov 112  }
  0x3b   : > { %8059 = vmatpush3.bf16.msra.mxu0 %v8749_v17  ;;  %v832_v59 = vpack.c.bf16 %v730_v58, %v730_v58  ;;  %v8780_v60 = vld [vmem:[%s10650_s26] sm:$0xff]   ;;  %v8781_v62 = vld [vmem:[%s10650_s26 + $0x8] sm:$0xff]  }
  0x3c   : > { %8060 = vmatprep.subr.bf16.mxu0 %v8752_v20  ;;  %v9334_v63 = vld [vmem:[%s10651_s1] sm:$0xff]  ;;  %v8783_v2 = vld [vmem:[%s10575_s11 + $0x8] sm:$0xff]   ;;  %s10601_s1 = smov 24  }
  0x3d   : > { %8081 = vmatpush3.bf16.msra.mxu1 %v8751_v19  ;;  %v1254_v0 = vpack.c.bf16 %v9334_v63, %v9334_v63  ;;  %v8782_v1 = vld [vmem:[%s10575_s11] sm:$0xff]  }
  0x3e   : > { %8082 = vmatprep.subr.bf16.mxu1 %v8754_v22  ;;  %v7784_v4 = vld [vmem:[%s10652_s4] ss:$0 sm:$0xff]  ;;  %s10654_s4 = sld [smem:[#allocation19_spill]] }
  0x3f   : > { %8061 = vmatpush3.bf16.msra.mxu0 %v8753_v21  ;;  %v7833_v31 = vld [vmem:[%s10653_s8] ss:$0 sm:$0xff]  ;;  %s10668_s8 = sld [smem:[#allocation26_spill]] }
  0x40   : > { %8062 = vmatprep.subr.bf16.mxu0 %v8756_v24 }
  0x41   : > { %8083 = vmatpush3.bf16.msra.mxu1 %v8755_v23 }
  0x42   : > { %8084 = vmatprep.subr.bf16.mxu1 %v8758_v26 }
  0x43   : > { %8063 = vmatpush3.bf16.msra.mxu0 %v8757_v25 }
  0x44   : > { %8064 = vmatprep.subr.bf16.mxu0 %v8760_v28  ;;  %s10655_s28 = smov %s10654_s4 }
  0x45   : > { %8085 = vmatpush3.bf16.msra.mxu1 %v8759_v27  ;;  %v7837_v27 = vld [vmem:[%s10576_s12] ss:$0 sm:$0xff] }
  0x46   : > { %8086 = vmatprep.subr.bf16.mxu1 %v8762_v30 }
  0x47   : > { %8065 = vmatpush3.bf16.msra.mxu0 %v8761_v29 }
  0x48   : > { %8094 = vmatprep.subr.bf16.mxu0 %v8764_v36 }
  0x49   : > { %8087 = vmatpush3.bf16.msra.mxu1 %v8763_v33 }
  0x4a   : > { %1162 = vmatmul.mubr.bf16.vlgmr.msra.gmra.mrb[0].mxu0 %v828_v35  ;;  %8282 = vmatprep.subr.bf16.mxu1 %v8981_v61  ;;  %v8986_v35 = vmov 1983009808  }
  0x4b   : > { %8095 = vmatpush3.bf16.msra.mxu0 %v8765_v39  ;;  %1241 = vmatprep.mubr.bf16.mxu0 %v833_v53  ;;  %v1398_v36 = vunpack.c.l.s4 %v8986_v35  ;;  %v1430_v39 = vunpack.c.l.s4 %v8987_v38 }
  0x4c   : > { %1202 = vmatmul.mubr.bf16.vlgmr.msra.gmra.mrb[0].mxu1 %v830_v41  ;;  %8096 = vmatprep.subr.bf16.mxu0 %v8766_v42  ;;  %v1401_v41 = vshrl.u32 %v1400_v37, 7 }
  0x4d   : > { %8284 = vmatprep.mubr.msk.bf16.mxu1 %vm8982_vm0, %v8981_v61  ;;  %v1399_v40 = vunpack.c.0.s8 %v1398_v36 }
  0x4f   : > { %8097 = vmatpush3.bf16.msra.mxu0 %v8767_v43 }
  0x50   : > { %8098 = vmatprep.subr.bf16.mxu0 %v8768_v44  ;;  %v1431_v44 = vunpack.c.0.s8 %v1430_v39 }
  0x53   : > { %8099 = vmatpush3.bf16.msra.mxu0 %v8769_v45  ;;  %v9381_v45 = vsub.s32 %v1399_v40, %v1401_v41 }
  0x54   : > { %8100 = vmatprep.subr.bf16.mxu0 %v8770_v46 }
  0x57   : > { %8101 = vmatpush3.bf16.msra.mxu0 %v8771_v47 }
  0x58   : > { %8102 = vmatprep.subr.bf16.mxu0 %v8772_v48 }
  0x5b   : > { %8103 = vmatpush3.bf16.msra.mxu0 %v8773_v49 }
  0x5c   : > { %8104 = vmatprep.subr.bf16.mxu0 %v8774_v50 }
  0x5f   : > { %8105 = vmatpush3.bf16.msra.mxu0 %v8775_v52  ;;  %v9393_v52 = vsub.s32 %v1431_v44, %v1401_v41 }
  0x60   : > { %8106 = vmatprep.subr.bf16.mxu0 %v8776_v54 }
  0x63   : > { %8107 = vmatpush3.bf16.msra.mxu0 %v8777_v55 }
  0x64   : > { %8108 = vmatprep.subr.bf16.mxu0 %v8778_v56 }
  0x67   : > { %8109 = vmatpush3.bf16.msra.mxu0 %v8779_v57 }
  0x68   : > { %8266 = vmatprep.subr.bf16.mxu0 %v8981_v61 }
  0x6a   : > { %1242 = vmatmul.mubr.bf16.vlgmr.msra.gmra.mrb[4].mxu0 %v832_v59 }
  0x6b   : > { %8270 = vmatprep.mubr.msk.bf16.mxu0 %vm8982_vm0, %v8981_v61  ;;  %8267 = vmatpush3.bf16.msra.mxu0 %v8780_v60 }
  0x6c   : > { %8268 = vmatprep.subr.bf16.mxu0 %v8981_v61 }
  0x6f   : > { %8269 = vmatpush3.bf16.msra.mxu0 %v8781_v62 }
  0x70   : > { %8274 = vmatprep.subr.bf16.mxu0 %v8981_v61 }
  0x72   : > { %8271 = vmatmul.mubr.msk.bf16.vlgmr.msra.gmra.mrb[8].mxu0 %vm1274_vm1, %v1254_v0 }
  0x73   : > { %8278 = vmatprep.mubr.msk.bf16.mxu0 %vm8982_vm0, %v8981_v61  ;;  %8275 = vmatpush3.bf16.msra.mxu0 %v8782_v1 }
  0x74   : > { %8276 = vmatprep.subr.bf16.mxu0 %v8981_v61 }
  0x77   : > { %8277 = vmatpush3.bf16.msra.mxu0 %v8783_v2 }
  0x78   : > { %8294 = vmatprep.subr.bf16.mxu0 %v8981_v61 }
 0x11d   : > { %v8066_v3 = vpop.f32.mrb[0].mxu0 }
 0x11e   : > { %v8067_v5 = vpop.f32.mrb[1].mxu0 }
 0x11f   : > { %v8068_v6 = vadd.f32 %v8067_v5, %v8066_v3  ;;  %v8069_v7 = vpop.f32.mrb[2].mxu0  ;;  %v8088_v8 = vpop.f32.mrb[0].mxu1 }
 0x120   : > { %v8070_v9 = vpop.f32.mrb[3].mxu0  ;;  %v8089_v11 = vpop.f32.mrb[1].mxu1 }
 0x121   : > { %v1164_v10 = vadd.f32 %v8068_v6, %v7784_v4  ;;  %v8090_v12 = vadd.f32 %v8089_v11, %v8088_v8  ;;  %v8091_v13 = vpop.f32.mrb[2].mxu1 }
 0x122   : > { %v8092_v14 = vpop.f32.mrb[3].mxu1 }
 0x123   : > { %v1204_v15 = vadd.f32 %v8090_v12, %v1164_v10 }
 0x13d   : > { %v8110_v16 = vpop.f32.mrb[4].mxu0 }
 0x13e   : > { %v8111_v17 = vpop.f32.mrb[5].mxu0 }
 0x13f   : > { %v8112_v18 = vadd.f32 %v8111_v17, %v8110_v16  ;;  %v8113_v19 = vpop.f32.mrb[6].mxu0 }
 0x140   : > { %v8114_v20 = vpop.f32.mrb[7].mxu0 }
 0x141   : > { %v1244_v21 = vadd.f32 %v8112_v18, %v1204_v15 }
 0x143   : > { %v1322_v22 = vpack.c.bf16 %v1244_v21, %v1244_v21 }
 0x145   : > { %8279 = vmatmul.mubr.msk.bf16.vlgmr.msra.gmra.mrb[12].mxu0 %vm1274_vm1, %v1322_v22  ;;  %v1312_v23 = vpop.f32.mrb[8].mxu0 }
 0x146   : > { %8296 = vmatprep.mubr.msk.bf16.mxu0 %vm8982_vm0, %v8981_v61  ;;  %v8272_v24 = vpop.f32.mrb[9].mxu0  ;;  %v1313_v34 = vadd.f32 %v7833_v31, %v1312_v23 }
 0x147   : > { %v1315_v25 = vpop.f32.mrb[10].mxu0 }
 0x148   : > { %v8273_v26 = vpop.f32.mrb[11].mxu0 }
 0x218   : > { %v1379_v28 = vpop.f32.mrb[12].mxu0 }
 0x219   : > { %v9363_v29 = vadd.f32 %v7837_v27, %v1379_v28  ;;  %v8280_v30 = vpop.f32.mrb[13].mxu0 }
 0x21a   : > { %v1382_v32 = vpop.f32.mrb[14].mxu0 }
 0x21b   : > { %1542 = vrot.lane.b32.xlu1 %v9363_v29, %s10607_s27  ;;  %1536 = vrot.lane.b32.xlu0 %v9363_v29, %s10613_s2  ;;  %v8281_v33 = vpop.f32.mrb[15].mxu0 }
 0x21f   : > { %1386 = vrot.lane.b32.xlu1 %v1313_v34, %s10613_s2  ;;  %1539 = vrot.lane.b32.xlu0 %v9363_v29, %s10615_s24 }
 0x223   : > { %1392 = vrot.lane.b32.xlu1 %v1313_v34, %s10607_s27  ;;  %1389 = vrot.lane.b32.xlu0 %v1313_v34, %s10615_s24  ;;  %s10656_s27 = sld [smem:[#allocation20_spill]] }
 0x28d   : > { %v9377_v42 = vpop.permute.xlu1 %1542  ;;  %v9379_v43 = vpop.permute.xlu0 %1536 }
 0x28e   : > { %v1561_v46 = vcombine.low %v9379_v43, %v9377_v42  ;;  %v1562_v47 = vcombine.high %v9379_v43, %v9377_v42 }
 0x290   : > { %v1569_v53 = vrot.slane %v1561_v46, %v9381_v45  ;;  %v1576_v54 = vrot.slane %v1562_v47, %v9381_v45 }
 0x291   : > { %v1387_v48 = vpop.permute.xlu1 %1386  ;;  %v9387_v49 = vpop.permute.xlu0 %1539 }
 0x292   : > { %v1545_v50 = vcombine.low %v9363_v29, %v9387_v49  ;;  %v1546_v51 = vcombine.high %v9363_v29, %v9387_v49 }
 0x294   : > { %v1553_v55 = vrot.slane %v1545_v50, %v9381_v45  ;;  %v1560_v56 = vrot.slane %v1546_v51, %v9381_v45 }
 0x295   : > { %v1393_v57 = vpop.permute.xlu1 %1392  ;;  %v1390_v58 = vpop.permute.xlu0 %1389 }
 0x296   : > { %v1577_v59 = vcombine.low %v1553_v55, %v1569_v53  ;;  %v1578_v60 = vcombine.high %v1553_v55, %v1569_v53  ;;  %v1593_v62 = vcombine.low %v1560_v56, %v1576_v54  ;;  %v1594_v0 = vcombine.high %v1560_v56, %v1576_v54 }
 0x297   : > { %v1411_v1 = vcombine.low %v1387_v48, %v1393_v57  ;;  %v1412_v2 = vcombine.high %v1387_v48, %v1393_v57  ;;  %v1395_v3 = vcombine.low %v1313_v34, %v1390_v58  ;;  %v1396_v4 = vcombine.high %v1313_v34, %v1390_v58 }
 0x298   : > { %v1585_v5 = vrot.slane %v1577_v59, %v9393_v52  ;;  %v1592_v6 = vrot.slane %v1578_v60, %v9393_v52  ;;  %v1601_v7 = vrot.slane %v1593_v62, %v9393_v52  ;;  %v1608_v8 = vrot.slane %v1594_v0, %v9393_v52 }
 0x299   : > { %v1419_v9 = vrot.slane %v1411_v1, %v9381_v45  ;;  %v1426_v10 = vrot.slane %v1412_v2, %v9381_v45  ;;  %v1403_v11 = vrot.slane %v1395_v3, %v9381_v45  ;;  %v1410_v12 = vrot.slane %v1396_v4, %v9381_v45 }
 0x29a   : > { %v1613_v13 = vcombine.low %v1585_v5, %v1592_v6  ;;  %v7843_v14 = vcombine.high %v1585_v5, %v1592_v6  ;;  %v1629_v15 = vcombine.low %v1601_v7, %v1608_v8  ;;  %v7844_v16 = vcombine.high %v1601_v7, %v1608_v8 }
 0x29b   : > { %v1427_v17 = vcombine.low %v1403_v11, %v1419_v9  ;;  %v1428_v18 = vcombine.high %v1403_v11, %v1419_v9  ;;  %v1443_v19 = vcombine.low %v1410_v12, %v1426_v10  ;;  %v1444_v20 = vcombine.high %v1410_v12, %v1426_v10 }
 0x29c   : > { %v1620_v21 = vrot.slane %v1613_v13, %v9381_v45  ;;  %v1628_v22 = vrot.slane %v7843_v14, %v9381_v45  ;;  %v1636_v23 = vrot.slane %v1629_v15, %v9381_v45  ;;  %v1644_v24 = vrot.slane %v7844_v16, %v9381_v45 }
 0x29d   : > { %v1435_v25 = vrot.slane %v1427_v17, %v9393_v52  ;;  %v1442_v26 = vrot.slane %v1428_v18, %v9393_v52  ;;  %v1451_v27 = vrot.slane %v1443_v19, %v9393_v52  ;;  %v1458_v28 = vrot.slane %v1444_v20, %v9393_v52 }
 0x29e   : > { %v1645_v30 = vcombine.low %v1620_v21, %v1628_v22  ;;  %v1661_v31 = vcombine.low %v1636_v23, %v1644_v24  ;;  %v1646_v32 = vcombine.high %v1620_v21, %v1628_v22  ;;  %v1662_v33 = vcombine.high %v1636_v23, %v1644_v24 }
 0x29f   : > { %v1463_v34 = vcombine.low %v1435_v25, %v1442_v26  ;;  %v7841_v35 = vcombine.high %v1435_v25, %v1442_v26  ;;  %v1479_v36 = vcombine.low %v1451_v27, %v1458_v28  ;;  %v7842_v37 = vcombine.high %v1451_v27, %v1458_v28 }
 0x2a0   : > { %v1653_v38 = vrot.slane %v1645_v30, %v9393_v52  ;;  %v1669_v39 = vrot.slane %v1661_v31, %v9393_v52  ;;  %v1660_v40 = vrot.slane %v1646_v32, %v9393_v52  ;;  %v1676_v41 = vrot.slane %v1662_v33, %v9393_v52 }
 0x2a1   : > { %v1470_v44 = vrot.slane %v1463_v34, %v9381_v45  ;;  %v1478_v46 = vrot.slane %v7841_v35, %v9381_v45  ;;  %v1486_v47 = vrot.slane %v1479_v36, %v9381_v45  ;;  %v1494_v48 = vrot.slane %v7842_v37, %v9381_v45 }
 0x2a2   : > { %v1677_v50 = vcombine.low %v1653_v38, %v1669_v39  ;;  %v1679_v51 = vcombine.low %v1660_v40, %v1676_v41  ;;  %v1678_v3 = vcombine.high %v1653_v38, %v1669_v39  ;;  %v1680_v10 = vcombine.high %v1660_v40, %v1676_v41 }
 0x2a3   : > { %v1495_v53 = vcombine.low %v1470_v44, %v1478_v46  ;;  %v1496_v54 = vcombine.high %v1470_v44, %v1478_v46  ;;  %v1511_v55 = vcombine.low %v1486_v47, %v1494_v48  ;;  %v1512_v56 = vcombine.high %v1486_v47, %v1494_v48 }
 0x2a4   : > { %v1681_v57 = vpack.c.bf16 %v1677_v50, %v1677_v50  ;;  %v1683_v58 = vpack.c.bf16 %v1679_v51, %v1679_v51  ;;  %v1682_v6 = vpack.c.bf16 %v1678_v3, %v1678_v3  ;;  %v1684_v12 = vpack.c.bf16 %v1680_v10, %v1680_v10 }
 0x2a5   : > { %v1503_v59 = vrot.slane %v1495_v53, %v9393_v52  ;;  %v1519_v60 = vrot.slane %v1511_v55, %v9393_v52  ;;  %v1510_v62 = vrot.slane %v1496_v54, %v9393_v52  ;;  %v1526_v0 = vrot.slane %v1512_v56, %v9393_v52 }
 0x2a6   : > { %v1842_v1 = vsel %vm1837_vm2, %v1681_v57, 0  ;;  %v1934_v2 = vsel %vm1837_vm2, %v1683_v58, 0  ;;  %v1888_v9 = vsel %vm1837_vm2, %v1682_v6, 0  ;;  %v1980_v14 = vsel %vm1837_vm2, %v1684_v12, 0 }
 0x2a7   : > { %8283 = vmatpush3.bf16.xpose.msra.mxu1 %v1842_v1  ;;  %8295 = vmatpush3.bf16.xpose.msra.mxu0 %v1934_v2  ;;  %v1527_v4 = vcombine.low %v1503_v59, %v1519_v60  ;;  %v1529_v5 = vcombine.low %v1510_v62, %v1526_v0  ;;  %v1528_v11 = vcombine.high %v1503_v59, %v1519_v60 }
 0x2a8   : > { %8288 = vmatprep.subr.bf16.mxu1 %v8981_v61  ;;  %8306 = vmatprep.subr.bf16.mxu0 %v8981_v61  ;;  %v1530_v15 = vcombine.high %v1510_v62, %v1526_v0 }
 0x2a9   : > { %v1531_v7 = vpack.c.bf16 %v1527_v4, %v1527_v4  ;;  %v1533_v8 = vpack.c.bf16 %v1529_v5, %v1529_v5  ;;  %v1532_v13 = vpack.c.bf16 %v1528_v11, %v1528_v11 }
 0x2aa   : > { %v1534_v16 = vpack.c.bf16 %v1530_v15, %v1530_v15 }
 0x2ae   : > { %8285 = vmatmul.mubr.msk.bf16.vlgmr.msra.gmra.mrb[4].mxu1 %vm1837_vm2, %v1531_v7  ;;  %8297 = vmatmul.mubr.msk.bf16.vlgmr.msra.gmra.mrb[16].mxu0 %vm1837_vm2, %v1533_v8 }
 0x2af   : > { %8289 = vmatpush3.bf16.xpose.msra.mxu1 %v1888_v9  ;;  %8290 = vmatprep.mubr.msk.bf16.mxu1 %vm8982_vm0, %v8981_v61 }
 0x2b0   : > { %8300 = vmatprep.subr.bf16.mxu1 %v8981_v61  ;;  %8308 = vmatprep.mubr.msk.bf16.mxu0 %vm8982_vm0, %v8981_v61 }
 0x2b6   : > { %8291 = vmatmul.mubr.msk.bf16.vlgmr.msra.gmra.mrb[8].mxu1 %vm1837_vm2, %v1532_v13 }
 0x2b7   : > { %8301 = vmatpush3.bf16.xpose.msra.mxu1 %v1980_v14  ;;  %8302 = vmatprep.mubr.msk.bf16.mxu1 %vm8982_vm0, %v8981_v61 }
 0x2b8   : > { %8312 = vmatprep.subr.bf16.mxu1 %v8981_v61 }
 0x2be   : > { %8303 = vmatmul.mubr.msk.bf16.vlgmr.msra.gmra.mrb[12].mxu1 %vm1837_vm2, %v1534_v16 }
 0x2bf   : > { %8314 = vmatprep.mubr.msk.bf16.mxu1 %vm8982_vm0, %v8981_v61 }
 0x381   : > { %v1878_v17 = vpop.f32.mrb[4].mxu1  ;;  %v1970_v18 = vpop.f32.mrb[16].mxu0 }
 0x382   : > { %v2022_v19 = vmul.f32 0.35355338, %v1878_v17  ;;  %v8286_v20 = vpop.f32.mrb[5].mxu1  ;;  %v8298_v21 = vpop.f32.mrb[17].mxu0  ;;  %v2024_v24 = vmul.f32 0.35355338, %v1970_v18 }
 0x383   : > { %v1881_v22 = vpop.f32.mrb[6].mxu1  ;;  %v1973_v23 = vpop.f32.mrb[18].mxu0 }
 0x384   : > { %v8287_v25 = vpop.f32.mrb[7].mxu1  ;;  %v8299_v26 = vpop.f32.mrb[19].mxu0  ;;  %v2026_v27 = vsel %vm1837_vm2, %v2022_v19, -inf  ;;  %v2032_v28 = vsel %vm1837_vm2, %v2024_v24, -inf }
 0x385   : > { %2027 = vmax.xlane.f32.xlu0 %v2026_v27 }
 0x389   : > { %v1924_v30 = vpop.f32.mrb[8].mxu1  ;;  %2033 = vmax.xlane.f32.xlu0 %v2032_v28 }
 0x38a   : > { %v2023_v31 = vmul.f32 0.35355338, %v1924_v30  ;;  %v8292_v32 = vpop.f32.mrb[9].mxu1 }
 0x38b   : > { %v1927_v33 = vpop.f32.mrb[10].mxu1 }
 0x38c   : > { %v8293_v34 = vpop.f32.mrb[11].mxu1  ;;  %v2029_v35 = vsel %vm1837_vm2, %v2023_v31, -inf }
 0x38d   : > { %2030 = vmax.xlane.f32.xlu1 %v2029_v35 }
 0x391   : > { %v2016_v36 = vpop.f32.mrb[12].mxu1 }
 0x392   : > { %v2025_v37 = vmul.f32 0.35355338, %v2016_v36  ;;  %v8304_v38 = vpop.f32.mrb[13].mxu1 }
 0x393   : > { %v2019_v39 = vpop.f32.mrb[14].mxu1 }
 0x394   : > { %v8305_v40 = vpop.f32.mrb[15].mxu1  ;;  %v2035_v41 = vsel %vm1837_vm2, %v2025_v37, -inf }
 0x395   : > { %2036 = vmax.xlane.f32.xlu0 %v2035_v41 }
 0x39e   : > { %1685 = vrot.lane.b32.xlu1 %v9363_v29, %s10611_s23 }
 0x412   : > { %v2028_v44 = vpop.xlane.xlu0 %2027 }
 0x413   : > { %v2038_v46 = vsub.f32 %v2022_v19, %v2028_v44 }
 0x415   : > { %v2042_v47 = vmul.f32 1.442695, %v2038_v46 }
 0x416   : > { %v2034_v29 = vpop.xlane.xlu0 %2033 }
 0x417   : > { %8833 = vpow2.f32 %v2042_v47  ;;  %v2040_v59 = vsub.f32 %v2024_v24, %v2034_v29 }
 0x419   : > { %v2046_v62 = vmul.f32 1.442695, %v2040_v59 }
 0x41a   : > { %v2031_v48 = vpop.xlane.xlu1 %2030 }
 0x41b   : > { %v2039_v50 = vsub.f32 %v2023_v31, %v2031_v48 }
 0x41d   : > { %v2044_v51 = vmul.f32 1.442695, %v2039_v50 }
 0x41f   : > { %8835 = vpow2.f32 %v2044_v51 }
 0x421   : > { %v9453_v53 = vpop.eup %8833 }
 0x422   : > { %v2050_v54 = vsel %vm1837_vm2, %v9453_v53, 0.0  ;;  %v2037_v57 = vpop.xlane.xlu0 %2036 }
 0x423   : > { %2051 = vadd.xlane.f32.xlu1 %v2050_v54  ;;  %v2041_v58 = vsub.f32 %v2025_v37, %v2037_v57 }
 0x425   : > { %v2048_v60 = vmul.f32 1.442695, %v2041_v58 }
 0x427   : > { %8837 = vpow2.f32 %v2048_v60 }
 0x428   : > { %8839 = vpow2.f32 %v2046_v62 }
 0x429   : > { %v9457_v55 = vpop.eup %8835 }
 0x42a   : > { %v2053_v56 = vsel %vm1837_vm2, %v9457_v55, 0.0 }
 0x42b   : > { %2054 = vadd.xlane.f32.xlu0 %v2053_v56 }
 0x431   : > { %v9467_v0 = vpop.eup %8837 }
 0x432   : > { %v2059_v1 = vsel %vm1837_vm2, %v9467_v0, 0.0 }
 0x434   : > { %1689 = vrot.lane.b32.xlu1 %v9387_v49, %s10611_s23  ;;  %v9471_v49 = vpop.eup %8839 }
 0x438   : > { %1691 = vrot.lane.b32.xlu1 %v9377_v42, %s10611_s23  ;;  %v2056_v42 = vsel %vm1837_vm2, %v9471_v49, 0.0 }
 0x441   : > { %1687 = vrot.lane.b32.xlu0 %v9379_v43, %s10611_s23  ;;  %v1686_v43 = vpop.permute.xlu1 %1685 }
 0x45c   : > { %2060 = vadd.xlane.f32.xlu1 %v2059_v1 }
 0x460   : > { %2057 = vadd.xlane.f32.xlu0 %v2056_v42 }
 0x4b0   : > { %v2052_v2 = vpop.xlane.xlu1 %2051 }
 0x4b1   : > { %8841 = vrcp.f32 %v2052_v2 }
 0x4b4   : > { %v1690_v3 = vpop.permute.xlu1 %1689 }
 0x4b5   : > { %v1697_v5 = vcombine.low %v1686_v43, %v1690_v3  ;;  %v1698_v6 = vcombine.high %v1686_v43, %v1690_v3 }
 0x4b7   : > { %v1705_v11 = vrot.slane %v1697_v5, %v9381_v45  ;;  %v1712_v12 = vrot.slane %v1698_v6, %v9381_v45 }
 0x4b8   : > { %v2055_v4 = vpop.xlane.xlu0 %2054  ;;  %v1692_v7 = vpop.permute.xlu1 %1691 }
 0x4b9   : > { %8843 = vrcp.f32 %v2055_v4 }
 0x4bb   : > { %v8842_v36 = vpop.eup %8841 }
 0x4bc   : > { %v1688_v8 = vpop.permute.xlu0 %1687  ;;  %v2066_v50 = vmul.f32 %v8842_v36, %v9453_v53 }
 0x4bd   : > { %v1713_v9 = vcombine.low %v1688_v8, %v1692_v7  ;;  %v1714_v10 = vcombine.high %v1688_v8, %v1692_v7 }
 0x4be   : > { %v2070_v60 = vpack.c.bf16 %v2066_v50, %v2066_v50 }
 0x4bf   : > { %v1721_v13 = vrot.slane %v1713_v9, %v9381_v45  ;;  %v1728_v14 = vrot.slane %v1714_v10, %v9381_v45 }
 0x4c1   : > { %v1729_v15 = vcombine.low %v1705_v11, %v1721_v13  ;;  %v1730_v16 = vcombine.high %v1705_v11, %v1721_v13  ;;  %v1745_v17 = vcombine.low %v1712_v12, %v1728_v14  ;;  %v1746_v18 = vcombine.high %v1712_v12, %v1728_v14 }
 0x4c3   : > { %v1737_v19 = vrot.slane %v1729_v15, %v9393_v52  ;;  %v1744_v20 = vrot.slane %v1730_v16, %v9393_v52  ;;  %v1753_v21 = vrot.slane %v1745_v17, %v9393_v52  ;;  %v1760_v22 = vrot.slane %v1746_v18, %v9393_v52  ;;  %v8844_v41 = vpop.eup %8843 }
 0x4c4   : > { %v2067_v51 = vmul.f32 %v8844_v41, %v9457_v55 }
 0x4c5   : > { %v1765_v23 = vcombine.low %v1737_v19, %v1744_v20  ;;  %v7845_v24 = vcombine.high %v1737_v19, %v1744_v20  ;;  %v1781_v25 = vcombine.low %v1753_v21, %v1760_v22  ;;  %v7846_v26 = vcombine.high %v1753_v21, %v1760_v22 }
 0x4c6   : > { %v2071_v62 = vpack.c.bf16 %v2067_v51, %v2067_v51 }
 0x4c7   : > { %v1772_v27 = vrot.slane %v1765_v23, %v9381_v45  ;;  %v1780_v28 = vrot.slane %v7845_v24, %v9381_v45  ;;  %v1788_v30 = vrot.slane %v1781_v25, %v9381_v45  ;;  %v1796_v31 = vrot.slane %v7846_v26, %v9381_v45 }
 0x4c9   : > { %v1797_v32 = vcombine.low %v1772_v27, %v1780_v28  ;;  %v1813_v33 = vcombine.low %v1788_v30, %v1796_v31  ;;  %v1798_v34 = vcombine.high %v1772_v27, %v1780_v28  ;;  %v1814_v35 = vcombine.high %v1788_v30, %v1796_v31 }
 0x4cb   : > { %v1805_v37 = vrot.slane %v1797_v32, %v9393_v52  ;;  %v1821_v38 = vrot.slane %v1813_v33, %v9393_v52  ;;  %v1812_v39 = vrot.slane %v1798_v34, %v9393_v52  ;;  %v1828_v40 = vrot.slane %v1814_v35, %v9393_v52  ;;  %v8784_v34 = vld [vmem:[%s10577_s13] sm:$0xff]  }
 0x4cd   : > { %v1829_v44 = vcombine.low %v1805_v37, %v1821_v38  ;;  %v1830_v46 = vcombine.high %v1805_v37, %v1821_v38  ;;  %v1831_v47 = vcombine.low %v1812_v39, %v1828_v40  ;;  %v1832_v48 = vcombine.high %v1812_v39, %v1828_v40 }
 0x4cf   : > { %v1833_v54 = vpack.c.bf16 %v1829_v44, %v1829_v44  ;;  %v1834_v56 = vpack.c.bf16 %v1830_v46, %v1830_v46  ;;  %v1835_v58 = vpack.c.bf16 %v1831_v47, %v1831_v47  ;;  %v1836_v59 = vpack.c.bf16 %v1832_v48, %v1832_v48  ;;  %v8785_v46 = vld [vmem:[%s10577_s13 + $0x8] sm:$0xff]  }
 0x4d1   : > { %v2079_v29 = vsel %vm2077_vm3, %v1833_v54, 0  ;;  %v2125_v57 = vsel %vm2077_vm3, %v1834_v56, 0  ;;  %v2171_v53 = vsel %vm2077_vm3, %v1835_v58, 0  ;;  %v2217_v55 = vsel %vm2077_vm3, %v1836_v59, 0 }
 0x4d2   : > { %8307 = vmatpush3.bf16.msra.mxu0 %v2079_v29  ;;  %8313 = vmatpush3.bf16.msra.mxu1 %v2125_v57 }
 0x4d3   : > { %8318 = vmatprep.subr.bf16.mxu0 %v8981_v61  ;;  %8324 = vmatprep.subr.bf16.mxu1 %v8981_v61 }
 0x4d5   : > { %8309 = vmatmul.mubr.msk.bf16.vlgmr.msra.gmra.mrb[20].mxu0 %vm1837_vm2, %v2070_v60  ;;  %8315 = vmatmul.mubr.msk.bf16.vlgmr.msra.gmra.mrb[16].mxu1 %vm1837_vm2, %v2071_v62 }
 0x4d6   : > { %8319 = vmatpush3.bf16.msra.mxu0 %v2171_v53  ;;  %8325 = vmatpush3.bf16.msra.mxu1 %v2217_v55 }
 0x4d7   : > { %8326 = vmatprep.mubr.msk.bf16.mxu1 %vm8982_vm0, %v8981_v61  ;;  %8320 = vmatprep.mubr.msk.bf16.mxu0 %vm8982_vm0, %v8981_v61 }
 0x4d8   : > { %8330 = vmatprep.subr.bf16.mxu0 %v8981_v61  ;;  %8338 = vmatprep.subr.bf16.mxu1 %v8981_v61 }
 0x4e9   : > { %v2061_v1 = vpop.xlane.xlu1 %2060 }
 0x4ea   : > { %8845 = vrcp.f32 %v2061_v1 }
 0x4ed   : > { %v2058_v42 = vpop.xlane.xlu0 %2057 }
 0x4ee   : > { %8847 = vrcp.f32 %v2058_v42 }
 0x4f4   : > { %v8846_v43 = vpop.eup %8845 }
 0x4f5   : > { %v2069_v2 = vmul.f32 %v8846_v43, %v9467_v0 }
 0x4f7   : > { %v2073_v3 = vpack.c.bf16 %v2069_v2, %v2069_v2 }
 0x4f8   : > { %v8848_v4 = vpop.eup %8847 }
 0x4f9   : > { %v2068_v5 = vmul.f32 %v8848_v4, %v9471_v49  ;;  %8327 = vmatmul.mubr.msk.bf16.vlgmr.msra.gmra.mrb[20].mxu1 %vm1837_vm2, %v2073_v3 }
 0x4fa   : > { %8342 = vmatprep.mubr.msk.bf16.mxu1 %vm8982_vm0, %v8981_v61 }
 0x4fb   : > { %v2072_v6 = vpack.c.bf16 %v2068_v5, %v2068_v5 }
 0x4fd   : > { %8321 = vmatmul.mubr.msk.bf16.vlgmr.msra.gmra.mrb[24].mxu0 %vm1837_vm2, %v2072_v6 }
 0x4fe   : > { %8334 = vmatprep.mubr.msk.bf16.mxu0 %vm8982_vm0, %v8981_v61  ;;  %8331 = vmatpush3.bf16.msra.mxu0 %v8784_v34 }
 0x4ff   : > { %8332 = vmatprep.subr.bf16.mxu0 %v8981_v61 }
 0x502   : > { %8333 = vmatpush3.bf16.msra.mxu0 %v8785_v46 }
 0x503   : > { %8346 = vmatprep.subr.bf16.mxu0 %v8981_v61 }
 0x5a8   : > { %v2115_v7 = vpop.f32.mrb[20].mxu0  ;;  %v2161_v8 = vpop.f32.mrb[16].mxu1 }
 0x5a9   : > { %v8310_v9 = vpop.f32.mrb[21].mxu0  ;;  %v8316_v10 = vpop.f32.mrb[17].mxu1 }
 0x5aa   : > { %v2118_v0 = vpop.f32.mrb[22].mxu0  ;;  %v2164_v11 = vpop.f32.mrb[18].mxu1  ;;  %v8787_v9 = vld [vmem:[%s10655_s28 + $0x8] sm:$0xff]   ;;  %v7857_v10 = vld [vmem:[%s10578_s14] ss:$0 sm:$0xff] }
 0x5ab   : > { %v8311_v12 = vpop.f32.mrb[23].mxu0  ;;  %v8317_v13 = vpop.f32.mrb[19].mxu1 }
 0x5cc   : > { %v2253_v49 = vpop.f32.mrb[20].mxu1 }
 0x5cd   : > { %v2275_v14 = vcombine.low %v2161_v8, %v2253_v49  ;;  %v2276_v15 = vcombine.high %v2161_v8, %v2253_v49  ;;  %v8328_v16 = vpop.f32.mrb[21].mxu1  ;;  %v8786_v8 = vld [vmem:[%s10654_s4] sm:$0xff]   ;;  %s10659_s4 = smov 8  }
 0x5ce   : > { %v2256_v17 = vpop.f32.mrb[22].mxu1  ;;  %8339 = vmatpush3.bf16.msra.mxu1 %v8786_v8  ;;  %v7861_v16 = vld [vmem:[%s10656_s27] ss:$0 sm:$0xff] }
 0x5cf   : > { %v8329_v18 = vpop.f32.mrb[23].mxu1  ;;  %v2283_v24 = vrot.slane %v2275_v14, %v9381_v45  ;;  %v2290_v25 = vrot.slane %v2276_v15, %v9381_v45  ;;  %8340 = vmatprep.subr.bf16.mxu1 %v8981_v61 }
 0x5d0   : > { %v2207_v19 = vpop.f32.mrb[24].mxu0 }
 0x5d1   : > { %v2259_v20 = vcombine.low %v2115_v7, %v2207_v19  ;;  %v2260_v21 = vcombine.high %v2115_v7, %v2207_v19  ;;  %v8322_v22 = vpop.f32.mrb[25].mxu0 }
 0x5d2   : > { %v2210_v23 = vpop.f32.mrb[26].mxu0  ;;  %8341 = vmatpush3.bf16.msra.mxu1 %v8787_v9 }
 0x5d3   : > { %v2267_v26 = vrot.slane %v2259_v20, %v9381_v45  ;;  %v2274_v27 = vrot.slane %v2260_v21, %v9381_v45  ;;  %v8323_v28 = vpop.f32.mrb[27].mxu0  ;;  %8352 = vmatprep.subr.bf16.mxu1 %v8981_v61 }
 0x5d5   : > { %v2291_v30 = vcombine.low %v2267_v26, %v2283_v24  ;;  %v2292_v31 = vcombine.high %v2267_v26, %v2283_v24  ;;  %v2307_v32 = vcombine.low %v2274_v27, %v2290_v25  ;;  %v2308_v33 = vcombine.high %v2274_v27, %v2290_v25 }
 0x5d7   : > { %v2299_v35 = vrot.slane %v2291_v30, %v9393_v52  ;;  %v2306_v36 = vrot.slane %v2292_v31, %v9393_v52  ;;  %v2315_v37 = vrot.slane %v2307_v32, %v9393_v52  ;;  %v2322_v38 = vrot.slane %v2308_v33, %v9393_v52 }
 0x5d9   : > { %v2327_v39 = vcombine.low %v2299_v35, %v2306_v36  ;;  %v7855_v40 = vcombine.high %v2299_v35, %v2306_v36  ;;  %v2343_v41 = vcombine.low %v2315_v37, %v2322_v38  ;;  %v7856_v44 = vcombine.high %v2315_v37, %v2322_v38 }
 0x5db   : > { %v2334_v47 = vrot.slane %v2327_v39, %v9381_v45  ;;  %v2342_v48 = vrot.slane %v7855_v40, %v9381_v45  ;;  %v2350_v50 = vrot.slane %v2343_v41, %v9381_v45  ;;  %v2358_v51 = vrot.slane %v7856_v44, %v9381_v45 }
 0x5dd   : > { %v2360_v54 = vcombine.high %v2334_v47, %v2342_v48  ;;  %v2376_v56 = vcombine.high %v2350_v50, %v2358_v51  ;;  %v2359_v29 = vcombine.low %v2334_v47, %v2342_v48  ;;  %v2375_v57 = vcombine.low %v2350_v50, %v2358_v51 }
 0x5df   : > { %v2374_v58 = vrot.slane %v2360_v54, %v9393_v52  ;;  %v2390_v59 = vrot.slane %v2376_v56, %v9393_v52  ;;  %v2367_v60 = vrot.slane %v2359_v29, %v9393_v52  ;;  %v2383_v62 = vrot.slane %v2375_v57, %v9393_v52 }
 0x5e1   : > { %v2393_v53 = vcombine.low %v2374_v58, %v2390_v59  ;;  %v2392_v55 = vcombine.high %v2367_v60, %v2383_v62  ;;  %v2394_v1 = vcombine.high %v2374_v58, %v2390_v59  ;;  %v2391_v42 = vcombine.low %v2367_v60, %v2383_v62 }
 0x5e3   : > { %2400 = vrot.lane.b32.xlu1 %v2393_v53, %s10605_s25  ;;  %2396 = vrot.lane.b32.xlu0 %v2392_v55, %s10603_s29  ;;  %s10657_s25 = smov 104   ;;  %s10660_s29 = smov 24  }
 0x5e7   : > { %2404 = vrot.lane.b32.xlu0 %v2394_v1, %s10601_s1  ;;  %s10666_s1 = smov 64  }
 0x655   : > { %v2397_v43 = vpop.permute.xlu0 %2396  ;;  %v2401_v2 = vpop.permute.xlu1 %2400 }
 0x656   : > { %v2407_v3 = vsel %vm1837_vm2, %v2391_v42, %v2397_v43 }
 0x657   : > { %v2409_v5 = vsel %vm2408_vm4, %v2407_v3, %v2401_v2 }
 0x659   : > { %v2405_v4 = vpop.permute.xlu0 %2404 }
 0x65a   : > { %v2411_v6 = vsel %vm2410_vm5, %v2409_v5, %v2405_v4 }
 0x65b   : > { %v2416_v7 = vpack.c.bf16 %v2411_v6, %v2411_v6 }
 0x65d   : > { %8335 = vmatmul.mubr.msk.bf16.vlgmr.msra.gmra.mrb[28].mxu0 %vm1274_vm1, %v2416_v7 }
 0x65e   : > { %8348 = vmatprep.mubr.msk.bf16.mxu0 %vm8982_vm0, %v8981_v61 }
 0x730   : > { %v2473_v0 = vpop.f32.mrb[28].mxu0 }
 0x731   : > { %v2474_v11 = vadd.f32 %v7857_v10, %v2473_v0  ;;  %v8336_v12 = vpop.f32.mrb[29].mxu0 }
 0x732   : > { %v2476_v13 = vpop.f32.mrb[30].mxu0 }
 0x733   : > { %v9560_v49 = vadd.f32 %v2474_v11, %v9334_v63  ;;  %v8337_v14 = vpop.f32.mrb[31].mxu0 }
 0x735   : > { %v2484_v15 = vpack.c.bf16 %v9560_v49, %v9560_v49 }
 0x737   : > { %8343 = vmatmul.mubr.msk.bf16.vlgmr.msra.gmra.mrb[24].mxu1 %vm1274_vm1, %v2484_v15 }
 0x738   : > { %8354 = vmatprep.mubr.msk.bf16.mxu1 %vm8982_vm0, %v8981_v61 }
 0x80a   : > { %v2541_v17 = vpop.f32.mrb[24].mxu1 }
 0x80b   : > { %v9570_v18 = vadd.f32 %v7861_v16, %v2541_v17  ;;  %v8344_v19 = vpop.f32.mrb[25].mxu1 }
 0x80c   : > { %v2544_v20 = vpop.f32.mrb[26].mxu1 }
 0x80d   : > { %2551 = vrot.lane.b32.xlu0 %v9570_v18, %s10615_s24  ;;  %2548 = vrot.lane.b32.xlu1 %v9570_v18, %s10613_s2  ;;  %v8345_v63 = vpop.f32.mrb[27].mxu1  ;;  %s10664_s24 = smov 120  }
 0x811   : > { %2697 = vrot.lane.b32.xlu0 %v9570_v18, %s10611_s23  ;;  %2554 = vrot.lane.b32.xlu1 %v9570_v18, %s10657_s25 }
 0x87f   : > { %v9580_v21 = vpop.permute.xlu0 %2551  ;;  %v9582_v22 = vpop.permute.xlu1 %2548 }
 0x880   : > { %2701 = vrot.lane.b32.xlu0 %v9580_v21, %s10611_s23  ;;  %2699 = vrot.lane.b32.xlu1 %v9582_v22, %s10611_s23  ;;  %v2557_v26 = vcombine.low %v9570_v18, %v9580_v21  ;;  %v2558_v27 = vcombine.high %v9570_v18, %v9580_v21 }
 0x882   : > { %v2565_v32 = vrot.slane %v2557_v26, %v9381_v45  ;;  %v2572_v33 = vrot.slane %v2558_v27, %v9381_v45 }
 0x883   : > { %v9588_v23 = vpop.permute.xlu1 %2554  ;;  %v2698_v28 = vpop.permute.xlu0 %2697 }
 0x884   : > { %2703 = vrot.lane.b32.xlu1 %v9588_v23, %s10611_s23  ;;  %v2573_v24 = vcombine.low %v9582_v22, %v9588_v23  ;;  %v2574_v25 = vcombine.high %v9582_v22, %v9588_v23  ;;  %s10669_s23 = sld [smem:[#allocation6_spill]] }
 0x886   : > { %v2581_v30 = vrot.slane %v2573_v24, %v9381_v45  ;;  %v2588_v31 = vrot.slane %v2574_v25, %v9381_v45 }
 0x888   : > { %v2589_v36 = vcombine.low %v2565_v32, %v2581_v30  ;;  %v2590_v37 = vcombine.high %v2565_v32, %v2581_v30  ;;  %v2605_v38 = vcombine.low %v2572_v33, %v2588_v31  ;;  %v2606_v39 = vcombine.high %v2572_v33, %v2588_v31 }
 0x88a   : > { %v2597_v48 = vrot.slane %v2589_v36, %v9393_v52  ;;  %v2604_v50 = vrot.slane %v2590_v37, %v9393_v52  ;;  %v2613_v51 = vrot.slane %v2605_v38, %v9393_v52  ;;  %v2620_v54 = vrot.slane %v2606_v39, %v9393_v52 }
 0x88c   : > { %v2625_v55 = vcombine.low %v2597_v48, %v2604_v50  ;;  %v7865_v1 = vcombine.high %v2597_v48, %v2604_v50  ;;  %v2641_v42 = vcombine.low %v2613_v51, %v2620_v54  ;;  %v7866_v43 = vcombine.high %v2613_v51, %v2620_v54 }
 0x88e   : > { %v2632_v10 = vrot.slane %v2625_v55, %v9381_v45  ;;  %v2640_v0 = vrot.slane %v7865_v1, %v9381_v45  ;;  %v2648_v11 = vrot.slane %v2641_v42, %v9381_v45  ;;  %v2656_v12 = vrot.slane %v7866_v43, %v9381_v45 }
 0x890   : > { %v2657_v26 = vcombine.low %v2632_v10, %v2640_v0  ;;  %v2673_v27 = vcombine.low %v2648_v11, %v2656_v12 }
 0x892   : > { %v2681_v36 = vrot.slane %v2673_v27, %v9393_v52 }
 0x8f2   : > { %v2702_v34 = vpop.permute.xlu0 %2701  ;;  %v2700_v35 = vpop.permute.xlu1 %2699 }
 0x8f3   : > { %v2709_v40 = vcombine.low %v2698_v28, %v2702_v34  ;;  %v2710_v41 = vcombine.high %v2698_v28, %v2702_v34 }
 0x8f5   : > { %v2717_v56 = vrot.slane %v2709_v40, %v9381_v45  ;;  %v2724_v29 = vrot.slane %v2710_v41, %v9381_v45  ;;  %v2658_v41 = vcombine.high %v2632_v10, %v2640_v0 }
 0x8f6   : > { %v2704_v44 = vpop.permute.xlu1 %2703 }
 0x8f7   : > { %v2725_v46 = vcombine.low %v2700_v35, %v2704_v44  ;;  %v2726_v47 = vcombine.high %v2700_v35, %v2704_v44  ;;  %v2665_v35 = vrot.slane %v2657_v26, %v9393_v52 }
 0x8f9   : > { %v2733_v57 = vrot.slane %v2725_v46, %v9381_v45  ;;  %v2740_v58 = vrot.slane %v2726_v47, %v9381_v45  ;;  %v2689_v44 = vcombine.low %v2665_v35, %v2681_v36  ;;  %v2690_v46 = vcombine.high %v2665_v35, %v2681_v36 }
 0x8fa   : > { %v2674_v47 = vcombine.high %v2648_v11, %v2656_v12 }
 0x8fb   : > { %v2741_v59 = vcombine.low %v2717_v56, %v2733_v57  ;;  %v2742_v60 = vcombine.high %v2717_v56, %v2733_v57  ;;  %v2757_v62 = vcombine.low %v2724_v29, %v2740_v58  ;;  %v2758_v53 = vcombine.high %v2724_v29, %v2740_v58 }
 0x8fc   : > { %v2693_v51 = vpack.c.bf16 %v2689_v44, %v2689_v44  ;;  %v2694_v54 = vpack.c.bf16 %v2690_v46, %v2690_v46  ;;  %v2672_v56 = vrot.slane %v2658_v41, %v9393_v52  ;;  %v2688_v29 = vrot.slane %v2674_v47, %v9393_v52 }
 0x8fd   : > { %v2749_v2 = vrot.slane %v2741_v59, %v9393_v52  ;;  %v2756_v3 = vrot.slane %v2742_v60, %v9393_v52  ;;  %v2765_v4 = vrot.slane %v2757_v62, %v9393_v52  ;;  %v2772_v5 = vrot.slane %v2758_v53, %v9393_v52 }
 0x8fe   : > { %v2691_v59 = vcombine.low %v2672_v56, %v2688_v29  ;;  %v2692_v60 = vcombine.high %v2672_v56, %v2688_v29 }
 0x8ff   : > { %v2777_v6 = vcombine.low %v2749_v2, %v2756_v3  ;;  %v7867_v7 = vcombine.high %v2749_v2, %v2756_v3  ;;  %v2793_v8 = vcombine.low %v2765_v4, %v2772_v5  ;;  %v7868_v9 = vcombine.high %v2765_v4, %v2772_v5 }
 0x900   : > { %v2695_v62 = vpack.c.bf16 %v2691_v59, %v2691_v59  ;;  %v2696_v53 = vpack.c.bf16 %v2692_v60, %v2692_v60 }
 0x901   : > { %v2784_v13 = vrot.slane %v2777_v6, %v9381_v45  ;;  %v2792_v14 = vrot.slane %v7867_v7, %v9381_v45  ;;  %v2800_v15 = vrot.slane %v2793_v8, %v9381_v45  ;;  %v2808_v16 = vrot.slane %v7868_v9, %v9381_v45 }
 0x903   : > { %v2809_v17 = vcombine.low %v2784_v13, %v2792_v14  ;;  %v2825_v19 = vcombine.low %v2800_v15, %v2808_v16  ;;  %v2810_v20 = vcombine.high %v2784_v13, %v2792_v14  ;;  %v2826_v63 = vcombine.high %v2800_v15, %v2808_v16 }
 0x905   : > { %v2817_v24 = vrot.slane %v2809_v17, %v9393_v52  ;;  %v2833_v25 = vrot.slane %v2825_v19, %v9393_v52  ;;  %v2824_v31 = vrot.slane %v2810_v20, %v9393_v52  ;;  %v2840_v32 = vrot.slane %v2826_v63, %v9393_v52 }
 0x907   : > { %v2841_v28 = vcombine.low %v2817_v24, %v2833_v25  ;;  %v2842_v30 = vcombine.high %v2817_v24, %v2833_v25  ;;  %v2843_v39 = vcombine.low %v2824_v31, %v2840_v32  ;;  %v2844_v40 = vcombine.high %v2824_v31, %v2840_v32 }
 0x909   : > { %v2845_v33 = vpack.c.bf16 %v2841_v28, %v2841_v28  ;;  %v2846_v34 = vpack.c.bf16 %v2842_v30, %v2842_v30  ;;  %v2847_v48 = vpack.c.bf16 %v2843_v39, %v2843_v39  ;;  %v2848_v50 = vpack.c.bf16 %v2844_v40, %v2844_v40 }
 0x90b   : > { %v3005_v37 = vsel %vm1837_vm2, %v2845_v33, 0  ;;  %v3051_v38 = vsel %vm1837_vm2, %v2846_v34, 0  ;;  %v3097_v57 = vsel %vm1837_vm2, %v2847_v48, 0  ;;  %v3143_v58 = vsel %vm1837_vm2, %v2848_v50, 0 }
 0x90c   : > { %8347 = vmatpush3.bf16.xpose.msra.mxu0 %v3005_v37  ;;  %8353 = vmatpush3.bf16.xpose.msra.mxu1 %v3051_v38 }
 0x90d   : > { %8358 = vmatprep.subr.bf16.mxu0 %v8981_v61  ;;  %8364 = vmatprep.subr.bf16.mxu1 %v8981_v61 }
 0x913   : > { %8349 = vmatmul.mubr.msk.bf16.vlgmr.msra.gmra.mrb[32].mxu0 %vm1837_vm2, %v2693_v51  ;;  %8355 = vmatmul.mubr.msk.bf16.vlgmr.msra.gmra.mrb[28].mxu1 %vm1837_vm2, %v2694_v54 }
 0x914   : > { %8359 = vmatpush3.bf16.xpose.msra.mxu0 %v3097_v57  ;;  %8365 = vmatpush3.bf16.xpose.msra.mxu1 %v3143_v58 }
 0x915   : > { %8360 = vmatprep.mubr.msk.bf16.mxu0 %vm8982_vm0, %v8981_v61  ;;  %8366 = vmatprep.mubr.msk.bf16.mxu1 %vm8982_vm0, %v8981_v61 }
 0x916   : > { %8370 = vmatprep.subr.bf16.mxu0 %v8981_v61  ;;  %8376 = vmatprep.subr.bf16.mxu1 %v8981_v61 }
 0x91b   : > { %8361 = vmatmul.mubr.msk.bf16.vlgmr.msra.gmra.mrb[36].mxu0 %vm1837_vm2, %v2695_v62  ;;  %8367 = vmatmul.mubr.msk.bf16.vlgmr.msra.gmra.mrb[32].mxu1 %vm1837_vm2, %v2696_v53 }
 0x91c   : > { %8372 = vmatprep.mubr.msk.bf16.mxu0 %vm8982_vm0, %v8981_v61  ;;  %8378 = vmatprep.mubr.msk.bf16.mxu1 %vm8982_vm0, %v8981_v61 }
 0x9e6   : > { %v3041_v55 = vpop.f32.mrb[32].mxu0  ;;  %v3087_v1 = vpop.f32.mrb[28].mxu1 }
 0x9e7   : > { %v3185_v42 = vmul.f32 0.35355338, %v3041_v55  ;;  %v3186_v43 = vmul.f32 0.35355338, %v3087_v1  ;;  %v8350_v2 = vpop.f32.mrb[33].mxu0  ;;  %v8356_v3 = vpop.f32.mrb[29].mxu1 }
 0x9e8   : > { %v3044_v4 = vpop.f32.mrb[34].mxu0  ;;  %v3090_v5 = vpop.f32.mrb[30].mxu1 }
 0x9e9   : > { %v8351_v6 = vpop.f32.mrb[35].mxu0  ;;  %v8357_v7 = vpop.f32.mrb[31].mxu1  ;;  %v3192_v8 = vsel %vm1837_vm2, %v3186_v43, -inf  ;;  %v3189_v9 = vsel %vm1837_vm2, %v3185_v42, -inf }
 0x9ea   : > { %3193 = vmax.xlane.f32.xlu1 %v3192_v8  ;;  %3190 = vmax.xlane.f32.xlu0 %v3189_v9 }
 0x9ee   : > { %v3133_v10 = vpop.f32.mrb[36].mxu0  ;;  %v3179_v0 = vpop.f32.mrb[32].mxu1 }
 0x9ef   : > { %v3187_v11 = vmul.f32 0.35355338, %v3133_v10  ;;  %v8362_v12 = vpop.f32.mrb[37].mxu0  ;;  %v8368_v13 = vpop.f32.mrb[33].mxu1  ;;  %v3188_v16 = vmul.f32 0.35355338, %v3179_v0 }
 0x9f0   : > { %v3136_v14 = vpop.f32.mrb[38].mxu0  ;;  %v3182_v15 = vpop.f32.mrb[34].mxu1 }
 0x9f1   : > { %v8363_v17 = vpop.f32.mrb[39].mxu0  ;;  %v8369_v19 = vpop.f32.mrb[35].mxu1  ;;  %v3195_v20 = vsel %vm1837_vm2, %v3187_v11, -inf  ;;  %v3198_v63 = vsel %vm1837_vm2, %v3188_v16, -inf }
 0x9f2   : > { %3196 = vmax.xlane.f32.xlu0 %v3195_v20 }
 0x9f6   : > { %3199 = vmax.xlane.f32.xlu0 %v3198_v63 }
 0x9fb   : > { %2849 = vrot.lane.b32.xlu1 %v9570_v18, %s10609_s7 }
 0xa77   : > { %v3194_v24 = vpop.xlane.xlu1 %3193  ;;  %v3191_v25 = vpop.xlane.xlu0 %3190 }
 0xa78   : > { %v3202_v26 = vsub.f32 %v3186_v43, %v3194_v24  ;;  %v3201_v27 = vsub.f32 %v3185_v42, %v3191_v25 }
 0xa7a   : > { %v3207_v28 = vmul.f32 1.442695, %v3202_v26  ;;  %v3205_v30 = vmul.f32 1.442695, %v3201_v27 }
 0xa7c   : > { %8849 = vpow2.f32 %v3207_v28 }
 0xa7d   : > { %8851 = vpow2.f32 %v3205_v30 }
 0xa7f   : > { %v3197_v18 = vpop.xlane.xlu0 %3196 }
 0xa80   : > { %v3203_v35 = vsub.f32 %v3187_v11, %v3197_v18 }
 0xa82   : > { %v3209_v37 = vmul.f32 1.442695, %v3203_v35 }
 0xa83   : > { %v3200_v36 = vpop.xlane.xlu0 %3199 }
 0xa84   : > { %v3204_v38 = vsub.f32 %v3188_v16, %v3200_v36  ;;  %8853 = vpow2.f32 %v3209_v37 }
 0xa86   : > { %v9658_v31 = vpop.eup %8849  ;;  %v3211_v39 = vmul.f32 1.442695, %v3204_v38 }
 0xa87   : > { %v9660_v32 = vpop.eup %8851  ;;  %v3216_v33 = vsel %vm1837_vm2, %v9658_v31, 0.0 }
 0xa88   : > { %v3213_v34 = vsel %vm1837_vm2, %v9660_v32, 0.0  ;;  %3217 = vadd.xlane.f32.xlu0 %v3216_v33  ;;  %8855 = vpow2.f32 %v3211_v39 }
 0xa89   : > { %3214 = vadd.xlane.f32.xlu1 %v3213_v34 }
 0xa8e   : > { %v9672_v40 = vpop.eup %8853 }
 0xa8f   : > { %v3219_v41 = vsel %vm1837_vm2, %v9672_v40, 0.0 }
 0xa9a   : > { %2853 = vrot.lane.b32.xlu1 %v9580_v21, %s10609_s7  ;;  %v9676_v21 = vpop.eup %8855 }
 0xa9e   : > { %2855 = vrot.lane.b32.xlu1 %v9588_v23, %s10609_s7  ;;  %2851 = vrot.lane.b32.xlu0 %v9582_v22, %s10609_s7  ;;  %v3222_v23 = vsel %vm1837_vm2, %v9676_v21, 0.0  ;;  %v2850_v22 = vpop.permute.xlu1 %2849  ;;  %s10665_s7 = smov 96  }
 0xabd   : > { %3220 = vadd.xlane.f32.xlu0 %v3219_v41 }
 0xac2   : > { %3223 = vadd.xlane.f32.xlu1 %v3222_v23 }
 0xb15   : > { %v3218_v46 = vpop.xlane.xlu0 %3217 }
 0xb16   : > { %v3215_v44 = vpop.xlane.xlu1 %3214  ;;  %8857 = vrcp.f32 %v3218_v46 }
 0xb17   : > { %8859 = vrcp.f32 %v3215_v44 }
 0xb19   : > { %v2852_v51 = vpop.permute.xlu0 %2851 }
 0xb1a   : > { %v2854_v47 = vpop.permute.xlu1 %2853 }
 0xb1b   : > { %v2861_v48 = vcombine.low %v2850_v22, %v2854_v47  ;;  %v2862_v50 = vcombine.high %v2850_v22, %v2854_v47 }
 0xb1d   : > { %v2869_v57 = vrot.slane %v2861_v48, %v9381_v45  ;;  %v2876_v58 = vrot.slane %v2862_v50, %v9381_v45 }
 0xb1e   : > { %v2856_v54 = vpop.permute.xlu1 %2855 }
 0xb1f   : > { %v2877_v56 = vcombine.low %v2852_v51, %v2856_v54  ;;  %v2878_v29 = vcombine.high %v2852_v51, %v2856_v54 }
 0xb20   : > { %v8858_v15 = vpop.eup %8857 }
 0xb21   : > { %v2885_v59 = vrot.slane %v2877_v56, %v9381_v45  ;;  %v2892_v60 = vrot.slane %v2878_v29, %v9381_v45  ;;  %v8860_v63 = vpop.eup %8859  ;;  %v3230_v30 = vmul.f32 %v8858_v15, %v9658_v31 }
 0xb22   : > { %v3229_v28 = vmul.f32 %v8860_v63, %v9660_v32 }
 0xb23   : > { %v2893_v62 = vcombine.low %v2869_v57, %v2885_v59  ;;  %v2894_v53 = vcombine.high %v2869_v57, %v2885_v59  ;;  %v2909_v55 = vcombine.low %v2876_v58, %v2892_v60  ;;  %v2910_v1 = vcombine.high %v2876_v58, %v2892_v60 }
 0xb24   : > { %v3233_v38 = vpack.c.bf16 %v3229_v28, %v3229_v28  ;;  %v3234_v39 = vpack.c.bf16 %v3230_v30, %v3230_v30 }
 0xb25   : > { %v2901_v42 = vrot.slane %v2893_v62, %v9393_v52  ;;  %v2908_v43 = vrot.slane %v2894_v53, %v9393_v52  ;;  %v2917_v2 = vrot.slane %v2909_v55, %v9393_v52  ;;  %v2924_v3 = vrot.slane %v2910_v1, %v9393_v52 }
 0xb27   : > { %v2929_v4 = vcombine.low %v2901_v42, %v2908_v43  ;;  %v7869_v5 = vcombine.high %v2901_v42, %v2908_v43  ;;  %v2945_v6 = vcombine.low %v2917_v2, %v2924_v3  ;;  %v7870_v7 = vcombine.high %v2917_v2, %v2924_v3 }
 0xb29   : > { %v2936_v8 = vrot.slane %v2929_v4, %v9381_v45  ;;  %v2944_v9 = vrot.slane %v7869_v5, %v9381_v45  ;;  %v2952_v10 = vrot.slane %v2945_v6, %v9381_v45  ;;  %v2960_v0 = vrot.slane %v7870_v7, %v9381_v45 }
 0xb2b   : > { %v2961_v11 = vcombine.low %v2936_v8, %v2944_v9  ;;  %v2977_v12 = vcombine.low %v2952_v10, %v2960_v0  ;;  %v2962_v13 = vcombine.high %v2936_v8, %v2944_v9  ;;  %v2978_v14 = vcombine.high %v2952_v10, %v2960_v0 }
 0xb2d   : > { %v2969_v16 = vrot.slane %v2961_v11, %v9393_v52  ;;  %v2985_v17 = vrot.slane %v2977_v12, %v9393_v52  ;;  %v2976_v19 = vrot.slane %v2962_v13, %v9393_v52  ;;  %v2992_v20 = vrot.slane %v2978_v14, %v9393_v52  ;;  %v8788_v13 = vld [vmem:[%s10577_s13 + $0x10] sm:$0xff]  }
 0xb2f   : > { %v2993_v24 = vcombine.low %v2969_v16, %v2985_v17  ;;  %v2994_v25 = vcombine.high %v2969_v16, %v2985_v17  ;;  %v2995_v26 = vcombine.low %v2976_v19, %v2992_v20  ;;  %v2996_v27 = vcombine.high %v2976_v19, %v2992_v20 }
 0xb31   : > { %v2997_v33 = vpack.c.bf16 %v2993_v24, %v2993_v24  ;;  %v2998_v34 = vpack.c.bf16 %v2994_v25, %v2994_v25  ;;  %v2999_v36 = vpack.c.bf16 %v2995_v26, %v2995_v26  ;;  %v3000_v37 = vpack.c.bf16 %v2996_v27, %v2996_v27  ;;  %v8789_v25 = vld [vmem:[%s10577_s13 + $0x18] sm:$0xff]  }
 0xb33   : > { %v3241_v18 = vsel %vm2077_vm3, %v2997_v33, 0  ;;  %v3287_v35 = vsel %vm2077_vm3, %v2998_v34, 0  ;;  %v3333_v31 = vsel %vm2077_vm3, %v2999_v36, 0  ;;  %v3379_v32 = vsel %vm2077_vm3, %v3000_v37, 0 }
 0xb34   : > { %8371 = vmatpush3.bf16.msra.mxu0 %v3241_v18  ;;  %8377 = vmatpush3.bf16.msra.mxu1 %v3287_v35 }
 0xb35   : > { %8382 = vmatprep.subr.bf16.mxu0 %v8981_v61  ;;  %8388 = vmatprep.subr.bf16.mxu1 %v8981_v61 }
 0xb37   : > { %8373 = vmatmul.mubr.msk.bf16.vlgmr.msra.gmra.mrb[40].mxu0 %vm1837_vm2, %v3233_v38  ;;  %8379 = vmatmul.mubr.msk.bf16.vlgmr.msra.gmra.mrb[36].mxu1 %vm1837_vm2, %v3234_v39 }
 0xb38   : > { %8383 = vmatpush3.bf16.msra.mxu0 %v3333_v31  ;;  %8389 = vmatpush3.bf16.msra.mxu1 %v3379_v32 }
 0xb39   : > { %8384 = vmatprep.mubr.msk.bf16.mxu0 %vm8982_vm0, %v8981_v61  ;;  %8390 = vmatprep.mubr.msk.bf16.mxu1 %vm8982_vm0, %v8981_v61 }
 0xb3a   : > { %8394 = vmatprep.subr.bf16.mxu0 %v8981_v61  ;;  %8402 = vmatprep.subr.bf16.mxu1 %v8981_v61 }
 0xb4a   : > { %v3221_v41 = vpop.xlane.xlu0 %3220 }
 0xb4b   : > { %8861 = vrcp.f32 %v3221_v41 }
 0xb4f   : > { %v3224_v23 = vpop.xlane.xlu1 %3223 }
 0xb50   : > { %8863 = vrcp.f32 %v3224_v23 }
 0xb55   : > { %v8862_v22 = vpop.eup %8861 }
 0xb56   : > { %v3231_v44 = vmul.f32 %v8862_v22, %v9672_v40 }
 0xb58   : > { %v3235_v46 = vpack.c.bf16 %v3231_v44, %v3231_v44 }
 0xb5a   : > { %v8864_v47 = vpop.eup %8863  ;;  %8385 = vmatmul.mubr.msk.bf16.vlgmr.msra.gmra.mrb[44].mxu0 %vm1837_vm2, %v3235_v46 }
 0xb5b   : > { %v3232_v48 = vmul.f32 %v8864_v47, %v9676_v21  ;;  %8398 = vmatprep.mubr.msk.bf16.mxu0 %vm8982_vm0, %v8981_v61  ;;  %8395 = vmatpush3.bf16.msra.mxu0 %v8788_v13 }
 0xb5c   : > { %8396 = vmatprep.subr.bf16.mxu0 %v8981_v61 }
 0xb5d   : > { %v3236_v50 = vpack.c.bf16 %v3232_v48, %v3232_v48 }
 0xb5f   : > { %8391 = vmatmul.mubr.msk.bf16.vlgmr.msra.gmra.mrb[40].mxu1 %vm1837_vm2, %v3236_v50  ;;  %8397 = vmatpush3.bf16.msra.mxu0 %v8789_v25 }
 0xb60   : > { %8406 = vmatprep.mubr.msk.bf16.mxu1 %vm8982_vm0, %v8981_v61  ;;  %8410 = vmatprep.subr.bf16.mxu0 %v8981_v61 }
 0xc0a   : > { %v3277_v51 = vpop.f32.mrb[40].mxu0  ;;  %v3323_v54 = vpop.f32.mrb[36].mxu1 }
 0xc0b   : > { %v8374_v56 = vpop.f32.mrb[41].mxu0  ;;  %v8380_v29 = vpop.f32.mrb[37].mxu1 }
 0xc0c   : > { %v3280_v40 = vpop.f32.mrb[42].mxu0  ;;  %v3326_v57 = vpop.f32.mrb[38].mxu1  ;;  %v8791_v56 = vld [vmem:[%s10661_s15 + $0x8] sm:$0xff]   ;;  %v7886_v29 = vld [vmem:[%s10578_s14 + $0x1] ss:$0 sm:$0xff] }
 0xc0d   : > { %v8375_v58 = vpop.f32.mrb[43].mxu0  ;;  %v8381_v59 = vpop.f32.mrb[39].mxu1 }
 0xc2d   : > { %v3369_v60 = vpop.f32.mrb[44].mxu0 }
 0xc2e   : > { %v3421_v62 = vcombine.low %v3277_v51, %v3369_v60  ;;  %v3422_v21 = vcombine.high %v3277_v51, %v3369_v60  ;;  %v8386_v53 = vpop.f32.mrb[45].mxu0 }
 0xc2f   : > { %v3372_v55 = vpop.f32.mrb[46].mxu0  ;;  %v8792_v53 = vld [vmem:[%s10662_s17] sm:$0xff]  }
 0xc30   : > { %v8387_v1 = vpop.f32.mrb[47].mxu0  ;;  %v3429_v5 = vrot.slane %v3421_v62, %v9381_v45  ;;  %v3436_v6 = vrot.slane %v3422_v21, %v9381_v45  ;;  %v8793_v55 = vld [vmem:[%s10662_s17 + $0x8] sm:$0xff]  }
 0xc31   : > { %v8795_v1 = vld [vmem:[%s10662_s17 + $0x18] sm:$0xff]  }
 0xc32   : > { %v3415_v42 = vpop.f32.mrb[40].mxu1 }
 0xc33   : > { %v3437_v43 = vcombine.low %v3323_v54, %v3415_v42  ;;  %v3438_v2 = vcombine.high %v3323_v54, %v3415_v42  ;;  %v8392_v3 = vpop.f32.mrb[41].mxu1  ;;  %v8790_v54 = vld [vmem:[%s10661_s15] sm:$0xff]  }
 0xc34   : > { %v3418_v4 = vpop.f32.mrb[42].mxu1  ;;  %8403 = vmatpush3.bf16.msra.mxu1 %v8790_v54  ;;  %v8796_v42 = vld [vmem:[%s10662_s17 + $0x20] sm:$0xff]   ;;  %v8799_v3 = vld [vmem:[%s10662_s17 + $0x38] sm:$0xff]  }
 0xc35   : > { %v3445_v7 = vrot.slane %v3437_v43, %v9381_v45  ;;  %v3452_v8 = vrot.slane %v3438_v2, %v9381_v45  ;;  %v8393_v9 = vpop.f32.mrb[43].mxu1  ;;  %8404 = vmatprep.subr.bf16.mxu1 %v8981_v61  ;;  %v8797_v43 = vld [vmem:[%s10662_s17 + $0x28] sm:$0xff]   ;;  %v8798_v2 = vld [vmem:[%s10662_s17 + $0x30] sm:$0xff]   ;;  %v7890_v4 = vld [vmem:[%s10580_s16] ss:$0 sm:$0xff] }
 0xc37   : > { %v3453_v10 = vcombine.low %v3429_v5, %v3445_v7  ;;  %v3454_v0 = vcombine.high %v3429_v5, %v3445_v7  ;;  %v3469_v11 = vcombine.low %v3436_v6, %v3452_v8  ;;  %v3470_v12 = vcombine.high %v3436_v6, %v3452_v8 }
 0xc38   : > { %8405 = vmatpush3.bf16.msra.mxu1 %v8791_v56 }
 0xc39   : > { %v3461_v14 = vrot.slane %v3453_v10, %v9393_v52  ;;  %v3468_v15 = vrot.slane %v3454_v0, %v9393_v52  ;;  %v3477_v16 = vrot.slane %v3469_v11, %v9393_v52  ;;  %v3484_v17 = vrot.slane %v3470_v12, %v9393_v52  ;;  %8430 = vmatprep.subr.bf16.mxu1 %v8981_v61 }
 0xc3b   : > { %v3489_v19 = vcombine.low %v3461_v14, %v3468_v15  ;;  %v7879_v20 = vcombine.high %v3461_v14, %v3468_v15  ;;  %v3505_v63 = vcombine.low %v3477_v16, %v3484_v17  ;;  %v7880_v24 = vcombine.high %v3477_v16, %v3484_v17 }
 0xc3d   : > { %v3496_v26 = vrot.slane %v3489_v19, %v9381_v45  ;;  %v3504_v27 = vrot.slane %v7879_v20, %v9381_v45  ;;  %v3512_v28 = vrot.slane %v3505_v63, %v9381_v45  ;;  %v3520_v30 = vrot.slane %v7880_v24, %v9381_v45  ;;  %v8800_v20 = vld [vmem:[%s10655_s28 + $0x10] sm:$0xff]   ;;  %v8801_v63 = vld [vmem:[%s10655_s28 + $0x18] sm:$0xff]   ;;  %v7894_v24 = vld [vmem:[%s10582_s18] ss:$0 sm:$0xff] }
 0xc3f   : > { %v3522_v33 = vcombine.high %v3496_v26, %v3504_v27  ;;  %v3538_v34 = vcombine.high %v3512_v28, %v3520_v30  ;;  %v3521_v18 = vcombine.low %v3496_v26, %v3504_v27  ;;  %v3537_v35 = vcombine.low %v3512_v28, %v3520_v30 }
 0xc41   : > { %v3536_v36 = vrot.slane %v3522_v33, %v9393_v52  ;;  %v3552_v37 = vrot.slane %v3538_v34, %v9393_v52  ;;  %v3529_v38 = vrot.slane %v3521_v18, %v9393_v52  ;;  %v3545_v39 = vrot.slane %v3537_v35, %v9393_v52  ;;  %v7908_v18 = vld [vmem:[%s10656_s27 + $0x1] ss:$0 sm:$0xff] }
 0xc43   : > { %v3555_v31 = vcombine.low %v3536_v36, %v3552_v37  ;;  %v3554_v32 = vcombine.high %v3529_v38, %v3545_v39  ;;  %v3556_v41 = vcombine.high %v3536_v36, %v3552_v37  ;;  %v3553_v23 = vcombine.low %v3529_v38, %v3545_v39 }
 0xc45   : > { %3562 = vrot.lane.b32.xlu1 %v3555_v31, %s10658_s3  ;;  %3558 = vrot.lane.b32.xlu0 %v3554_v32, %s10659_s4 }
 0xc49   : > { %3566 = vrot.lane.b32.xlu0 %v3556_v41, %s10660_s29 }
 0xcb7   : > { %v3559_v22 = vpop.permute.xlu0 %3558  ;;  %v3563_v44 = vpop.permute.xlu1 %3562 }
 0xcb8   : > { %v3569_v46 = vsel %vm1837_vm2, %v3553_v23, %v3559_v22 }
 0xcb9   : > { %v3570_v48 = vsel %vm2408_vm4, %v3569_v46, %v3563_v44 }
 0xcbb   : > { %v3567_v47 = vpop.permute.xlu0 %3566 }
 0xcbc   : > { %v3571_v50 = vsel %vm2410_vm5, %v3570_v48, %v3567_v47 }
 0xcbd   : > { %v3577_v51 = vpack.c.bf16 %v3571_v50, %v3571_v50 }
 0xcbf   : > { %8399 = vmatmul.mubr.msk.bf16.vlgmr.msra.gmra.mrb[48].mxu0 %vm1274_vm1, %v3577_v51 }
 0xcc0   : > { %8426 = vmatprep.mubr.msk.bf16.mxu0 %vm8982_vm0, %v8981_v61  ;;  %8411 = vmatpush3.bf16.msra.mxu0 %v8792_v53 }
 0xcc1   : > { %8412 = vmatprep.subr.bf16.mxu0 %v8981_v61 }
 0xcc4   : > { %8413 = vmatpush3.bf16.msra.mxu0 %v8793_v55 }
 0xcc5   : > { %8414 = vmatprep.subr.bf16.mxu0 %v8981_v61 }
 0xd92   : > { %v3635_v40 = vpop.f32.mrb[48].mxu0 }
 0xd93   : > { %v3636_v57 = vadd.f32 %v7886_v29, %v3635_v40  ;;  %v8400_v58 = vpop.f32.mrb[49].mxu0 }
 0xd94   : > { %v3638_v59 = vpop.f32.mrb[50].mxu0 }
 0xd95   : > { %v3641_v60 = vadd.f32 %v3636_v57, %v9560_v49  ;;  %v8401_v62 = vpop.f32.mrb[51].mxu0  ;;  %v8794_v49 = vld [vmem:[%s10662_s17 + $0x10] sm:$0xff]  }
 0xd96   : > { %8415 = vmatpush3.bf16.msra.mxu0 %v8794_v49 }
 0xd97   : > { %v3646_v21 = vpack.c.bf16 %v3641_v60, %v3641_v60  ;;  %8416 = vmatprep.subr.bf16.mxu0 %v8981_v61 }
 0xd99   : > { %8407 = vmatmul.mubr.msk.bf16.vlgmr.msra.gmra.mrb[44].mxu1 %vm1274_vm1, %v3646_v21 }
 0xd9a   : > { %8434 = vmatprep.mubr.msk.bf16.mxu1 %vm8982_vm0, %v8981_v61  ;;  %8417 = vmatpush3.bf16.msra.mxu0 %v8795_v1 }
 0xd9b   : > { %8418 = vmatprep.subr.bf16.mxu0 %v8981_v61  ;;  %8431 = vmatpush3.bf16.msra.mxu1 %v8800_v20 }
 0xd9c   : > { %8432 = vmatprep.subr.bf16.mxu1 %v8981_v61 }
 0xd9e   : > { %8419 = vmatpush3.bf16.msra.mxu0 %v8796_v42 }
 0xd9f   : > { %8420 = vmatprep.subr.bf16.mxu0 %v8981_v61  ;;  %8433 = vmatpush3.bf16.msra.mxu1 %v8801_v63 }
 0xda0   : > { %8438 = vmatprep.subr.bf16.mxu1 %v8981_v61 }
 0xda2   : > { %8421 = vmatpush3.bf16.msra.mxu0 %v8797_v43 }
 0xda3   : > { %8422 = vmatprep.subr.bf16.mxu0 %v8981_v61 }
 0xda6   : > { %8423 = vmatpush3.bf16.msra.mxu0 %v8798_v2 }
 0xda7   : > { %8424 = vmatprep.subr.bf16.mxu0 %v8981_v61 }
 0xdaa   : > { %8425 = vmatpush3.bf16.msra.mxu0 %v8799_v3 }
 0xdab   : > { %8456 = vmatprep.subr.bf16.mxu0 %v8981_v61 }
 0xe6c   : > { %v3703_v5 = vpop.f32.mrb[44].mxu1 }
 0xe6d   : > { %v3704_v6 = vadd.f32 %v7890_v4, %v3703_v5  ;;  %v8408_v7 = vpop.f32.mrb[45].mxu1 }
 0xe6e   : > { %v3706_v8 = vpop.f32.mrb[46].mxu1 }
 0xe6f   : > { %v3709_v9 = vmul.f32 %v3704_v6, %v3704_v6  ;;  %v8409_v10 = vpop.f32.mrb[47].mxu1 }
 0xe71   : > { %v3710_v0 = vmul.f32 %v3709_v9, %v3704_v6 }
 0xe73   : > { %v3711_v11 = vmul.f32 0.044715, %v3710_v0 }
 0xe75   : > { %v3712_v12 = vadd.f32 %v3711_v11, %v3704_v6 }
 0xe77   : > { %v3713_v13 = vmul.f32 0.7978846, %v3712_v12 }
 0xe79   : > { %8865 = vtanh.f32 %v3713_v13 }
 0xe83   : > { %v8866_v14 = vpop.eup %8865 }
 0xe84   : > { %v3715_v15 = vadd.f32 1.0, %v8866_v14 }
 0xe86   : > { %v3716_v16 = vmul.f32 0.5, %v3715_v15 }
 0xe88   : > { %v3717_v17 = vmul.f32 %v3716_v16, %v3704_v6 }
 0xe8a   : > { %v3734_v19 = vpack.c.bf16 %v3717_v17, %v3717_v17 }
 0xe8c   : > { %8427 = vmatmul.mubr.bf16.vlgmr.msra.gmra.mrb[52].mxu0 %v3734_v19 }
 0xe8d   : > { %8458 = vmatprep.mubr.msk.bf16.mxu0 %vm8982_vm0, %v8981_v61 }
 0xf5f   : > { %v3824_v25 = vpop.f32.mrb[52].mxu0 }
 0xf60   : > { %v3825_v26 = vadd.f32 %v7894_v24, %v3824_v25  ;;  %v8428_v27 = vpop.f32.mrb[53].mxu0 }
 0xf61   : > { %v3827_v28 = vpop.f32.mrb[54].mxu0 }
 0xf62   : > { %v9816_v30 = vadd.f32 %v3825_v26, %v3641_v60  ;;  %v8429_v33 = vpop.f32.mrb[55].mxu0 }
 0xf64   : > { %v3836_v34 = vpack.c.bf16 %v9816_v30, %v9816_v30 }
 0xf66   : > { %8435 = vmatmul.mubr.msk.bf16.vlgmr.msra.gmra.mrb[48].mxu1 %vm1274_vm1, %v3836_v34 }
 0xf67   : > { %8440 = vmatprep.mubr.msk.bf16.mxu1 %vm8982_vm0, %v8981_v61 }
0x1039   : > { %v3894_v35 = vpop.f32.mrb[48].mxu1 }
0x103a   : > { %v9826_v36 = vadd.f32 %v7908_v18, %v3894_v35  ;;  %v8436_v37 = vpop.f32.mrb[49].mxu1 }
0x103b   : > { %v3897_v38 = vpop.f32.mrb[50].mxu1 }
0x103c   : > { %3904 = vrot.lane.b32.xlu0 %v9826_v36, %s10663_s0  ;;  %3901 = vrot.lane.b32.xlu1 %v9826_v36, %s10664_s24  ;;  %v8437_v39 = vpop.f32.mrb[51].mxu1 }
0x1040   : > { %4050 = vrot.lane.b32.xlu0 %v9826_v36, %s10665_s7  ;;  %3907 = vrot.lane.b32.xlu1 %v9826_v36, %s10657_s25 }
0x10ae   : > { %v9836_v31 = vpop.permute.xlu0 %3904  ;;  %v9838_v32 = vpop.permute.xlu1 %3901 }
0x10af   : > { %4054 = vrot.lane.b32.xlu0 %v9836_v31, %s10665_s7  ;;  %4052 = vrot.lane.b32.xlu1 %v9838_v32, %s10665_s7  ;;  %v3910_v44 = vcombine.low %v9826_v36, %v9836_v31  ;;  %v3911_v46 = vcombine.high %v9826_v36, %v9836_v31 }
0x10b1   : > { %v3918_v51 = vrot.slane %v3910_v44, %v9381_v45  ;;  %v3925_v54 = vrot.slane %v3911_v46, %v9381_v45 }
0x10b2   : > { %v9844_v41 = vpop.permute.xlu1 %3907  ;;  %v4051_v47 = vpop.permute.xlu0 %4050 }
0x10b3   : > { %4056 = vrot.lane.b32.xlu1 %v9844_v41, %s10665_s7  ;;  %v3926_v23 = vcombine.low %v9838_v32, %v9844_v41  ;;  %v3927_v22 = vcombine.high %v9838_v32, %v9844_v41 }
0x10b5   : > { %v3934_v48 = vrot.slane %v3926_v23, %v9381_v45  ;;  %v3941_v50 = vrot.slane %v3927_v22, %v9381_v45 }
0x10b7   : > { %v3942_v40 = vcombine.low %v3918_v51, %v3934_v48  ;;  %v3943_v57 = vcombine.high %v3918_v51, %v3934_v48  ;;  %v3958_v58 = vcombine.low %v3925_v54, %v3941_v50  ;;  %v3959_v59 = vcombine.high %v3925_v54, %v3941_v50 }
0x10b9   : > { %v3950_v49 = vrot.slane %v3942_v40, %v9393_v52  ;;  %v3957_v1 = vrot.slane %v3943_v57, %v9393_v52  ;;  %v3966_v42 = vrot.slane %v3958_v58, %v9393_v52  ;;  %v3973_v43 = vrot.slane %v3959_v59, %v9393_v52 }
0x10bb   : > { %v3978_v10 = vcombine.low %v3950_v49, %v3957_v1  ;;  %v7912_v0 = vcombine.high %v3950_v49, %v3957_v1  ;;  %v3994_v11 = vcombine.low %v3966_v42, %v3973_v43  ;;  %v7913_v12 = vcombine.high %v3966_v42, %v3973_v43 }
0x10bd   : > { %v3985_v24 = vrot.slane %v3978_v10, %v9381_v45  ;;  %v3993_v25 = vrot.slane %v7912_v0, %v9381_v45  ;;  %v4001_v26 = vrot.slane %v3994_v11, %v9381_v45  ;;  %v4009_v27 = vrot.slane %v7913_v12, %v9381_v45 }
0x10bf   : > { %v4010_v23 = vcombine.low %v3985_v24, %v3993_v25  ;;  %v4026_v22 = vcombine.low %v4001_v26, %v4009_v27  ;;  %v4011_v44 = vcombine.high %v3985_v24, %v3993_v25  ;;  %v4027_v46 = vcombine.high %v4001_v26, %v4009_v27 }
0x10c1   : > { %v4034_v40 = vrot.slane %v4026_v22, %v9393_v52  ;;  %v4025_v59 = vrot.slane %v4011_v44, %v9393_v52 }
0x1121   : > { %v4055_v56 = vpop.permute.xlu0 %4054  ;;  %v4053_v29 = vpop.permute.xlu1 %4052 }
0x1122   : > { %v4062_v60 = vcombine.low %v4051_v47, %v4055_v56  ;;  %v4063_v62 = vcombine.high %v4051_v47, %v4055_v56 }
0x1124   : > { %v4070_v2 = vrot.slane %v4062_v60, %v9381_v45  ;;  %v4077_v3 = vrot.slane %v4063_v62, %v9381_v45  ;;  %v4041_v60 = vrot.slane %v4027_v46, %v9393_v52 }
0x1125   : > { %v4057_v21 = vpop.permute.xlu1 %4056 }
0x1126   : > { %v4078_v53 = vcombine.low %v4053_v29, %v4057_v21  ;;  %v4079_v55 = vcombine.high %v4053_v29, %v4057_v21  ;;  %v4018_v29 = vrot.slane %v4010_v23, %v9393_v52  ;;  %v4045_v49 = vcombine.high %v4025_v59, %v4041_v60 }
0x1128   : > { %v4086_v4 = vrot.slane %v4078_v53, %v9381_v45  ;;  %v4093_v5 = vrot.slane %v4079_v55, %v9381_v45  ;;  %v4042_v55 = vcombine.low %v4018_v29, %v4034_v40  ;;  %v4049_v43 = vpack.c.bf16 %v4045_v49, %v4045_v49 }
0x112a   : > { %v4094_v6 = vcombine.low %v4070_v2, %v4086_v4  ;;  %v4095_v7 = vcombine.high %v4070_v2, %v4086_v4  ;;  %v4110_v8 = vcombine.low %v4077_v3, %v4093_v5  ;;  %v4111_v9 = vcombine.high %v4077_v3, %v4093_v5 }
0x112b   : > { %v4046_v42 = vpack.c.bf16 %v4042_v55, %v4042_v55  ;;  %v4043_v4 = vcombine.high %v4018_v29, %v4034_v40 }
0x112c   : > { %v4102_v13 = vrot.slane %v4094_v6, %v9393_v52  ;;  %v4109_v14 = vrot.slane %v4095_v7, %v9393_v52  ;;  %v4118_v15 = vrot.slane %v4110_v8, %v9393_v52  ;;  %v4125_v16 = vrot.slane %v4111_v9, %v9393_v52 }
0x112d   : > { %v4047_v6 = vpack.c.bf16 %v4043_v4, %v4043_v4  ;;  %v4044_v8 = vcombine.low %v4025_v59, %v4041_v60 }
0x112e   : > { %v4130_v17 = vcombine.low %v4102_v13, %v4109_v14  ;;  %v7914_v19 = vcombine.high %v4102_v13, %v4109_v14  ;;  %v4146_v20 = vcombine.low %v4118_v15, %v4125_v16  ;;  %v7915_v63 = vcombine.high %v4118_v15, %v4125_v16 }
0x112f   : > { %v4048_v9 = vpack.c.bf16 %v4044_v8, %v4044_v8 }
0x1130   : > { %v4137_v28 = vrot.slane %v4130_v17, %v9381_v45  ;;  %v4145_v33 = vrot.slane %v7914_v19, %v9381_v45  ;;  %v4153_v34 = vrot.slane %v4146_v20, %v9381_v45  ;;  %v4161_v18 = vrot.slane %v7915_v63, %v9381_v45 }
0x1132   : > { %v4162_v35 = vcombine.low %v4137_v28, %v4145_v33  ;;  %v4178_v37 = vcombine.low %v4153_v34, %v4161_v18  ;;  %v4163_v38 = vcombine.high %v4137_v28, %v4145_v33  ;;  %v4179_v39 = vcombine.high %v4153_v34, %v4161_v18 }
0x1134   : > { %v4170_v47 = vrot.slane %v4162_v35, %v9393_v52  ;;  %v4186_v48 = vrot.slane %v4178_v37, %v9393_v52  ;;  %v4177_v50 = vrot.slane %v4163_v38, %v9393_v52  ;;  %v4193_v51 = vrot.slane %v4179_v39, %v9393_v52 }
0x1136   : > { %v4194_v54 = vcombine.low %v4170_v47, %v4186_v48  ;;  %v4197_v56 = vcombine.high %v4177_v50, %v4193_v51  ;;  %v4195_v53 = vcombine.high %v4170_v47, %v4186_v48  ;;  %v4196_v3 = vcombine.low %v4177_v50, %v4193_v51 }
0x1138   : > { %v4198_v57 = vpack.c.bf16 %v4194_v54, %v4194_v54  ;;  %v4201_v58 = vpack.c.bf16 %v4197_v56, %v4197_v56  ;;  %v4199_v1 = vpack.c.bf16 %v4195_v53, %v4195_v53  ;;  %v4200_v5 = vpack.c.bf16 %v4196_v3, %v4196_v3 }
0x113a   : > { %v4358_v62 = vsel %vm1837_vm2, %v4198_v57, 0  ;;  %v4496_v21 = vsel %vm1837_vm2, %v4201_v58, 0  ;;  %v4404_v2 = vsel %vm1837_vm2, %v4199_v1, 0  ;;  %v4450_v7 = vsel %vm1837_vm2, %v4200_v5, 0 }
0x113b   : > { %8439 = vmatpush3.bf16.xpose.msra.mxu1 %v4358_v62  ;;  %8457 = vmatpush3.bf16.xpose.msra.mxu0 %v4496_v21 }
0x113c   : > { %8444 = vmatprep.subr.bf16.mxu1 %v8981_v61  ;;  %8468 = vmatprep.subr.bf16.mxu0 %v8981_v61 }
0x1142   : > { %8441 = vmatmul.mubr.msk.bf16.vlgmr.msra.gmra.mrb[52].mxu1 %vm1837_vm2, %v4046_v42  ;;  %8459 = vmatmul.mubr.msk.bf16.vlgmr.msra.gmra.mrb[56].mxu0 %vm1837_vm2, %v4049_v43 }
0x1143   : > { %8445 = vmatpush3.bf16.xpose.msra.mxu1 %v4404_v2  ;;  %8446 = vmatprep.mubr.msk.bf16.mxu1 %vm8982_vm0, %v8981_v61 }
0x1144   : > { %8450 = vmatprep.subr.bf16.mxu1 %v8981_v61  ;;  %8470 = vmatprep.mubr.msk.bf16.mxu0 %vm8982_vm0, %v8981_v61 }
0x114a   : > { %8447 = vmatmul.mubr.msk.bf16.vlgmr.msra.gmra.mrb[56].mxu1 %vm1837_vm2, %v4047_v6 }
0x114b   : > { %8451 = vmatpush3.bf16.xpose.msra.mxu1 %v4450_v7  ;;  %8452 = vmatprep.mubr.msk.bf16.mxu1 %vm8982_vm0, %v8981_v61 }
0x114c   : > { %8462 = vmatprep.subr.bf16.mxu1 %v8981_v61 }
0x1152   : > { %8453 = vmatmul.mubr.msk.bf16.vlgmr.msra.gmra.mrb[60].mxu1 %vm1837_vm2, %v4048_v9 }
0x1153   : > { %8464 = vmatprep.mubr.msk.bf16.mxu1 %vm8982_vm0, %v8981_v61 }
0x1215   : > { %v4394_v10 = vpop.f32.mrb[52].mxu1  ;;  %v4532_v0 = vpop.f32.mrb[56].mxu0 }
0x1216   : > { %v4538_v11 = vmul.f32 0.35355338, %v4394_v10  ;;  %v8442_v12 = vpop.f32.mrb[53].mxu1  ;;  %v8460_v13 = vpop.f32.mrb[57].mxu0  ;;  %v4541_v35 = vmul.f32 0.35355338, %v4532_v0 }
0x1217   : > { %v4397_v14 = vpop.f32.mrb[54].mxu1  ;;  %v4535_v15 = vpop.f32.mrb[58].mxu0 }
0x1218   : > { %v8443_v16 = vpop.f32.mrb[55].mxu1  ;;  %v8461_v17 = vpop.f32.mrb[59].mxu0  ;;  %v4542_v19 = vsel %vm1837_vm2, %v4538_v11, -inf  ;;  %v4551_v39 = vsel %vm1837_vm2, %v4541_v35, -inf }
0x1219   : > { %4543 = vmax.xlane.f32.xlu0 %v4542_v19 }
0x121d   : > { %v4440_v20 = vpop.f32.mrb[56].mxu1 }
0x121e   : > { %v4539_v63 = vmul.f32 0.35355338, %v4440_v20  ;;  %v8448_v24 = vpop.f32.mrb[57].mxu1 }
0x121f   : > { %v4443_v25 = vpop.f32.mrb[58].mxu1 }
0x1220   : > { %v8449_v26 = vpop.f32.mrb[59].mxu1  ;;  %v4545_v27 = vsel %vm1837_vm2, %v4539_v63, -inf }
0x1221   : > { %4546 = vmax.xlane.f32.xlu1 %v4545_v27 }
0x1225   : > { %v4486_v28 = vpop.f32.mrb[60].mxu1 }
0x1226   : > { %v4540_v33 = vmul.f32 0.35355338, %v4486_v28  ;;  %v8454_v34 = vpop.f32.mrb[61].mxu1 }
0x1227   : > { %v4489_v18 = vpop.f32.mrb[62].mxu1 }
0x1228   : > { %v8455_v37 = vpop.f32.mrb[63].mxu1  ;;  %v4548_v38 = vsel %vm1837_vm2, %v4540_v33, -inf }
0x1229   : > { %4549 = vmax.xlane.f32.xlu0 %v4548_v38 }
0x122d   : > { %4552 = vmax.xlane.f32.xlu0 %v4551_v39 }
0x1232   : > { %4202 = vrot.lane.b32.xlu1 %v9826_v36, %s10666_s1 }
0x12a6   : > { %v4544_v23 = vpop.xlane.xlu0 %4543 }
0x12a7   : > { %v4554_v22 = vsub.f32 %v4538_v11, %v4544_v23 }
0x12a9   : > { %v4558_v44 = vmul.f32 1.442695, %v4554_v22 }
0x12ab   : > { %8867 = vpow2.f32 %v4558_v44 }
0x12ae   : > { %v4547_v46 = vpop.xlane.xlu1 %4546 }
0x12af   : > { %v4555_v47 = vsub.f32 %v4539_v63, %v4547_v46 }
0x12b1   : > { %v4560_v48 = vmul.f32 1.442695, %v4555_v47 }
0x12b3   : > { %8869 = vpow2.f32 %v4560_v48 }
0x12b5   : > { %v9914_v50 = vpop.eup %8867 }
0x12b6   : > { %v4566_v51 = vsel %vm1837_vm2, %v9914_v50, 0.0  ;;  %v4550_v36 = vpop.xlane.xlu0 %4549 }
0x12b7   : > { %4567 = vadd.xlane.f32.xlu1 %v4566_v51  ;;  %v4556_v57 = vsub.f32 %v4540_v33, %v4550_v36 }
0x12b9   : > { %v4562_v59 = vmul.f32 1.442695, %v4556_v57 }
0x12ba   : > { %v4553_v29 = vpop.xlane.xlu0 %4552 }
0x12bb   : > { %v4557_v40 = vsub.f32 %v4541_v35, %v4553_v29 }
0x12bd   : > { %v9918_v54 = vpop.eup %8869  ;;  %v4564_v58 = vmul.f32 1.442695, %v4557_v40 }
0x12be   : > { %v4569_v56 = vsel %vm1837_vm2, %v9918_v54, 0.0 }
0x12bf   : > { %4570 = vadd.xlane.f32.xlu0 %v4569_v56  ;;  %8871 = vpow2.f32 %v4564_v58 }
0x12c0   : > { %8873 = vpow2.f32 %v4562_v59 }
0x12c8   : > { %4206 = vrot.lane.b32.xlu1 %v9836_v31, %s10666_s1 }
0x12c9   : > { %v9928_v60 = vpop.eup %8871 }
0x12ca   : > { %v4575_v62 = vsel %vm1837_vm2, %v9928_v60, 0.0  ;;  %v9932_v31 = vpop.eup %8873 }
0x12cc   : > { %4208 = vrot.lane.b32.xlu1 %v9844_v41, %s10666_s1  ;;  %v4572_v41 = vsel %vm1837_vm2, %v9932_v31, 0.0 }
0x12d5   : > { %4204 = vrot.lane.b32.xlu0 %v9838_v32, %s10666_s1  ;;  %v4203_v32 = vpop.permute.xlu1 %4202 }
0x12f0   : > { %4576 = vadd.xlane.f32.xlu1 %v4575_v62 }
0x12f4   : > { %4573 = vadd.xlane.f32.xlu0 %v4572_v41 }
0x1344   : > { %v4568_v21 = vpop.xlane.xlu1 %4567 }
0x1345   : > { %8875 = vrcp.f32 %v4568_v21 }
0x1348   : > { %v4207_v53 = vpop.permute.xlu1 %4206 }
0x1349   : > { %v4214_v49 = vcombine.low %v4203_v32, %v4207_v53  ;;  %v4215_v1 = vcombine.high %v4203_v32, %v4207_v53 }
0x134b   : > { %v4222_v4 = vrot.slane %v4214_v49, %v9381_v45  ;;  %v4229_v5 = vrot.slane %v4215_v1, %v9381_v45 }
0x134c   : > { %v4571_v55 = vpop.xlane.xlu0 %4570  ;;  %v4209_v42 = vpop.permute.xlu1 %4208 }
0x134d   : > { %8877 = vrcp.f32 %v4571_v55 }
0x134f   : > { %v8876_v34 = vpop.eup %8875 }
0x1350   : > { %v4205_v43 = vpop.permute.xlu0 %4204  ;;  %v4582_v47 = vmul.f32 %v8876_v34, %v9914_v50 }
0x1351   : > { %v4230_v2 = vcombine.low %v4205_v43, %v4209_v42  ;;  %v4231_v3 = vcombine.high %v4205_v43, %v4209_v42 }
0x1352   : > { %v4586_v58 = vpack.c.bf16 %v4582_v47, %v4582_v47 }
0x1353   : > { %v4238_v6 = vrot.slane %v4230_v2, %v9381_v45  ;;  %v4245_v7 = vrot.slane %v4231_v3, %v9381_v45 }
0x1355   : > { %v4246_v8 = vcombine.low %v4222_v4, %v4238_v6  ;;  %v4247_v9 = vcombine.high %v4222_v4, %v4238_v6  ;;  %v4262_v10 = vcombine.low %v4229_v5, %v4245_v7  ;;  %v4263_v0 = vcombine.high %v4229_v5, %v4245_v7 }
0x1357   : > { %v4254_v11 = vrot.slane %v4246_v8, %v9393_v52  ;;  %v4261_v12 = vrot.slane %v4247_v9, %v9393_v52  ;;  %v4270_v13 = vrot.slane %v4262_v10, %v9393_v52  ;;  %v4277_v14 = vrot.slane %v4263_v0, %v9393_v52  ;;  %v8878_v39 = vpop.eup %8877 }
0x1358   : > { %v4583_v48 = vmul.f32 %v8878_v39, %v9918_v54 }
0x1359   : > { %v4282_v15 = vcombine.low %v4254_v11, %v4261_v12  ;;  %v7916_v16 = vcombine.high %v4254_v11, %v4261_v12  ;;  %v4298_v17 = vcombine.low %v4270_v13, %v4277_v14  ;;  %v7917_v19 = vcombine.high %v4270_v13, %v4277_v14 }
0x135a   : > { %v4587_v59 = vpack.c.bf16 %v4583_v48, %v4583_v48 }
0x135b   : > { %v4289_v20 = vrot.slane %v4282_v15, %v9381_v45  ;;  %v4297_v63 = vrot.slane %v7916_v16, %v9381_v45  ;;  %v4305_v24 = vrot.slane %v4298_v17, %v9381_v45  ;;  %v4313_v25 = vrot.slane %v7917_v19, %v9381_v45 }
0x135d   : > { %v4314_v26 = vcombine.low %v4289_v20, %v4297_v63  ;;  %v4330_v27 = vcombine.low %v4305_v24, %v4313_v25  ;;  %v4315_v28 = vcombine.high %v4289_v20, %v4297_v63  ;;  %v4331_v33 = vcombine.high %v4305_v24, %v4313_v25 }
0x135f   : > { %v4322_v18 = vrot.slane %v4314_v26, %v9393_v52  ;;  %v4338_v35 = vrot.slane %v4330_v27, %v9393_v52  ;;  %v4329_v37 = vrot.slane %v4315_v28, %v9393_v52  ;;  %v4345_v38 = vrot.slane %v4331_v33, %v9393_v52  ;;  %v8802_v28 = vld [vmem:[%s10577_s13 + $0x20] sm:$0xff]  }
0x1361   : > { %v4346_v23 = vcombine.low %v4322_v18, %v4338_v35  ;;  %v4347_v22 = vcombine.high %v4322_v18, %v4338_v35  ;;  %v4348_v44 = vcombine.low %v4329_v37, %v4345_v38  ;;  %v4349_v46 = vcombine.high %v4329_v37, %v4345_v38 }
0x1363   : > { %v4350_v51 = vpack.c.bf16 %v4346_v23, %v4346_v23  ;;  %v4351_v56 = vpack.c.bf16 %v4347_v22, %v4347_v22  ;;  %v4352_v40 = vpack.c.bf16 %v4348_v44, %v4348_v44  ;;  %v4353_v57 = vpack.c.bf16 %v4349_v46, %v4349_v46  ;;  %v8803_v22 = vld [vmem:[%s10577_s13 + $0x28] sm:$0xff]  }
0x1365   : > { %v4594_v36 = vsel %vm2077_vm3, %v4350_v51, 0  ;;  %v4640_v29 = vsel %vm2077_vm3, %v4351_v56, 0  ;;  %v4686_v50 = vsel %vm2077_vm3, %v4352_v40, 0  ;;  %v4732_v54 = vsel %vm2077_vm3, %v4353_v57, 0 }
0x1366   : > { %8463 = vmatpush3.bf16.msra.mxu1 %v4594_v36  ;;  %8469 = vmatpush3.bf16.msra.mxu0 %v4640_v29 }
0x1367   : > { %8474 = vmatprep.subr.bf16.mxu1 %v8981_v61  ;;  %8480 = vmatprep.subr.bf16.mxu0 %v8981_v61 }
0x1369   : > { %8465 = vmatmul.mubr.msk.bf16.vlgmr.msra.gmra.mrb[64].mxu1 %vm1837_vm2, %v4586_v58  ;;  %8471 = vmatmul.mubr.msk.bf16.vlgmr.msra.gmra.mrb[60].mxu0 %vm1837_vm2, %v4587_v59 }
0x136a   : > { %8475 = vmatpush3.bf16.msra.mxu1 %v4686_v50  ;;  %8481 = vmatpush3.bf16.msra.mxu0 %v4732_v54 }
0x136b   : > { %8482 = vmatprep.mubr.msk.bf16.mxu0 %vm8982_vm0, %v8981_v61  ;;  %8476 = vmatprep.mubr.msk.bf16.mxu1 %vm8982_vm0, %v8981_v61 }
0x136c   : > { %8486 = vmatprep.subr.bf16.mxu1 %v8981_v61  ;;  %8494 = vmatprep.subr.bf16.mxu0 %v8981_v61 }
0x137d   : > { %v4577_v62 = vpop.xlane.xlu1 %4576 }
0x137e   : > { %8879 = vrcp.f32 %v4577_v62 }
0x1381   : > { %v4574_v41 = vpop.xlane.xlu0 %4573 }
0x1382   : > { %8881 = vrcp.f32 %v4574_v41 }
0x1388   : > { %v8880_v32 = vpop.eup %8879 }
0x1389   : > { %v4585_v21 = vmul.f32 %v8880_v32, %v9928_v60 }
0x138b   : > { %v4589_v53 = vpack.c.bf16 %v4585_v21, %v4585_v21 }
0x138c   : > { %v8882_v55 = vpop.eup %8881 }
0x138d   : > { %v4584_v49 = vmul.f32 %v8882_v55, %v9932_v31  ;;  %8483 = vmatmul.mubr.msk.bf16.vlgmr.msra.gmra.mrb[64].mxu0 %vm1837_vm2, %v4589_v53 }
0x138e   : > { %8498 = vmatprep.mubr.msk.bf16.mxu0 %vm8982_vm0, %v8981_v61 }
0x138f   : > { %v4588_v1 = vpack.c.bf16 %v4584_v49, %v4584_v49 }
0x1391   : > { %8477 = vmatmul.mubr.msk.bf16.vlgmr.msra.gmra.mrb[68].mxu1 %vm1837_vm2, %v4588_v1 }
0x1392   : > { %8490 = vmatprep.mubr.msk.bf16.mxu1 %vm8982_vm0, %v8981_v61  ;;  %8487 = vmatpush3.bf16.msra.mxu1 %v8802_v28 }
0x1393   : > { %8488 = vmatprep.subr.bf16.mxu1 %v8981_v61 }
0x1396   : > { %8489 = vmatpush3.bf16.msra.mxu1 %v8803_v22 }
0x1397   : > { %8502 = vmatprep.subr.bf16.mxu1 %v8981_v61 }
0x143c   : > { %v4630_v42 = vpop.f32.mrb[64].mxu1  ;;  %v4676_v43 = vpop.f32.mrb[60].mxu0 }
0x143d   : > { %v8466_v2 = vpop.f32.mrb[65].mxu1  ;;  %v8472_v3 = vpop.f32.mrb[61].mxu0 }
0x143e   : > { %v4633_v60 = vpop.f32.mrb[66].mxu1  ;;  %v4679_v4 = vpop.f32.mrb[62].mxu0  ;;  %v8805_v2 = vld [vmem:[%s10661_s15 + $0x18] sm:$0xff]   ;;  %v7933_v3 = vld [vmem:[%s10578_s14 + $0x2] ss:$0 sm:$0xff] }
0x143f   : > { %v8467_v5 = vpop.f32.mrb[67].mxu1  ;;  %v8473_v6 = vpop.f32.mrb[63].mxu0 }
0x1460   : > { %v4768_v31 = vpop.f32.mrb[64].mxu0 }
0x1461   : > { %v4790_v7 = vcombine.low %v4676_v43, %v4768_v31  ;;  %v4791_v8 = vcombine.high %v4676_v43, %v4768_v31  ;;  %v8484_v9 = vpop.f32.mrb[65].mxu0  ;;  %v8804_v43 = vld [vmem:[%s10661_s15 + $0x10] sm:$0xff]   ;;  %s10674_s15 = sld [smem:[#allocation28_spill]] }
0x1462   : > { %v4771_v10 = vpop.f32.mrb[66].mxu0  ;;  %8495 = vmatpush3.bf16.msra.mxu0 %v8804_v43  ;;  %v8806_v9 = vld [vmem:[%s10662_s17 + $0x40] sm:$0xff]  }
0x1463   : > { %v8485_v0 = vpop.f32.mrb[67].mxu0  ;;  %v4798_v16 = vrot.slane %v4790_v7, %v9381_v45  ;;  %v4805_v17 = vrot.slane %v4791_v8, %v9381_v45  ;;  %8496 = vmatprep.subr.bf16.mxu0 %v8981_v61  ;;  %v8808_v10 = vld [vmem:[%s10662_s17 + $0x50] sm:$0xff]  }
0x1464   : > { %v4722_v11 = vpop.f32.mrb[68].mxu1  ;;  %v8809_v0 = vld [vmem:[%s10662_s17 + $0x58] sm:$0xff]  }
0x1465   : > { %v4774_v12 = vcombine.low %v4630_v42, %v4722_v11  ;;  %v4775_v13 = vcombine.high %v4630_v42, %v4722_v11  ;;  %v8478_v14 = vpop.f32.mrb[69].mxu1  ;;  %v8810_v11 = vld [vmem:[%s10662_s17 + $0x60] sm:$0xff]  }
0x1466   : > { %v4725_v15 = vpop.f32.mrb[70].mxu1  ;;  %8497 = vmatpush3.bf16.msra.mxu0 %v8805_v2  ;;  %v8813_v14 = vld [vmem:[%s10662_s17 + $0x78] sm:$0xff]  }
0x1467   : > { %v4782_v19 = vrot.slane %v4774_v12, %v9381_v45  ;;  %v4789_v20 = vrot.slane %v4775_v13, %v9381_v45  ;;  %v8479_v63 = vpop.f32.mrb[71].mxu1  ;;  %8522 = vmatprep.subr.bf16.mxu0 %v8981_v61  ;;  %v8811_v12 = vld [vmem:[%s10662_s17 + $0x68] sm:$0xff]   ;;  %v8812_v13 = vld [vmem:[%s10662_s17 + $0x70] sm:$0xff]   ;;  %v8814_v15 = vld [vmem:[%s10573_s9] sm:$0xff]  }
0x1469   : > { %v4806_v24 = vcombine.low %v4782_v19, %v4798_v16  ;;  %v4807_v25 = vcombine.high %v4782_v19, %v4798_v16  ;;  %v4822_v26 = vcombine.low %v4789_v20, %v4805_v17  ;;  %v4823_v27 = vcombine.high %v4789_v20, %v4805_v17  ;;  %v8815_v16 = vld [vmem:[%s10573_s9 + $0x8] sm:$0xff]   ;;  %v8816_v17 = vld [vmem:[%s10573_s9 + $0x10] ss:$0 sps:$4 sm:$0x11]   ;;  %v5188_v19 = vld [vmem:[%s719_s21] sm:$0xff] }
0x146a   : > { %v5223_v20 = vsel %vm5221_vm6, %v8816_v17, 0  ;;  %v5194_v63 = vpack.c.bf16 %v5188_v19, %v5188_v19 }
0x146b   : > { %v4814_v33 = vrot.slane %v4806_v24, %v9393_v52  ;;  %v4821_v34 = vrot.slane %v4807_v25, %v9393_v52  ;;  %v4830_v18 = vrot.slane %v4822_v26, %v9393_v52  ;;  %v4837_v35 = vrot.slane %v4823_v27, %v9393_v52  ;;  %v7942_v24 = vld [vmem:[%s10580_s16 + $0x1] ss:$0 sm:$0xff] }
0x146d   : > { %v4842_v37 = vcombine.low %v4814_v33, %v4821_v34  ;;  %v7926_v38 = vcombine.high %v4814_v33, %v4821_v34  ;;  %v4858_v39 = vcombine.low %v4830_v18, %v4837_v35  ;;  %v7927_v23 = vcombine.high %v4830_v18, %v4837_v35 }
0x146f   : > { %v4849_v44 = vrot.slane %v4842_v37, %v9381_v45  ;;  %v4857_v46 = vrot.slane %v7926_v38, %v9381_v45  ;;  %v4865_v47 = vrot.slane %v4858_v39, %v9381_v45  ;;  %v4873_v48 = vrot.slane %v7927_v23, %v9381_v45 }
0x1471   : > { %v4875_v51 = vcombine.high %v4849_v44, %v4857_v46  ;;  %v4891_v56 = vcombine.high %v4865_v47, %v4873_v48  ;;  %v4874_v36 = vcombine.low %v4849_v44, %v4857_v46  ;;  %v4890_v29 = vcombine.low %v4865_v47, %v4873_v48  ;;  %v8817_v47 = vld [vmem:[%s10575_s11 + $0x10] sm:$0xff]   ;;  %v8818_v48 = vld [vmem:[%s10575_s11 + $0x18] sm:$0xff]  }
0x1473   : > { %v4889_v40 = vrot.slane %v4875_v51, %v9393_v52  ;;  %v4905_v57 = vrot.slane %v4891_v56, %v9393_v52  ;;  %v4882_v58 = vrot.slane %v4874_v36, %v9393_v52  ;;  %v4898_v59 = vrot.slane %v4890_v29, %v9393_v52 }
0x1475   : > { %v4908_v50 = vcombine.low %v4889_v40, %v4905_v57  ;;  %v4907_v54 = vcombine.high %v4882_v58, %v4898_v59  ;;  %v4909_v62 = vcombine.high %v4889_v40, %v4905_v57  ;;  %v4906_v41 = vcombine.low %v4882_v58, %v4898_v59  ;;  %v7963_v40 = vld [vmem:[%s10582_s18 + $0x1] ss:$0 sm:$0xff] }
0x1477   : > { %4915 = vrot.lane.b32.xlu1 %v4908_v50, %s10658_s3  ;;  %4911 = vrot.lane.b32.xlu0 %v4907_v54, %s10659_s4 }
0x147b   : > { %4919 = vrot.lane.b32.xlu0 %v4909_v62, %s10660_s29 }
0x14e9   : > { %v4912_v32 = vpop.permute.xlu0 %4911  ;;  %v4916_v21 = vpop.permute.xlu1 %4915 }
0x14ea   : > { %v4922_v53 = vsel %vm1837_vm2, %v4906_v41, %v4912_v32  ;;  %v7982_v32 = vld [vmem:[%s10576_s12 + $0x1] ss:$0 sm:$0xff] }
0x14eb   : > { %v4923_v49 = vsel %vm2408_vm4, %v4922_v53, %v4916_v21 }
0x14ed   : > { %v4920_v55 = vpop.permute.xlu0 %4919 }
0x14ee   : > { %v4924_v1 = vsel %vm2410_vm5, %v4923_v49, %v4920_v55  ;;  %v7972_v49 = vld [vmem:[%s10574_s10] ss:$0 sm:$0xff] }
0x14ef   : > { %v4930_v42 = vpack.c.bf16 %v4924_v1, %v4924_v1 }
0x14f1   : > { %8491 = vmatmul.mubr.msk.bf16.vlgmr.msra.gmra.mrb[72].mxu1 %vm1274_vm1, %v4930_v42 }
0x14f2   : > { %8518 = vmatprep.mubr.msk.bf16.mxu1 %vm8982_vm0, %v8981_v61  ;;  %8503 = vmatpush3.bf16.msra.mxu1 %v8806_v9 }
0x14f3   : > { %8504 = vmatprep.subr.bf16.mxu1 %v8981_v61 }
0x15c4   : > { %v4988_v60 = vpop.f32.mrb[72].mxu1 }
0x15c5   : > { %v4989_v4 = vadd.f32 %v7933_v3, %v4988_v60  ;;  %v8492_v5 = vpop.f32.mrb[73].mxu1 }
0x15c6   : > { %v4991_v6 = vpop.f32.mrb[74].mxu1 }
0x15c7   : > { %v10021_v31 = vadd.f32 %v4989_v4, %v9816_v30  ;;  %v8493_v7 = vpop.f32.mrb[75].mxu1  ;;  %v8807_v30 = vld [vmem:[%s10662_s17 + $0x48] sm:$0xff]   ;;  %s10672_s17 = sld [smem:[#allocation27_spill]] }
0x15c8   : > { %8505 = vmatpush3.bf16.msra.mxu1 %v8807_v30 }
0x15c9   : > { %v5000_v8 = vpack.c.bf16 %v10021_v31, %v10021_v31  ;;  %8506 = vmatprep.subr.bf16.mxu1 %v8981_v61 }
0x15cb   : > { %8499 = vmatmul.mubr.msk.bf16.vlgmr.msra.gmra.mrb[68].mxu0 %vm1274_vm1, %v5000_v8 }
0x15cc   : > { %8528 = vmatprep.mubr.msk.bf16.mxu0 %vm8982_vm0, %v8981_v61  ;;  %8507 = vmatpush3.bf16.msra.mxu1 %v8808_v10 }
0x15cd   : > { %8508 = vmatprep.subr.bf16.mxu1 %v8981_v61  ;;  %8523 = vmatpush3.bf16.msra.mxu0 %v8814_v15 }
0x15ce   : > { %8524 = vmatprep.subr.bf16.mxu0 %v8981_v61 }
0x15d0   : > { %8509 = vmatpush3.bf16.msra.mxu1 %v8809_v0 }
0x15d1   : > { %8510 = vmatprep.subr.bf16.mxu1 %v8981_v61  ;;  %8525 = vmatpush3.bf16.msra.mxu0 %v8815_v16 }
0x15d2   : > { %8526 = vmatprep.subr.bf16.mxu0 %v8981_v61 }
0x15d4   : > { %8511 = vmatpush3.bf16.msra.mxu1 %v8810_v11 }
0x15d5   : > { %8512 = vmatprep.subr.bf16.mxu1 %v8981_v61  ;;  %8527 = vmatpush3.bf16.msra.mxu0 %v5223_v20 }
0x15d6   : > { %8532 = vmatprep.subr.bf16.mxu0 %v8981_v61 }
0x15d8   : > { %8513 = vmatpush3.bf16.msra.mxu1 %v8811_v12  ;;  %8529 = vmatmul.mubr.msk.bf16.vlgmr.msra.gmra.mrb[72].mxu0 %vm5217_vm7, %v5194_v63 }
0x15d9   : > { %8514 = vmatprep.subr.bf16.mxu1 %v8981_v61  ;;  %8536 = vmatprep.mubr.msk.bf16.mxu0 %vm8982_vm0, %v8981_v61 }
0x15da   : > { %8533 = vmatpush3.bf16.msra.mxu0 %v8817_v47 }
0x15db   : > { %8534 = vmatprep.subr.bf16.mxu0 %v8981_v61 }
0x15dc   : > { %8515 = vmatpush3.bf16.msra.mxu1 %v8812_v13 }
0x15dd   : > { %8516 = vmatprep.subr.bf16.mxu1 %v8981_v61 }
0x15de   : > { %8535 = vmatpush3.bf16.msra.mxu0 %v8818_v48 }
0x15df   : > { %8540 = vmatprep.subr.bf16.mxu0 %v8981_v61 }
0x15e0   : > { %8517 = vmatpush3.bf16.msra.mxu1 %v8813_v14 }
0x15e1   : > { %8546 = vmatprep.subr.bf16.mxu1 %v8981_v61 }
0x169e   : > { %v5058_v25 = vpop.f32.mrb[68].mxu0 }
0x169f   : > { %v5059_v26 = vadd.f32 %v7942_v24, %v5058_v25  ;;  %v8500_v27 = vpop.f32.mrb[69].mxu0 }
0x16a0   : > { %v5061_v28 = vpop.f32.mrb[70].mxu0 }
0x16a1   : > { %v5064_v33 = vmul.f32 %v5059_v26, %v5059_v26  ;;  %v8501_v34 = vpop.f32.mrb[71].mxu0 }
0x16a3   : > { %v5065_v18 = vmul.f32 %v5064_v33, %v5059_v26 }
0x16a5   : > { %v5066_v35 = vmul.f32 0.044715, %v5065_v18 }
0x16a7   : > { %v5067_v37 = vadd.f32 %v5066_v35, %v5059_v26 }
0x16a9   : > { %v5068_v38 = vmul.f32 0.7978846, %v5067_v37 }
0x16ab   : > { %8883 = vtanh.f32 %v5068_v38  ;;  %v5259_v51 = vpop.f32.mrb[72].mxu0 }
0x16ac   : > { %v8530_v56 = vpop.f32.mrb[73].mxu0  ;;  %v5260_v43 = vadd.f32 %v7972_v49, %v5259_v51 }
0x16ad   : > { %v5262_v36 = vpop.f32.mrb[74].mxu0 }
0x16ae   : > { %v8531_v29 = vpop.f32.mrb[75].mxu0 }
0x16b5   : > { %v8884_v39 = vpop.eup %8883 }
0x16b6   : > { %v5070_v23 = vadd.f32 1.0, %v8884_v39 }
0x16b8   : > { %v5071_v22 = vmul.f32 0.5, %v5070_v23 }
0x16ba   : > { %v5072_v44 = vmul.f32 %v5071_v22, %v5059_v26 }
0x16bc   : > { %v5090_v46 = vpack.c.bf16 %v5072_v44, %v5072_v44 }
0x16be   : > { %8519 = vmatmul.mubr.bf16.vlgmr.msra.gmra.mrb[76].mxu1 %v5090_v46 }
0x16bf   : > { %8548 = vmatprep.mubr.msk.bf16.mxu1 %vm8982_vm0, %v8981_v61 }
0x1791   : > { %v5181_v57 = vpop.f32.mrb[76].mxu1 }
0x1792   : > { %v5182_v58 = vadd.f32 %v7963_v40, %v5181_v57  ;;  %v8520_v59 = vpop.f32.mrb[77].mxu1 }
0x1793   : > { %v5184_v50 = vpop.f32.mrb[78].mxu1 }
0x1794   : > { %v5187_v54 = vadd.f32 %v5182_v58, %v10021_v31  ;;  %v8521_v62 = vpop.f32.mrb[79].mxu1 }
0x1796   : > { %v5270_v41 = vpack.c.bf16 %v5187_v54, %v5187_v54 }
0x1798   : > { %8537 = vmatmul.mubr.msk.bf16.vlgmr.msra.gmra.mrb[76].mxu0 %vm1274_vm1, %v5270_v41 }
0x1799   : > { %8542 = vmatprep.mubr.msk.bf16.mxu0 %vm8982_vm0, %v8981_v61 }
0x186b   : > { %v5328_v21 = vpop.f32.mrb[76].mxu0 }
0x186c   : > { %v10101_v53 = vadd.f32 %v7982_v32, %v5328_v21  ;;  %v8538_v55 = vpop.f32.mrb[77].mxu0 }
0x186d   : > { %v5331_v1 = vpop.f32.mrb[78].mxu0 }
0x186e   : > { %5488 = vrot.lane.b32.xlu0 %v10101_v53, %s10663_s0  ;;  %5485 = vrot.lane.b32.xlu1 %v10101_v53, %s10664_s24  ;;  %v8539_v42 = vpop.f32.mrb[79].mxu0 }
0x1872   : > { %5335 = vrot.lane.b32.xlu0 %v5260_v43, %s10664_s24  ;;  %5491 = vrot.lane.b32.xlu1 %v10101_v53, %s10657_s25 }
0x1876   : > { %5341 = vrot.lane.b32.xlu0 %v5260_v43, %s10657_s25  ;;  %5338 = vrot.lane.b32.xlu1 %v5260_v43, %s10663_s0 }
0x18e0   : > { %v10115_v2 = vpop.permute.xlu0 %5488  ;;  %v10117_v3 = vpop.permute.xlu1 %5485 }
0x18e1   : > { %v5494_v60 = vcombine.low %v10101_v53, %v10115_v2  ;;  %v5495_v4 = vcombine.high %v10101_v53, %v10115_v2 }
0x18e3   : > { %v5502_v8 = vrot.slane %v5494_v60, %v9381_v45  ;;  %v5509_v9 = vrot.slane %v5495_v4, %v9381_v45 }
0x18e4   : > { %v5336_v5 = vpop.permute.xlu0 %5335  ;;  %v10123_v6 = vpop.permute.xlu1 %5491 }
0x18e5   : > { %v5510_v31 = vcombine.low %v10117_v3, %v10123_v6  ;;  %v5511_v7 = vcombine.high %v10117_v3, %v10123_v6 }
0x18e7   : > { %v5518_v30 = vrot.slane %v5510_v31, %v9381_v45  ;;  %v5525_v10 = vrot.slane %v5511_v7, %v9381_v45 }
0x18e8   : > { %v5342_v0 = vpop.permute.xlu0 %5341  ;;  %v5339_v11 = vpop.permute.xlu1 %5338 }
0x18e9   : > { %v5526_v12 = vcombine.low %v5502_v8, %v5518_v30  ;;  %v5527_v13 = vcombine.high %v5502_v8, %v5518_v30  ;;  %v5542_v14 = vcombine.low %v5509_v9, %v5525_v10  ;;  %v5543_v15 = vcombine.high %v5509_v9, %v5525_v10 }
0x18ea   : > { %v5360_v16 = vcombine.low %v5336_v5, %v5342_v0  ;;  %v5361_v17 = vcombine.high %v5336_v5, %v5342_v0  ;;  %v5344_v19 = vcombine.low %v5260_v43, %v5339_v11  ;;  %v5345_v20 = vcombine.high %v5260_v43, %v5339_v11 }
0x18eb   : > { %v5534_v63 = vrot.slane %v5526_v12, %v9393_v52  ;;  %v5541_v24 = vrot.slane %v5527_v13, %v9393_v52  ;;  %v5550_v25 = vrot.slane %v5542_v14, %v9393_v52  ;;  %v5557_v26 = vrot.slane %v5543_v15, %v9393_v52 }
0x18ec   : > { %v5368_v27 = vrot.slane %v5360_v16, %v9381_v45  ;;  %v5375_v28 = vrot.slane %v5361_v17, %v9381_v45  ;;  %v5352_v33 = vrot.slane %v5344_v19, %v9381_v45  ;;  %v5359_v34 = vrot.slane %v5345_v20, %v9381_v45 }
0x18ed   : > { %v5562_v18 = vcombine.low %v5534_v63, %v5541_v24  ;;  %v7988_v35 = vcombine.high %v5534_v63, %v5541_v24  ;;  %v5578_v37 = vcombine.low %v5550_v25, %v5557_v26  ;;  %v7989_v38 = vcombine.high %v5550_v25, %v5557_v26 }
0x18ee   : > { %v5376_v39 = vcombine.low %v5352_v33, %v5368_v27  ;;  %v5377_v23 = vcombine.high %v5352_v33, %v5368_v27  ;;  %v5392_v22 = vcombine.low %v5359_v34, %v5375_v28  ;;  %v5393_v44 = vcombine.high %v5359_v34, %v5375_v28 }
0x18ef   : > { %v5569_v46 = vrot.slane %v5562_v18, %v9381_v45  ;;  %v5577_v47 = vrot.slane %v7988_v35, %v9381_v45  ;;  %v5585_v48 = vrot.slane %v5578_v37, %v9381_v45  ;;  %v5593_v51 = vrot.slane %v7989_v38, %v9381_v45 }
0x18f0   : > { %v5384_v56 = vrot.slane %v5376_v39, %v9393_v52  ;;  %v5391_v36 = vrot.slane %v5377_v23, %v9393_v52  ;;  %v5400_v29 = vrot.slane %v5392_v22, %v9393_v52  ;;  %v5407_v40 = vrot.slane %v5393_v44, %v9393_v52 }
0x18f1   : > { %v5594_v57 = vcombine.low %v5569_v46, %v5577_v47  ;;  %v5610_v58 = vcombine.low %v5585_v48, %v5593_v51  ;;  %v5595_v59 = vcombine.high %v5569_v46, %v5577_v47  ;;  %v5611_v50 = vcombine.high %v5585_v48, %v5593_v51 }
0x18f2   : > { %v5412_v54 = vcombine.low %v5384_v56, %v5391_v36  ;;  %v7986_v62 = vcombine.high %v5384_v56, %v5391_v36  ;;  %v5428_v41 = vcombine.low %v5400_v29, %v5407_v40  ;;  %v7987_v32 = vcombine.high %v5400_v29, %v5407_v40 }
0x18f3   : > { %v5602_v21 = vrot.slane %v5594_v57, %v9393_v52  ;;  %v5618_v55 = vrot.slane %v5610_v58, %v9393_v52  ;;  %v5609_v5 = vrot.slane %v5595_v59, %v9393_v52  ;;  %v5625_v31 = vrot.slane %v5611_v50, %v9393_v52 }
0x18f4   : > { %v5419_v49 = vrot.slane %v5412_v54, %v9381_v45  ;;  %v5427_v1 = vrot.slane %v7986_v62, %v9381_v45  ;;  %v5435_v42 = vrot.slane %v5428_v41, %v9381_v45  ;;  %v5443_v43 = vrot.slane %v7987_v32, %v9381_v45 }
0x18f5   : > { %v5626_v60 = vcombine.low %v5602_v21, %v5618_v55  ;;  %v5627_v4 = vcombine.high %v5602_v21, %v5618_v55  ;;  %v5628_v13 = vcombine.low %v5609_v5, %v5625_v31  ;;  %v5629_v14 = vcombine.high %v5609_v5, %v5625_v31 }
0x18f6   : > { %v5444_v7 = vcombine.low %v5419_v49, %v5427_v1  ;;  %v5460_v8 = vcombine.low %v5435_v42, %v5443_v43  ;;  %v5445_v15 = vcombine.high %v5419_v49, %v5427_v1  ;;  %v5461_v16 = vcombine.high %v5435_v42, %v5443_v43 }
0x18f7   : > { %v5630_v9 = vpack.c.bf16 %v5626_v60, %v5626_v60  ;;  %v5631_v30 = vpack.c.bf16 %v5627_v4, %v5627_v4  ;;  %v5632_v20 = vpack.c.bf16 %v5628_v13, %v5628_v13  ;;  %v5633_v63 = vpack.c.bf16 %v5629_v14, %v5629_v14 }
0x18f8   : > { %v5452_v10 = vrot.slane %v5444_v7, %v9393_v52  ;;  %v5468_v0 = vrot.slane %v5460_v8, %v9393_v52  ;;  %v5459_v26 = vrot.slane %v5445_v15, %v9393_v52  ;;  %v5475_v27 = vrot.slane %v5461_v16, %v9393_v52 }
0x18f9   : > { %v5790_v11 = vsel %vm1837_vm2, %v5630_v9, 0  ;;  %v5836_v12 = vsel %vm1837_vm2, %v5631_v30, 0  ;;  %v5882_v28 = vsel %vm1837_vm2, %v5632_v20, 0  ;;  %v5928_v33 = vsel %vm1837_vm2, %v5633_v63, 0 }
0x18fa   : > { %8541 = vmatpush3.bf16.xpose.msra.mxu0 %v5790_v11  ;;  %8547 = vmatpush3.bf16.xpose.msra.mxu1 %v5836_v12  ;;  %v5476_v17 = vcombine.low %v5452_v10, %v5468_v0  ;;  %v5477_v19 = vcombine.high %v5452_v10, %v5468_v0  ;;  %v5478_v34 = vcombine.low %v5459_v26, %v5475_v27 }
0x18fb   : > { %8552 = vmatprep.subr.bf16.mxu0 %v8981_v61  ;;  %8558 = vmatprep.subr.bf16.mxu1 %v8981_v61  ;;  %v5479_v18 = vcombine.high %v5459_v26, %v5475_v27 }
0x18fc   : > { %v5480_v24 = vpack.c.bf16 %v5476_v17, %v5476_v17  ;;  %v5481_v25 = vpack.c.bf16 %v5477_v19, %v5477_v19  ;;  %v5482_v35 = vpack.c.bf16 %v5478_v34, %v5478_v34 }
0x18fd   : > { %v5483_v37 = vpack.c.bf16 %v5479_v18, %v5479_v18 }
0x1901   : > { %8543 = vmatmul.mubr.msk.bf16.vlgmr.msra.gmra.mrb[80].mxu0 %vm1837_vm2, %v5480_v24  ;;  %8549 = vmatmul.mubr.msk.bf16.vlgmr.msra.gmra.mrb[80].mxu1 %vm1837_vm2, %v5481_v25 }
0x1902   : > { %8553 = vmatpush3.bf16.xpose.msra.mxu0 %v5882_v28  ;;  %8559 = vmatpush3.bf16.xpose.msra.mxu1 %v5928_v33 }
0x1903   : > { %8554 = vmatprep.mubr.msk.bf16.mxu0 %vm8982_vm0, %v8981_v61  ;;  %8560 = vmatprep.mubr.msk.bf16.mxu1 %vm8982_vm0, %v8981_v61 }
0x1904   : > { %8564 = vmatprep.subr.bf16.mxu0 %v8981_v61  ;;  %8570 = vmatprep.subr.bf16.mxu1 %v8981_v61 }
0x1909   : > { %8555 = vmatmul.mubr.msk.bf16.vlgmr.msra.gmra.mrb[84].mxu0 %vm1837_vm2, %v5482_v35  ;;  %8561 = vmatmul.mubr.msk.bf16.vlgmr.msra.gmra.mrb[84].mxu1 %vm1837_vm2, %v5483_v37 }
0x190a   : > { %8566 = vmatprep.mubr.msk.bf16.mxu0 %vm8982_vm0, %v8981_v61  ;;  %8572 = vmatprep.mubr.msk.bf16.mxu1 %vm8982_vm0, %v8981_v61 }
0x19d4   : > { %v5826_v38 = vpop.f32.mrb[80].mxu0  ;;  %v5872_v39 = vpop.f32.mrb[80].mxu1 }
0x19d5   : > { %v5970_v23 = vmul.f32 0.35355338, %v5826_v38  ;;  %v5971_v22 = vmul.f32 0.35355338, %v5872_v39  ;;  %v8544_v44 = vpop.f32.mrb[81].mxu0  ;;  %v8550_v46 = vpop.f32.mrb[81].mxu1 }
0x19d6   : > { %v5829_v47 = vpop.f32.mrb[82].mxu0  ;;  %v5875_v48 = vpop.f32.mrb[82].mxu1 }
0x19d7   : > { %v8545_v51 = vpop.f32.mrb[83].mxu0  ;;  %v8551_v56 = vpop.f32.mrb[83].mxu1  ;;  %v5977_v36 = vsel %vm1837_vm2, %v5971_v22, -inf  ;;  %v5974_v29 = vsel %vm1837_vm2, %v5970_v23, -inf }
0x19d8   : > { %5978 = vmax.xlane.f32.xlu0 %v5977_v36  ;;  %5975 = vmax.xlane.f32.xlu1 %v5974_v29 }
0x19dc   : > { %v5918_v40 = vpop.f32.mrb[84].mxu0  ;;  %v5964_v57 = vpop.f32.mrb[84].mxu1 }
0x19dd   : > { %v5972_v58 = vmul.f32 0.35355338, %v5918_v40  ;;  %v5973_v59 = vmul.f32 0.35355338, %v5964_v57  ;;  %v8556_v50 = vpop.f32.mrb[85].mxu0  ;;  %v8562_v54 = vpop.f32.mrb[85].mxu1 }
0x19de   : > { %v5921_v62 = vpop.f32.mrb[86].mxu0  ;;  %v5967_v41 = vpop.f32.mrb[86].mxu1 }
0x19df   : > { %v8557_v32 = vpop.f32.mrb[87].mxu0  ;;  %v8563_v21 = vpop.f32.mrb[87].mxu1  ;;  %v5983_v55 = vsel %vm1837_vm2, %v5973_v59, -inf  ;;  %v5980_v49 = vsel %vm1837_vm2, %v5972_v58, -inf }
0x19e0   : > { %5984 = vmax.xlane.f32.xlu1 %v5983_v55  ;;  %5981 = vmax.xlane.f32.xlu0 %v5980_v49 }
0x19f1   : > { %5636 = vrot.lane.b32.xlu1 %v10117_v3, %s10665_s7 }
0x19f6   : > { %5634 = vrot.lane.b32.xlu0 %v10101_v53, %s10665_s7 }
0x1a65   : > { %v5979_v1 = vpop.xlane.xlu0 %5978  ;;  %v5976_v42 = vpop.xlane.xlu1 %5975 }
0x1a66   : > { %v5987_v43 = vsub.f32 %v5971_v22, %v5979_v1  ;;  %v5986_v60 = vsub.f32 %v5970_v23, %v5976_v42 }
0x1a68   : > { %v5992_v4 = vmul.f32 1.442695, %v5987_v43  ;;  %v5990_v5 = vmul.f32 1.442695, %v5986_v60 }
0x1a6a   : > { %8885 = vpow2.f32 %v5992_v4 }
0x1a6b   : > { %8887 = vpow2.f32 %v5990_v5 }
0x1a6d   : > { %v5982_v53 = vpop.xlane.xlu0 %5981  ;;  %v5985_v9 = vpop.xlane.xlu1 %5984 }
0x1a6e   : > { %v5988_v30 = vsub.f32 %v5972_v58, %v5982_v53  ;;  %v5989_v10 = vsub.f32 %v5973_v59, %v5985_v9 }
0x1a70   : > { %v5994_v0 = vmul.f32 1.442695, %v5988_v30  ;;  %v5996_v11 = vmul.f32 1.442695, %v5989_v10 }
0x1a71   : > { %v5635_v15 = vpop.permute.xlu0 %5634 }
0x1a72   : > { %8889 = vpow2.f32 %v5994_v0 }
0x1a73   : > { %8891 = vpow2.f32 %v5996_v11 }
0x1a74   : > { %v10189_v31 = vpop.eup %8885 }
0x1a75   : > { %v10191_v7 = vpop.eup %8887  ;;  %v6001_v8 = vsel %vm1837_vm2, %v10189_v31, 0.0 }
0x1a76   : > { %6002 = vadd.xlane.f32.xlu1 %v6001_v8  ;;  %v5998_v3 = vsel %vm1837_vm2, %v10191_v7, 0.0 }
0x1a77   : > { %5999 = vadd.xlane.f32.xlu0 %v5998_v3 }
0x1a7c   : > { %v10201_v12 = vpop.eup %8889 }
0x1a7d   : > { %v10203_v13 = vpop.eup %8891  ;;  %v6004_v14 = vsel %vm1837_vm2, %v10201_v12, 0.0 }
0x1a87   : > { %5638 = vrot.lane.b32.xlu1 %v10115_v2, %s10665_s7  ;;  %v6007_v2 = vsel %vm1837_vm2, %v10203_v13, 0.0 }
0x1a8d   : > { %5640 = vrot.lane.b32.xlu0 %v10123_v6, %s10665_s7  ;;  %v5637_v6 = vpop.permute.xlu1 %5636 }
0x1aab   : > { %6005 = vadd.xlane.f32.xlu1 %v6004_v14 }
0x1aac   : > { %6008 = vadd.xlane.f32.xlu0 %v6007_v2 }
0x1b03   : > { %v6003_v16 = vpop.xlane.xlu1 %6002 }
0x1b04   : > { %v6000_v17 = vpop.xlane.xlu0 %5999  ;;  %8893 = vrcp.f32 %v6003_v16 }
0x1b05   : > { %8895 = vrcp.f32 %v6000_v17 }
0x1b07   : > { %v5639_v19 = vpop.permute.xlu1 %5638 }
0x1b08   : > { %v5646_v20 = vcombine.low %v5635_v15, %v5639_v19  ;;  %v5647_v63 = vcombine.high %v5635_v15, %v5639_v19  ;;  %v5641_v24 = vpop.permute.xlu0 %5640 }
0x1b09   : > { %v5662_v25 = vcombine.low %v5637_v6, %v5641_v24  ;;  %v5663_v26 = vcombine.high %v5637_v6, %v5641_v24 }
0x1b0a   : > { %v5654_v27 = vrot.slane %v5646_v20, %v9381_v45  ;;  %v5661_v28 = vrot.slane %v5647_v63, %v9381_v45 }
0x1b0b   : > { %v5670_v33 = vrot.slane %v5662_v25, %v9381_v45  ;;  %v5677_v34 = vrot.slane %v5663_v26, %v9381_v45 }
0x1b0d   : > { %v5678_v18 = vcombine.low %v5654_v27, %v5670_v33  ;;  %v5679_v35 = vcombine.high %v5654_v27, %v5670_v33  ;;  %v5694_v37 = vcombine.low %v5661_v28, %v5677_v34  ;;  %v5695_v38 = vcombine.high %v5661_v28, %v5677_v34 }
0x1b0e   : > { %v8894_v41 = vpop.eup %8893 }
0x1b0f   : > { %v5686_v39 = vrot.slane %v5678_v18, %v9393_v52  ;;  %v5693_v23 = vrot.slane %v5679_v35, %v9393_v52  ;;  %v5702_v22 = vrot.slane %v5694_v37, %v9393_v52  ;;  %v5709_v44 = vrot.slane %v5695_v38, %v9393_v52  ;;  %v8896_v55 = vpop.eup %8895 }
0x1b10   : > { %v6015_v60 = vmul.f32 %v8894_v41, %v10189_v31  ;;  %v6014_v4 = vmul.f32 %v8896_v55, %v10191_v7 }
0x1b11   : > { %v5714_v46 = vcombine.low %v5686_v39, %v5693_v23  ;;  %v7990_v47 = vcombine.high %v5686_v39, %v5693_v23  ;;  %v5730_v48 = vcombine.low %v5702_v22, %v5709_v44  ;;  %v7991_v51 = vcombine.high %v5702_v22, %v5709_v44 }
0x1b12   : > { %v6018_v10 = vpack.c.bf16 %v6014_v4, %v6014_v4  ;;  %v6019_v0 = vpack.c.bf16 %v6015_v60, %v6015_v60 }
0x1b13   : > { %v5721_v56 = vrot.slane %v5714_v46, %v9381_v45  ;;  %v5729_v36 = vrot.slane %v7990_v47, %v9381_v45  ;;  %v5737_v29 = vrot.slane %v5730_v48, %v9381_v45  ;;  %v5745_v40 = vrot.slane %v7991_v51, %v9381_v45 }
0x1b15   : > { %v5746_v57 = vcombine.low %v5721_v56, %v5729_v36  ;;  %v5747_v58 = vcombine.high %v5721_v56, %v5729_v36  ;;  %v5762_v59 = vcombine.low %v5737_v29, %v5745_v40  ;;  %v5763_v50 = vcombine.high %v5737_v29, %v5745_v40 }
0x1b17   : > { %v5754_v54 = vrot.slane %v5746_v57, %v9393_v52  ;;  %v5761_v62 = vrot.slane %v5747_v58, %v9393_v52  ;;  %v5770_v32 = vrot.slane %v5762_v59, %v9393_v52  ;;  %v5777_v21 = vrot.slane %v5763_v50, %v9393_v52  ;;  %v8819_v58 = vld [vmem:[%s10577_s13 + $0x30] sm:$0xff]  }
0x1b19   : > { %v5778_v49 = vcombine.low %v5754_v54, %v5770_v32  ;;  %v5779_v1 = vcombine.high %v5754_v54, %v5770_v32  ;;  %v5780_v42 = vcombine.low %v5761_v62, %v5777_v21  ;;  %v5781_v43 = vcombine.high %v5761_v62, %v5777_v21 }
0x1b1b   : > { %v5782_v5 = vpack.c.bf16 %v5778_v49, %v5778_v49  ;;  %v5783_v8 = vpack.c.bf16 %v5779_v1, %v5779_v1  ;;  %v5784_v9 = vpack.c.bf16 %v5780_v42, %v5780_v42  ;;  %v5785_v30 = vpack.c.bf16 %v5781_v43, %v5781_v43  ;;  %v8820_v49 = vld [vmem:[%s10577_s13 + $0x38] sm:$0xff]  }
0x1b1d   : > { %v6026_v3 = vsel %vm2077_vm3, %v5782_v5, 0  ;;  %v6072_v53 = vsel %vm2077_vm3, %v5783_v8, 0  ;;  %v6118_v31 = vsel %vm2077_vm3, %v5784_v9, 0  ;;  %v6164_v7 = vsel %vm2077_vm3, %v5785_v30, 0 }
0x1b1e   : > { %8565 = vmatpush3.bf16.msra.mxu0 %v6026_v3  ;;  %8571 = vmatpush3.bf16.msra.mxu1 %v6072_v53  ;;  %v8821_v53 = vld [vmem:[%s10655_s28 + $0x20] sm:$0xff]  }
0x1b1f   : > { %8576 = vmatprep.subr.bf16.mxu0 %v8981_v61  ;;  %8582 = vmatprep.subr.bf16.mxu1 %v8981_v61 }
0x1b21   : > { %8567 = vmatmul.mubr.msk.bf16.vlgmr.msra.gmra.mrb[88].mxu0 %vm1837_vm2, %v6018_v10  ;;  %8573 = vmatmul.mubr.msk.bf16.vlgmr.msra.gmra.mrb[88].mxu1 %vm1837_vm2, %v6019_v0 }
0x1b22   : > { %8577 = vmatpush3.bf16.msra.mxu0 %v6118_v31  ;;  %8583 = vmatpush3.bf16.msra.mxu1 %v6164_v7 }
0x1b23   : > { %8578 = vmatprep.mubr.msk.bf16.mxu0 %vm8982_vm0, %v8981_v61  ;;  %8584 = vmatprep.mubr.msk.bf16.mxu1 %vm8982_vm0, %v8981_v61 }
0x1b24   : > { %8588 = vmatprep.subr.bf16.mxu0 %v8981_v61  ;;  %8596 = vmatprep.subr.bf16.mxu1 %v8981_v61 }
0x1b38   : > { %v6006_v11 = vpop.xlane.xlu1 %6005 }
0x1b39   : > { %8897 = vrcp.f32 %v6006_v11  ;;  %v6009_v14 = vpop.xlane.xlu0 %6008 }
0x1b3a   : > { %8899 = vrcp.f32 %v6009_v14 }
0x1b43   : > { %v8898_v2 = vpop.eup %8897 }
0x1b44   : > { %v8900_v6 = vpop.eup %8899  ;;  %v6016_v15 = vmul.f32 %v8898_v2, %v10201_v12 }
0x1b45   : > { %v6017_v16 = vmul.f32 %v8900_v6, %v10203_v13 }
0x1b46   : > { %v6020_v17 = vpack.c.bf16 %v6016_v15, %v6016_v15 }
0x1b47   : > { %v6021_v19 = vpack.c.bf16 %v6017_v16, %v6017_v16 }
0x1b48   : > { %8579 = vmatmul.mubr.msk.bf16.vlgmr.msra.gmra.mrb[92].mxu0 %vm1837_vm2, %v6020_v17 }
0x1b49   : > { %8585 = vmatmul.mubr.msk.bf16.vlgmr.msra.gmra.mrb[92].mxu1 %vm1837_vm2, %v6021_v19  ;;  %8592 = vmatprep.mubr.msk.bf16.mxu0 %vm8982_vm0, %v8981_v61 }
0x1b4a   : > { %8600 = vmatprep.mubr.msk.bf16.mxu1 %vm8982_vm0, %v8981_v61  ;;  %8589 = vmatpush3.bf16.msra.mxu0 %v8819_v58 }
0x1b4b   : > { %8590 = vmatprep.subr.bf16.mxu0 %v8981_v61  ;;  %8597 = vmatpush3.bf16.msra.mxu1 %v8821_v53 }
0x1b4c   : > { %8598 = vmatprep.subr.bf16.mxu1 %v8981_v61 }
0x1b4e   : > { %8591 = vmatpush3.bf16.msra.mxu0 %v8820_v49 }
0x1b4f   : > { %8604 = vmatprep.subr.bf16.mxu0 %v8981_v61 }
0x1bf4   : > { %v6062_v20 = vpop.f32.mrb[88].mxu0  ;;  %v6108_v63 = vpop.f32.mrb[88].mxu1 }
0x1bf5   : > { %v8568_v24 = vpop.f32.mrb[89].mxu0  ;;  %v8574_v25 = vpop.f32.mrb[89].mxu1 }
0x1bf6   : > { %v6065_v26 = vpop.f32.mrb[90].mxu0  ;;  %v6111_v12 = vpop.f32.mrb[90].mxu1  ;;  %v8007_v24 = vld [vmem:[%s10578_s14 + $0x3] ss:$0 sm:$0xff] }
0x1bf7   : > { %v8569_v27 = vpop.f32.mrb[91].mxu0  ;;  %v8575_v13 = vpop.f32.mrb[91].mxu1 }
0x1c1b   : > { %v6154_v28 = vpop.f32.mrb[92].mxu0 }
0x1c1c   : > { %v6206_v33 = vcombine.low %v6062_v20, %v6154_v28  ;;  %v6207_v34 = vcombine.high %v6062_v20, %v6154_v28  ;;  %v6200_v18 = vpop.f32.mrb[92].mxu1  ;;  %v8580_v35 = vpop.f32.mrb[93].mxu0 }
0x1c1d   : > { %v6222_v37 = vcombine.low %v6108_v63, %v6200_v18  ;;  %v6223_v38 = vcombine.high %v6108_v63, %v6200_v18  ;;  %v8586_v39 = vpop.f32.mrb[93].mxu1  ;;  %v6157_v23 = vpop.f32.mrb[94].mxu0  ;;  %v8822_v63 = vld [vmem:[%s10655_s28 + $0x28] sm:$0xff]  }
0x1c1e   : > { %v6214_v22 = vrot.slane %v6206_v33, %v9381_v45  ;;  %v6221_v44 = vrot.slane %v6207_v34, %v9381_v45  ;;  %v6203_v46 = vpop.f32.mrb[94].mxu1  ;;  %v8581_v47 = vpop.f32.mrb[95].mxu0  ;;  %8599 = vmatpush3.bf16.msra.mxu1 %v8822_v63  ;;  %v8016_v33 = vld [vmem:[%s10656_s27 + $0x2] ss:$0 sm:$0xff] }
0x1c1f   : > { %v6230_v48 = vrot.slane %v6222_v37, %v9381_v45  ;;  %v6237_v51 = vrot.slane %v6223_v38, %v9381_v45  ;;  %v8587_v56 = vpop.f32.mrb[95].mxu1  ;;  %8610 = vmatprep.subr.bf16.mxu1 %v8981_v61 }
0x1c21   : > { %v6238_v36 = vcombine.low %v6214_v22, %v6230_v48  ;;  %v6239_v29 = vcombine.high %v6214_v22, %v6230_v48  ;;  %v6254_v40 = vcombine.low %v6221_v44, %v6237_v51  ;;  %v6255_v57 = vcombine.high %v6221_v44, %v6237_v51 }
0x1c23   : > { %v6246_v59 = vrot.slane %v6238_v36, %v9393_v52  ;;  %v6253_v50 = vrot.slane %v6239_v29, %v9393_v52  ;;  %v6262_v54 = vrot.slane %v6254_v40, %v9393_v52  ;;  %v6269_v62 = vrot.slane %v6255_v57, %v9393_v52 }
0x1c25   : > { %v6274_v41 = vcombine.low %v6246_v59, %v6253_v50  ;;  %v8000_v32 = vcombine.high %v6246_v59, %v6253_v50  ;;  %v6290_v21 = vcombine.low %v6262_v54, %v6269_v62  ;;  %v8001_v55 = vcombine.high %v6262_v54, %v6269_v62 }
0x1c27   : > { %v6281_v1 = vrot.slane %v6274_v41, %v9381_v45  ;;  %v6289_v42 = vrot.slane %v8000_v32, %v9381_v45  ;;  %v6297_v43 = vrot.slane %v6290_v21, %v9381_v45  ;;  %v6305_v60 = vrot.slane %v8001_v55, %v9381_v45 }
0x1c29   : > { %v6307_v4 = vcombine.high %v6281_v1, %v6289_v42  ;;  %v6323_v5 = vcombine.high %v6297_v43, %v6305_v60  ;;  %v6306_v8 = vcombine.low %v6281_v1, %v6289_v42  ;;  %v6322_v3 = vcombine.low %v6297_v43, %v6305_v60 }
0x1c2b   : > { %v6321_v9 = vrot.slane %v6307_v4, %v9393_v52  ;;  %v6337_v30 = vrot.slane %v6323_v5, %v9393_v52  ;;  %v6314_v10 = vrot.slane %v6306_v8, %v9393_v52  ;;  %v6330_v0 = vrot.slane %v6322_v3, %v9393_v52 }
0x1c2d   : > { %v6340_v31 = vcombine.low %v6321_v9, %v6337_v30  ;;  %v6339_v7 = vcombine.high %v6314_v10, %v6330_v0  ;;  %v6341_v11 = vcombine.high %v6321_v9, %v6337_v30  ;;  %v6338_v14 = vcombine.low %v6314_v10, %v6330_v0 }
0x1c2f   : > { %6347 = vrot.lane.b32.xlu1 %v6340_v31, %s10658_s3  ;;  %6343 = vrot.lane.b32.xlu0 %v6339_v7, %s10659_s4 }
0x1c33   : > { %6351 = vrot.lane.b32.xlu1 %v6341_v11, %s10660_s29 }
0x1ca1   : > { %v6348_v2 = vpop.permute.xlu1 %6347  ;;  %v6344_v6 = vpop.permute.xlu0 %6343 }
0x1ca2   : > { %v6354_v15 = vsel %vm1837_vm2, %v6338_v14, %v6344_v6 }
0x1ca3   : > { %v6355_v17 = vsel %vm2408_vm4, %v6354_v15, %v6348_v2 }
0x1ca5   : > { %v6352_v16 = vpop.permute.xlu1 %6351 }
0x1ca6   : > { %v6356_v19 = vsel %vm2410_vm5, %v6355_v17, %v6352_v16 }
0x1ca7   : > { %v6362_v20 = vpack.c.bf16 %v6356_v19, %v6356_v19 }
0x1ca9   : > { %8593 = vmatmul.mubr.msk.bf16.vlgmr.msra.gmra.mrb[96].mxu0 %vm1274_vm1, %v6362_v20 }
0x1caa   : > { %8606 = vmatprep.mubr.msk.bf16.mxu0 %vm8982_vm0, %v8981_v61 }
0x1d7c   : > { %v6420_v25 = vpop.f32.mrb[96].mxu0 }
0x1d7d   : > { %v6421_v26 = vadd.f32 %v8007_v24, %v6420_v25  ;;  %v8594_v12 = vpop.f32.mrb[97].mxu0 }
0x1d7e   : > { %v6423_v27 = vpop.f32.mrb[98].mxu0 }
0x1d7f   : > { %v6431_v13 = vpack.c.bf16 %v6421_v26, %v6421_v26  ;;  %v8595_v28 = vpop.f32.mrb[99].mxu0 }
0x1d81   : > { %8601 = vmatmul.mubr.msk.bf16.vlgmr.msra.gmra.mrb[96].mxu1 %vm1274_vm1, %v6431_v13 }
0x1d82   : > { %8612 = vmatprep.mubr.msk.bf16.mxu1 %vm8982_vm0, %v8981_v61 }
0x1e54   : > { %v6489_v34 = vpop.f32.mrb[96].mxu1 }
0x1e55   : > { %v10299_v18 = vadd.f32 %v8016_v33, %v6489_v34  ;;  %v8602_v35 = vpop.f32.mrb[97].mxu1 }
0x1e56   : > { %v6492_v37 = vpop.f32.mrb[98].mxu1 }
0x1e57   : > { %6499 = vrot.lane.b32.xlu1 %v10299_v18, %s10663_s0  ;;  %6496 = vrot.lane.b32.xlu0 %v10299_v18, %s10664_s24  ;;  %v8603_v38 = vpop.f32.mrb[99].mxu1  ;;  %s8993_s0 = smov [#allocation2]  }
0x1e58   : > { %s8921_s24 = sshll.u32 %s8993_s0, 4  ;;  %s8922_s24 = int_to_ptr.vmem [resolvable:$false] %s8921_s24 }
0x1e5b   : > { %6645 = vrot.lane.b32.xlu1 %v10299_v18, %s10665_s7  ;;  %6502 = vrot.lane.b32.xlu0 %v10299_v18, %s10657_s25  ;;  %s10670_s25 = sld [smem:[#allocation9_spill]] }
0x1e61   : > { %s8047_s30 = sshll.u32 %s10670_s25, 4 }
0x1e62   : > { %s10522_s5 = scalar_lea.hbm %s10674_s15, %s8047_s30 }
0x1ec9   : > { %v10309_v39 = vpop.permute.xlu1 %6499  ;;  %v10311_v23 = vpop.permute.xlu0 %6496 }
0x1eca   : > { %6649 = vrot.lane.b32.xlu1 %v10309_v39, %s10665_s7  ;;  %6647 = vrot.lane.b32.xlu0 %v10311_v23, %s10665_s7  ;;  %v6505_v47 = vcombine.low %v10299_v18, %v10309_v39  ;;  %v6506_v48 = vcombine.high %v10299_v18, %v10309_v39 }
0x1ecc   : > { %v6513_v29 = vrot.slane %v6505_v47, %v9381_v45  ;;  %v6520_v40 = vrot.slane %v6506_v48, %v9381_v45 }
0x1ecd   : > { %v10317_v22 = vpop.permute.xlu0 %6502  ;;  %v6646_v51 = vpop.permute.xlu1 %6645 }
0x1ece   : > { %6651 = vrot.lane.b32.xlu0 %v10317_v22, %s10665_s7  ;;  %v6521_v44 = vcombine.low %v10311_v23, %v10317_v22  ;;  %v6522_v46 = vcombine.high %v10311_v23, %v10317_v22  ;;  %s8923_s7 = scalar_lea.vmem %s8922_s24, 32 }
0x1ed0   : > { %v6529_v56 = vrot.slane %v6521_v44, %v9381_v45  ;;  %v6536_v36 = vrot.slane %v6522_v46, %v9381_v45 }
0x1ed2   : > { %v6537_v59 = vcombine.low %v6513_v29, %v6529_v56  ;;  %v6538_v50 = vcombine.high %v6513_v29, %v6529_v56  ;;  %v6553_v54 = vcombine.low %v6520_v40, %v6536_v36  ;;  %v6554_v62 = vcombine.high %v6520_v40, %v6536_v36 }
0x1ed4   : > { %v6545_v1 = vrot.slane %v6537_v59, %v9393_v52  ;;  %v6552_v42 = vrot.slane %v6538_v50, %v9393_v52  ;;  %v6561_v43 = vrot.slane %v6553_v54, %v9393_v52  ;;  %v6568_v60 = vrot.slane %v6554_v62, %v9393_v52 }
0x1ed6   : > { %v6573_v0 = vcombine.low %v6545_v1, %v6552_v42  ;;  %v8020_v31 = vcombine.high %v6545_v1, %v6552_v42  ;;  %v6589_v7 = vcombine.low %v6561_v43, %v6568_v60  ;;  %v8021_v11 = vcombine.high %v6561_v43, %v6568_v60 }
0x1ed8   : > { %v6580_v63 = vrot.slane %v6573_v0, %v9381_v45  ;;  %v6588_v24 = vrot.slane %v8020_v31, %v9381_v45  ;;  %v6596_v25 = vrot.slane %v6589_v7, %v9381_v45  ;;  %v6604_v26 = vrot.slane %v8021_v11, %v9381_v45 }
0x1eda   : > { %v6605_v46 = vcombine.low %v6580_v63, %v6588_v24  ;;  %v6621_v47 = vcombine.low %v6596_v25, %v6604_v26 }
0x1f3c   : > { %v6650_v57 = vpop.permute.xlu1 %6649  ;;  %v6648_v58 = vpop.permute.xlu0 %6647 }
0x1f3d   : > { %v6657_v41 = vcombine.low %v6646_v51, %v6650_v57  ;;  %v6658_v32 = vcombine.high %v6646_v51, %v6650_v57  ;;  %v6613_v57 = vrot.slane %v6605_v46, %v9393_v52 }
0x1f3f   : > { %v6665_v4 = vrot.slane %v6657_v41, %v9381_v45  ;;  %v6672_v5 = vrot.slane %v6658_v32, %v9381_v45  ;;  %v6606_v41 = vcombine.high %v6580_v63, %v6588_v24 }
0x1f40   : > { %v6652_v21 = vpop.permute.xlu0 %6651 }
0x1f41   : > { %v6673_v55 = vcombine.low %v6648_v58, %v6652_v21  ;;  %v6674_v49 = vcombine.high %v6648_v58, %v6652_v21  ;;  %v6629_v58 = vrot.slane %v6621_v47, %v9393_v52  ;;  %v6620_v60 = vrot.slane %v6606_v41, %v9393_v52 }
0x1f43   : > { %v6681_v8 = vrot.slane %v6673_v55, %v9381_v45  ;;  %v6688_v3 = vrot.slane %v6674_v49, %v9381_v45  ;;  %v6637_v32 = vcombine.low %v6613_v57, %v6629_v58  ;;  %v6638_v21 = vcombine.high %v6613_v57, %v6629_v58 }
0x1f44   : > { %v6622_v55 = vcombine.high %v6596_v25, %v6604_v26 }
0x1f45   : > { %v6689_v53 = vcombine.low %v6665_v4, %v6681_v8  ;;  %v6690_v9 = vcombine.high %v6665_v4, %v6681_v8  ;;  %v6705_v30 = vcombine.low %v6672_v5, %v6688_v3  ;;  %v6706_v10 = vcombine.high %v6672_v5, %v6688_v3 }
0x1f46   : > { %v6641_v42 = vpack.c.bf16 %v6637_v32, %v6637_v32  ;;  %v6642_v43 = vpack.c.bf16 %v6638_v21, %v6638_v21  ;;  %v6636_v4 = vrot.slane %v6622_v55, %v9393_v52 }
0x1f47   : > { %v6697_v14 = vrot.slane %v6689_v53, %v9393_v52  ;;  %v6704_v2 = vrot.slane %v6690_v9, %v9393_v52  ;;  %v6713_v6 = vrot.slane %v6705_v30, %v9393_v52  ;;  %v6720_v15 = vrot.slane %v6706_v10, %v9393_v52 }
0x1f48   : > { %v6639_v3 = vcombine.low %v6620_v60, %v6636_v4  ;;  %v6640_v53 = vcombine.high %v6620_v60, %v6636_v4 }
0x1f49   : > { %v6725_v16 = vcombine.low %v6697_v14, %v6704_v2  ;;  %v8022_v17 = vcombine.high %v6697_v14, %v6704_v2  ;;  %v6741_v19 = vcombine.low %v6713_v6, %v6720_v15  ;;  %v8023_v20 = vcombine.high %v6713_v6, %v6720_v15 }
0x1f4a   : > { %v6643_v9 = vpack.c.bf16 %v6639_v3, %v6639_v3  ;;  %v6644_v30 = vpack.c.bf16 %v6640_v53, %v6640_v53 }
0x1f4b   : > { %v6732_v12 = vrot.slane %v6725_v16, %v9381_v45  ;;  %v6740_v27 = vrot.slane %v8022_v17, %v9381_v45  ;;  %v6748_v13 = vrot.slane %v6741_v19, %v9381_v45  ;;  %v6756_v28 = vrot.slane %v8023_v20, %v9381_v45 }
0x1f4d   : > { %v6757_v33 = vcombine.low %v6732_v12, %v6740_v27  ;;  %v6773_v34 = vcombine.low %v6748_v13, %v6756_v28  ;;  %v6758_v35 = vcombine.high %v6732_v12, %v6740_v27  ;;  %v6774_v37 = vcombine.high %v6748_v13, %v6756_v28 }
0x1f4f   : > { %v6765_v38 = vrot.slane %v6757_v33, %v9393_v52  ;;  %v6781_v44 = vrot.slane %v6773_v34, %v9393_v52  ;;  %v6772_v56 = vrot.slane %v6758_v35, %v9393_v52  ;;  %v6788_v36 = vrot.slane %v6774_v37, %v9393_v52 }
0x1f51   : > { %v6789_v48 = vcombine.low %v6765_v38, %v6781_v44  ;;  %v6790_v51 = vcombine.high %v6765_v38, %v6781_v44  ;;  %v6791_v54 = vcombine.low %v6772_v56, %v6788_v36  ;;  %v6792_v62 = vcombine.high %v6772_v56, %v6788_v36 }
0x1f53   : > { %v6793_v29 = vpack.c.bf16 %v6789_v48, %v6789_v48  ;;  %v6794_v40 = vpack.c.bf16 %v6790_v51, %v6790_v51  ;;  %v6795_v49 = vpack.c.bf16 %v6791_v54, %v6791_v54  ;;  %v6796_v1 = vpack.c.bf16 %v6792_v62, %v6792_v62 }
0x1f55   : > { %v6953_v59 = vsel %vm1837_vm2, %v6793_v29, 0  ;;  %v6999_v50 = vsel %vm1837_vm2, %v6794_v40, 0  ;;  %v7045_v5 = vsel %vm1837_vm2, %v6795_v49, 0  ;;  %v7091_v8 = vsel %vm1837_vm2, %v6796_v1, 0 }
0x1f56   : > { %8605 = vmatpush3.bf16.xpose.msra.mxu0 %v6953_v59  ;;  %8611 = vmatpush3.bf16.xpose.msra.mxu1 %v6999_v50 }
0x1f57   : > { %8616 = vmatprep.subr.bf16.mxu0 %v8981_v61  ;;  %8622 = vmatprep.subr.bf16.mxu1 %v8981_v61 }
0x1f5d   : > { %8607 = vmatmul.mubr.msk.bf16.vlgmr.msra.gmra.mrb[100].mxu0 %vm1837_vm2, %v6641_v42  ;;  %8613 = vmatmul.mubr.msk.bf16.vlgmr.msra.gmra.mrb[100].mxu1 %vm1837_vm2, %v6642_v43 }
0x1f5e   : > { %8617 = vmatpush3.bf16.xpose.msra.mxu0 %v7045_v5  ;;  %8623 = vmatpush3.bf16.xpose.msra.mxu1 %v7091_v8 }
0x1f5f   : > { %8618 = vmatprep.mubr.msk.bf16.mxu0 %vm8982_vm0, %v8981_v61  ;;  %8624 = vmatprep.mubr.msk.bf16.mxu1 %vm8982_vm0, %v8981_v61 }
0x1f60   : > { %8628 = vmatprep.subr.bf16.mxu0 %v8981_v61  ;;  %8634 = vmatprep.subr.bf16.mxu1 %v8981_v61 }
0x1f65   : > { %8619 = vmatmul.mubr.msk.bf16.vlgmr.msra.gmra.mrb[104].mxu0 %vm1837_vm2, %v6643_v9  ;;  %8625 = vmatmul.mubr.msk.bf16.vlgmr.msra.gmra.mrb[104].mxu1 %vm1837_vm2, %v6644_v30 }
0x1f66   : > { %8630 = vmatprep.mubr.msk.bf16.mxu0 %vm8982_vm0, %v8981_v61  ;;  %8636 = vmatprep.mubr.msk.bf16.mxu1 %vm8982_vm0, %v8981_v61 }
0x2030   : > { %v6989_v10 = vpop.f32.mrb[100].mxu0  ;;  %v7035_v0 = vpop.f32.mrb[100].mxu1 }
0x2031   : > { %v7133_v31 = vmul.f32 0.35355338, %v6989_v10  ;;  %v7134_v7 = vmul.f32 0.35355338, %v7035_v0  ;;  %v8608_v11 = vpop.f32.mrb[101].mxu0  ;;  %v8614_v14 = vpop.f32.mrb[101].mxu1 }
0x2032   : > { %v6992_v2 = vpop.f32.mrb[102].mxu0  ;;  %v7038_v6 = vpop.f32.mrb[102].mxu1 }
0x2033   : > { %v8609_v15 = vpop.f32.mrb[103].mxu0  ;;  %v8615_v16 = vpop.f32.mrb[103].mxu1  ;;  %v7140_v17 = vsel %vm1837_vm2, %v7134_v7, -inf  ;;  %v7137_v19 = vsel %vm1837_vm2, %v7133_v31, -inf }
0x2034   : > { %7141 = vmax.xlane.f32.xlu0 %v7140_v17  ;;  %7138 = vmax.xlane.f32.xlu1 %v7137_v19 }
0x2038   : > { %v7081_v20 = vpop.f32.mrb[104].mxu0  ;;  %v7127_v63 = vpop.f32.mrb[104].mxu1 }
0x2039   : > { %v7135_v24 = vmul.f32 0.35355338, %v7081_v20  ;;  %v7136_v25 = vmul.f32 0.35355338, %v7127_v63  ;;  %v8620_v26 = vpop.f32.mrb[105].mxu0  ;;  %v8626_v12 = vpop.f32.mrb[105].mxu1 }
0x203a   : > { %v7084_v27 = vpop.f32.mrb[106].mxu0  ;;  %v7130_v13 = vpop.f32.mrb[106].mxu1 }
0x203b   : > { %v8621_v28 = vpop.f32.mrb[107].mxu0  ;;  %v8627_v33 = vpop.f32.mrb[107].mxu1  ;;  %v7146_v34 = vsel %vm1837_vm2, %v7136_v25, -inf  ;;  %v7143_v35 = vsel %vm1837_vm2, %v7135_v24, -inf }
0x203c   : > { %7147 = vmax.xlane.f32.xlu1 %v7146_v34  ;;  %7144 = vmax.xlane.f32.xlu0 %v7143_v35 }
0x204d   : > { %6799 = vrot.lane.b32.xlu1 %v10311_v23, %s10666_s1 }
0x2052   : > { %6797 = vrot.lane.b32.xlu0 %v10299_v18, %s10666_s1 }
0x20c1   : > { %v7142_v37 = vpop.xlane.xlu0 %7141  ;;  %v7139_v38 = vpop.xlane.xlu1 %7138 }
0x20c2   : > { %v7150_v44 = vsub.f32 %v7134_v7, %v7142_v37  ;;  %v7149_v46 = vsub.f32 %v7133_v31, %v7139_v38 }
0x20c4   : > { %v7155_v47 = vmul.f32 1.442695, %v7150_v44  ;;  %v7153_v48 = vmul.f32 1.442695, %v7149_v46 }
0x20c6   : > { %8901 = vpow2.f32 %v7155_v47 }
0x20c7   : > { %8903 = vpow2.f32 %v7153_v48 }
0x20c9   : > { %v7145_v18 = vpop.xlane.xlu0 %7144  ;;  %v7148_v29 = vpop.xlane.xlu1 %7147 }
0x20ca   : > { %v7151_v40 = vsub.f32 %v7135_v24, %v7145_v18  ;;  %v7152_v57 = vsub.f32 %v7136_v25, %v7148_v29 }
0x20cc   : > { %v7157_v58 = vmul.f32 1.442695, %v7151_v40  ;;  %v7159_v59 = vmul.f32 1.442695, %v7152_v57 }
0x20cd   : > { %v6798_v41 = vpop.permute.xlu0 %6797 }
0x20ce   : > { %8905 = vpow2.f32 %v7157_v58 }
0x20cf   : > { %8907 = vpow2.f32 %v7159_v59 }
0x20d0   : > { %v10389_v51 = vpop.eup %8901 }
0x20d1   : > { %v10391_v56 = vpop.eup %8903  ;;  %v7164_v36 = vsel %vm1837_vm2, %v10389_v51, 0.0 }
0x20d2   : > { %7165 = vadd.xlane.f32.xlu1 %v7164_v36  ;;  %v7161_v23 = vsel %vm1837_vm2, %v10391_v56, 0.0 }
0x20d3   : > { %7162 = vadd.xlane.f32.xlu0 %v7161_v23 }
0x20d8   : > { %v10401_v50 = vpop.eup %8905 }
0x20d9   : > { %v10403_v54 = vpop.eup %8907  ;;  %v7167_v62 = vsel %vm1837_vm2, %v10401_v50, 0.0 }
0x20e3   : > { %6801 = vrot.lane.b32.xlu1 %v10309_v39, %s10666_s1  ;;  %v7170_v39 = vsel %vm1837_vm2, %v10403_v54, 0.0 }
0x20e9   : > { %6803 = vrot.lane.b32.xlu0 %v10317_v22, %s10666_s1  ;;  %v6800_v22 = vpop.permute.xlu1 %6799 }
0x2107   : > { %7168 = vadd.xlane.f32.xlu1 %v7167_v62 }
0x2108   : > { %7171 = vadd.xlane.f32.xlu0 %v7170_v39 }
0x215f   : > { %v7166_v32 = vpop.xlane.xlu1 %7165 }
0x2160   : > { %v7163_v21 = vpop.xlane.xlu0 %7162  ;;  %8909 = vrcp.f32 %v7166_v32 }
0x2161   : > { %8911 = vrcp.f32 %v7163_v21 }
0x2163   : > { %v6802_v55 = vpop.permute.xlu1 %6801 }
0x2164   : > { %v6809_v49 = vcombine.low %v6798_v41, %v6802_v55  ;;  %v6810_v1 = vcombine.high %v6798_v41, %v6802_v55  ;;  %v6804_v42 = vpop.permute.xlu0 %6803 }
0x2165   : > { %v6825_v43 = vcombine.low %v6800_v22, %v6804_v42  ;;  %v6826_v60 = vcombine.high %v6800_v22, %v6804_v42 }
0x2166   : > { %v6817_v4 = vrot.slane %v6809_v49, %v9381_v45  ;;  %v6824_v5 = vrot.slane %v6810_v1, %v9381_v45 }
0x2167   : > { %v6833_v8 = vrot.slane %v6825_v43, %v9381_v45  ;;  %v6840_v3 = vrot.slane %v6826_v60, %v9381_v45 }
0x2169   : > { %v6841_v53 = vcombine.low %v6817_v4, %v6833_v8  ;;  %v6842_v9 = vcombine.high %v6817_v4, %v6833_v8  ;;  %v6857_v30 = vcombine.low %v6824_v5, %v6840_v3  ;;  %v6858_v10 = vcombine.high %v6824_v5, %v6840_v3 }
0x216a   : > { %v8910_v13 = vpop.eup %8909 }
0x216b   : > { %v6849_v0 = vrot.slane %v6841_v53, %v9393_v52  ;;  %v6856_v31 = vrot.slane %v6842_v9, %v9393_v52  ;;  %v6865_v7 = vrot.slane %v6857_v30, %v9393_v52  ;;  %v6872_v11 = vrot.slane %v6858_v10, %v9393_v52  ;;  %v8912_v34 = vpop.eup %8911 }
0x216c   : > { %v7178_v46 = vmul.f32 %v8910_v13, %v10389_v51  ;;  %v7177_v47 = vmul.f32 %v8912_v34, %v10391_v56 }
0x216d   : > { %v6877_v14 = vcombine.low %v6849_v0, %v6856_v31  ;;  %v8024_v2 = vcombine.high %v6849_v0, %v6856_v31  ;;  %v6893_v6 = vcombine.low %v6865_v7, %v6872_v11  ;;  %v8025_v15 = vcombine.high %v6865_v7, %v6872_v11 }
0x216e   : > { %v7181_v57 = vpack.c.bf16 %v7177_v47, %v7177_v47  ;;  %v7182_v58 = vpack.c.bf16 %v7178_v46, %v7178_v46 }
0x216f   : > { %v6884_v16 = vrot.slane %v6877_v14, %v9381_v45  ;;  %v6892_v17 = vrot.slane %v8024_v2, %v9381_v45  ;;  %v6900_v19 = vrot.slane %v6893_v6, %v9381_v45  ;;  %v6908_v20 = vrot.slane %v8025_v15, %v9381_v45 }
0x2171   : > { %v6909_v63 = vcombine.low %v6884_v16, %v6892_v17  ;;  %v6910_v24 = vcombine.high %v6884_v16, %v6892_v17  ;;  %v6925_v25 = vcombine.low %v6900_v19, %v6908_v20  ;;  %v6926_v26 = vcombine.high %v6900_v19, %v6908_v20 }
0x2173   : > { %v6917_v12 = vrot.slane %v6909_v63, %v9393_v52  ;;  %v6924_v27 = vrot.slane %v6910_v24, %v9393_v52  ;;  %v6933_v28 = vrot.slane %v6925_v25, %v9393_v52  ;;  %v6940_v33 = vrot.slane %v6926_v26, %v9393_v52 }
0x2175   : > { %v6941_v35 = vcombine.low %v6917_v12, %v6933_v28  ;;  %v6942_v37 = vcombine.high %v6917_v12, %v6933_v28  ;;  %v6943_v38 = vcombine.low %v6924_v27, %v6940_v33  ;;  %v6944_v44 = vcombine.high %v6924_v27, %v6940_v33 }
0x2177   : > { %v6945_v48 = vpack.c.bf16 %v6941_v35, %v6941_v35  ;;  %v6946_v36 = vpack.c.bf16 %v6942_v37, %v6942_v37  ;;  %v6947_v29 = vpack.c.bf16 %v6943_v38, %v6943_v38  ;;  %v6948_v40 = vpack.c.bf16 %v6944_v44, %v6944_v44 }
0x2179   : > { %v7189_v23 = vsel %vm2077_vm3, %v6945_v48, 0  ;;  %v7235_v18 = vsel %vm2077_vm3, %v6946_v36, 0  ;;  %v7281_v51 = vsel %vm2077_vm3, %v6947_v29, 0  ;;  %v7327_v56 = vsel %vm2077_vm3, %v6948_v40, 0 }
0x217a   : > { %8629 = vmatpush3.bf16.msra.mxu0 %v7189_v23  ;;  %8635 = vmatpush3.bf16.msra.mxu1 %v7235_v18 }
0x217b   : > { %8640 = vmatprep.subr.bf16.mxu0 %v8981_v61  ;;  %8646 = vmatprep.subr.bf16.mxu1 %v8981_v61 }
0x217d   : > { %8631 = vmatmul.mubr.msk.bf16.vlgmr.msra.gmra.mrb[108].mxu0 %vm1837_vm2, %v7181_v57  ;;  %8637 = vmatmul.mubr.msk.bf16.vlgmr.msra.gmra.mrb[108].mxu1 %vm1837_vm2, %v7182_v58 }
0x217e   : > { %8641 = vmatpush3.bf16.msra.mxu0 %v7281_v51  ;;  %8647 = vmatpush3.bf16.msra.mxu1 %v7327_v56  ;;  %v8825_v56 = vld [vmem:[%s10668_s8] sm:$0xff]  }
0x217f   : > { %8642 = vmatprep.mubr.msk.bf16.mxu0 %vm8982_vm0, %v8981_v61  ;;  %8648 = vmatprep.mubr.msk.bf16.mxu1 %vm8982_vm0, %v8981_v61 }
0x2180   : > { %8652 = vmatprep.subr.bf16.mxu0 %v8981_v61  ;;  %8660 = vmatprep.subr.bf16.mxu1 %v8981_v61 }
0x2194   : > { %v7169_v59 = vpop.xlane.xlu1 %7168 }
0x2195   : > { %8913 = vrcp.f32 %v7169_v59  ;;  %v7172_v62 = vpop.xlane.xlu0 %7171  ;;  %v8826_v59 = vld [vmem:[%s10668_s8 + $0x8] sm:$0xff]  }
0x2196   : > { %8915 = vrcp.f32 %v7172_v62  ;;  %v8827_v62 = vld [vmem:[%s10668_s8 + $0x10] sm:$0xff]  }
0x219f   : > { %v8914_v39 = vpop.eup %8913 }
0x21a0   : > { %v8916_v22 = vpop.eup %8915  ;;  %v7179_v41 = vmul.f32 %v8914_v39, %v10401_v50  ;;  %v8828_v39 = vld [vmem:[%s10668_s8 + $0x18] sm:$0xff]  }
0x21a1   : > { %v7180_v32 = vmul.f32 %v8916_v22, %v10403_v54  ;;  %v8829_v22 = vld [vmem:[%s10668_s8 + $0x20] sm:$0xff]  }
0x21a2   : > { %v7183_v21 = vpack.c.bf16 %v7179_v41, %v7179_v41  ;;  %v8830_v41 = vld [vmem:[%s10668_s8 + $0x28] sm:$0xff]  }
0x21a3   : > { %v7184_v55 = vpack.c.bf16 %v7180_v32, %v7180_v32 }
0x21a4   : > { %8643 = vmatmul.mubr.msk.bf16.vlgmr.msra.gmra.mrb[112].mxu0 %vm1837_vm2, %v7183_v21 }
0x21a5   : > { %8649 = vmatmul.mubr.msk.bf16.vlgmr.msra.gmra.mrb[112].mxu1 %vm1837_vm2, %v7184_v55  ;;  %8656 = vmatprep.mubr.msk.bf16.mxu0 %vm8982_vm0, %v8981_v61 }
0x21a6   : > { %8676 = vmatprep.mubr.msk.bf16.mxu1 %vm8982_vm0, %v8981_v61  ;;  %8661 = vmatpush3.bf16.msra.mxu1 %v8825_v56 }
0x21a7   : > { %8662 = vmatprep.subr.bf16.mxu1 %v8981_v61 }
0x21aa   : > { %8663 = vmatpush3.bf16.msra.mxu1 %v8826_v59 }
0x21ab   : > { %8664 = vmatprep.subr.bf16.mxu1 %v8981_v61 }
0x21ae   : > { %8665 = vmatpush3.bf16.msra.mxu1 %v8827_v62 }
0x21af   : > { %8666 = vmatprep.subr.bf16.mxu1 %v8981_v61 }
0x21b2   : > { %8667 = vmatpush3.bf16.msra.mxu1 %v8828_v39 }
0x21b3   : > { %8668 = vmatprep.subr.bf16.mxu1 %v8981_v61 }
0x21b6   : > { %8669 = vmatpush3.bf16.msra.mxu1 %v8829_v22 }
0x21b7   : > { %8670 = vmatprep.subr.bf16.mxu1 %v8981_v61 }
0x21ba   : > { %8671 = vmatpush3.bf16.msra.mxu1 %v8830_v41 }
0x21bb   : > { %8672 = vmatprep.subr.bf16.mxu1 %v8981_v61 }
0x2250   : > { %v7225_v49 = vpop.f32.mrb[108].mxu0  ;;  %v7271_v1 = vpop.f32.mrb[108].mxu1 }
0x2251   : > { %v8632_v42 = vpop.f32.mrb[109].mxu0  ;;  %v8638_v43 = vpop.f32.mrb[109].mxu1 }
0x2252   : > { %v7228_v60 = vpop.f32.mrb[110].mxu0  ;;  %v7274_v50 = vpop.f32.mrb[110].mxu1 }
0x2253   : > { %v8633_v4 = vpop.f32.mrb[111].mxu0  ;;  %v8639_v54 = vpop.f32.mrb[111].mxu1 }
0x2277   : > { %v7317_v5 = vpop.f32.mrb[112].mxu0 }
0x2278   : > { %v7369_v8 = vcombine.low %v7225_v49, %v7317_v5  ;;  %v7370_v3 = vcombine.high %v7225_v49, %v7317_v5  ;;  %v7363_v53 = vpop.f32.mrb[112].mxu1  ;;  %v8644_v9 = vpop.f32.mrb[113].mxu0 }
0x2279   : > { %v7385_v30 = vcombine.low %v7271_v1, %v7363_v53  ;;  %v7386_v10 = vcombine.high %v7271_v1, %v7363_v53  ;;  %v8650_v0 = vpop.f32.mrb[113].mxu1  ;;  %v7320_v31 = vpop.f32.mrb[114].mxu0  ;;  %v8831_v9 = vld [vmem:[%s10668_s8 + $0x30] sm:$0xff]  }
0x227a   : > { %v7377_v7 = vrot.slane %v7369_v8, %v9381_v45  ;;  %v7384_v11 = vrot.slane %v7370_v3, %v9381_v45  ;;  %v7366_v14 = vpop.f32.mrb[114].mxu1  ;;  %v8645_v2 = vpop.f32.mrb[115].mxu0  ;;  %8673 = vmatpush3.bf16.msra.mxu1 %v8831_v9 }
0x227b   : > { %v7393_v6 = vrot.slane %v7385_v30, %v9381_v45  ;;  %v7400_v15 = vrot.slane %v7386_v10, %v9381_v45  ;;  %v8651_v16 = vpop.f32.mrb[115].mxu1  ;;  %8674 = vmatprep.subr.bf16.mxu1 %v8981_v61  ;;  %v8832_v30 = vld [vmem:[%s10668_s8 + $0x38] sm:$0xff]   ;;  %v7534_v10 = vld [vmem:[%s10671_s6] sm:$0x1] }
0x227d   : > { %v7401_v17 = vcombine.low %v7377_v7, %v7393_v6  ;;  %v7402_v19 = vcombine.high %v7377_v7, %v7393_v6  ;;  %v7417_v20 = vcombine.low %v7384_v11, %v7400_v15  ;;  %v7418_v63 = vcombine.high %v7384_v11, %v7400_v15 }
0x227e   : > { %8675 = vmatpush3.bf16.msra.mxu1 %v8832_v30 }
0x227f   : > { %v7409_v24 = vrot.slane %v7401_v17, %v9393_v52  ;;  %v7416_v25 = vrot.slane %v7402_v19, %v9393_v52  ;;  %v7425_v26 = vrot.slane %v7417_v20, %v9393_v52  ;;  %v7432_v12 = vrot.slane %v7418_v63, %v9393_v52 }
0x2281   : > { %v7437_v27 = vcombine.low %v7409_v24, %v7416_v25  ;;  %v8034_v13 = vcombine.high %v7409_v24, %v7416_v25  ;;  %v7453_v28 = vcombine.low %v7425_v26, %v7432_v12  ;;  %v8035_v33 = vcombine.high %v7425_v26, %v7432_v12 }
0x2283   : > { %v7444_v34 = vrot.slane %v7437_v27, %v9381_v45  ;;  %v7452_v35 = vrot.slane %v8034_v13, %v9381_v45  ;;  %v7460_v37 = vrot.slane %v7453_v28, %v9381_v45  ;;  %v7468_v38 = vrot.slane %v8035_v33, %v9381_v45  ;;  %v8823_v45 = vld [vmem:[%s10583_s19] sm:$0xff]  }
0x2284   : > { %8653 = vmatpush3.bf16.msra.mxu0 %v8823_v45 }
0x2285   : > { %v7470_v44 = vcombine.high %v7444_v34, %v7452_v35  ;;  %v7486_v46 = vcombine.high %v7460_v37, %v7468_v38  ;;  %v7469_v47 = vcombine.low %v7444_v34, %v7452_v35  ;;  %v7485_v48 = vcombine.low %v7460_v37, %v7468_v38  ;;  %8654 = vmatprep.subr.bf16.mxu0 %v8981_v61  ;;  %v7608_v61 = vld [vmem:[%s10672_s17] sm:$0x1] }
0x2287   : > { %v7484_v36 = vrot.slane %v7470_v44, %v9393_v52  ;;  %v7500_v23 = vrot.slane %v7486_v46, %v9393_v52  ;;  %v7477_v18 = vrot.slane %v7469_v47, %v9393_v52  ;;  %v7493_v29 = vrot.slane %v7485_v48, %v9393_v52  ;;  %v8824_v52 = vld [vmem:[%s10583_s19 + $0x8] sm:$0xff]  }
0x2288   : > { %8655 = vmatpush3.bf16.msra.mxu0 %v8824_v52 }
0x2289   : > { %v7503_v40 = vcombine.low %v7484_v36, %v7500_v23  ;;  %v7502_v57 = vcombine.high %v7477_v18, %v7493_v29  ;;  %v7504_v58 = vcombine.high %v7484_v36, %v7500_v23  ;;  %v7501_v51 = vcombine.low %v7477_v18, %v7493_v29 }
0x228b   : > { %7510 = vrot.lane.b32.xlu1 %v7503_v40, %s10658_s3  ;;  %7506 = vrot.lane.b32.xlu0 %v7502_v57, %s10659_s4  ;;  %s714_s3 = sand.u32 1, %s10669_s23  }
0x228c   : > { %s715_s26 = scalar_lea.vmem [#allocation2], %s714_s3  ;;  %s7699_s23 = scalar_lea.sflag [#allocation3], %s714_s3 }
0x228d   : > { %s7711_s20 = sshll.u32 %s715_s26, 4  ;;  %s10524_s20 = int_to_ptr.vmem [resolvable:$true] %s7711_s20 }
0x228e   : > { %s8917_s25 = scalar_lea.vmem %s10524_s20, 16  ;;  %p8924_p0 = scmp.lt.s32.totalorder %s10524_s20, %s8922_s24 }
0x228f   : > { %7514 = vrot.lane.b32.xlu1 %v7504_v58, %s10660_s29  ;;  %p8918_p11 = scmp.ne.s32.totalorder %s10524_s20, %s8917_s25  ;;  %p8925_p1 = scmp.lt.s32.totalorder %s8923_s7, %s8917_s25 }
0x2291   : > { %p8919_p12 = pnand %p8918_p11, %p9152_p5  ;;  %p8926_p2 = por %p8925_p1, %p8924_p0 }
0x2293   : > { %p8920_p13 = pneg %p8919_p12 }
0x2295   : > { %p8927_p3 = pnand %p8926_p2, %p8920_p13 }
0x22fd   : > { %v7511_v32 = vpop.permute.xlu1 %7510  ;;  %v7507_v21 = vpop.permute.xlu0 %7506 }
0x22fe   : > { %v7517_v55 = vsel %vm1837_vm2, %v7501_v51, %v7507_v21 }
0x22ff   : > { %v7518_v1 = vsel %vm2408_vm4, %v7517_v55, %v7511_v32 }
0x2301   : > { %v7515_v49 = vpop.permute.xlu1 %7514 }
0x2302   : > { %v7519_v42 = vsel %vm2410_vm5, %v7518_v1, %v7515_v49 }
0x2303   : > { %v7520_v43 = vsel %vm1274_vm1, %v7519_v42, 0.0 }
0x2304   : > { %v7521_v60 = vrot.slane %v7520_v43, 4 }
0x2306   : > { %v7522_v50 = vadd.f32 %v7521_v60, %v7520_v43 }
0x2308   : > { %v7523_v4 = vrot.slane %v7522_v50, 2 }
0x230a   : > { %v7524_v54 = vadd.f32 %v7523_v4, %v7522_v50 }
0x230c   : > { %v7525_v5 = vrot.slane %v7524_v54, 1 }
0x230e   : > { %v7526_v8 = vadd.f32 %v7525_v5, %v7524_v54 }
0x2310   : > { %v7528_v3 = vmul.f32 0.125, %v7526_v8 }
0x2312   : > { %v7533_v53 = vpack.c.bf16 %v7528_v3, %v7528_v3 }
0x2314   : > { %8657 = vmatmul.mubr.msk.bf16.vlgmr.msra.gmra.mrb[116].mxu0 %vm1274_vm1, %v7533_v53 }
0x23e7   : > { %v7584_v0 = vpop.f32.mrb[116].mxu0 }
0x23e8   : > { %v7585_v31 = vadd.f32 %v7584_v0, %v7534_v10  ;;  %v8658_v7 = vpop.f32.mrb[117].mxu0 }
0x23e9   : > { %v7587_v11 = vpop.f32.mrb[118].mxu0 }
0x23ea   : > { %v7590_v14 = vmax.f32 %v7585_v31, 0.0  ;;  %v8659_v2 = vpop.f32.mrb[119].mxu0 }
0x23ec   : > { %v7607_v6 = vpack.c.bf16 %v7590_v14, %v7590_v14 }
0x23ee   : > { %8677 = vmatmul.mubr.bf16.vlgmr.msra.gmra.mrb[116].mxu1 %v7607_v6 }
0x24c1   : > { %v7691_v15 = vpop.f32.mrb[116].mxu1 }
0x24c2   : > { %v7692_v16 = vadd.f32 %v7691_v15, %v7608_v61  ;;  %v8678_v17 = vpop.f32.mrb[117].mxu1 }
0x24c3   : > { %v7694_v19 = vpop.f32.mrb[118].mxu1 }
0x24c4   : > { %7697 = vst [vmem:[%s715_s26] sm:$0x1] %v7692_v16  ;;  %v8679_v20 = vpop.f32.mrb[119].mxu1 }
0x24c5   : > { %8930 = shalt.err (!%p8927_p3)
}
0x24c6   : > { %s8931_s1 = scalar_lea.hbm %s10522_s5, 16  ;;  %s8935_s4 = scalar_lea.hbm %s10674_s15, 32 }
0x24c7   : > { %p8932_p4 = scmp.ne.s32.totalorder %s10522_s5, %s8931_s1  ;;  %p8936_p9 = scmp.lt.u32.totalorder %s10522_s5, %s10674_s15 }
0x24c8   : > { %p8937_p10 = scmp.lt.u32.totalorder %s8935_s4, %s8931_s1  ;;  %p8939_p12 = scmp.lt.u32.totalorder %s8931_s1, %s10522_s5 }
0x24c9   : > { %p8933_p7 = pnand %p8932_p4, %p9152_p5 }
0x24ca   : > { %p8938_p11 = por %p8937_p10, %p8936_p9 }
0x24cb   : > { %p8934_p8 = pneg %p8933_p7 }
0x24cc   : > { %p8940_p13 = por %p8939_p12, %p8938_p11 }
0x24ce   : > { %p8941_p0 = pnand %p8940_p13, %p8934_p8 }
0x24d0   : > { %8944 = shalt.err (!%p8941_p0)
}
0x24d1   : > { %8681 = dma.vmem_to_hbm [thread:$0]  (%p9152_p5), %s10524_s20, 16, %s10522_s5, %s7699_s23  }
0x24d2 PF: > { %s10675_s30 = sld [smem:[#allocation8_spill]]  ;;  %s10676_s26 = sld [smem:[#allocation5_spill]] }
0x24d8   : > { %p8687_p1 = scmp.ge.s32.totalorder %s10675_s30, 2  ;;  %s7723_s2 = sand.u32 1, %s10676_s26  }
0x24d9   : > { %s7724_s25 = scalar_lea.sflag [#allocation3], %s7723_s2 }
0x24da   : > { %p8684_p2 = pnand %p8687_p1, %p9156_p6 }
0x24dc   : > { %8962 = dma.done.wait (!%p8684_p2), %s7724_s25, 16  }
0x24dd   : > { %8964 = vsyncadd (!%p8684_p2), %s7724_s25, 4294967280  ;;  %s10678_s25 = sld [smem:[#allocation10_spill]]  ;;  %s10679_s4 = sld [smem:[#allocation6_spill]] }
0x24de   : > { %s10680_s30 = sld [smem:[#allocation7_spill]]  ;;  %s10681_s24 = sld [smem:[#allocation11_spill]] }
0x24e3   : > { %p33_p3 = scmp.ge.s32.totalorder %s10678_s25, 4  }
0x24e5   :  { %35 = sbr.rel (!%p33_p3) target bundleno = 19 (0x13), region = 166 }
0x24ec   :  { %7728 = vsyncpa [#allocation3], 1 }
0x24ed   :  { %7730 = vsyncpa [#allocation3 + $0x1], 1 }

</bundles_post_ra>
